<compile_context>
chip_gen: v7x
topology: tpu7x:2x2x1
jax: 0.10.0
libtpu: 0.0.40
codegen_flags: <defaults>
</compile_context>

<pallas_src>
import functools
import numpy as np

import jax
import jax.numpy as jnp
from jax.experimental import pallas as pl
from jax.experimental.pallas import tpu as pltpu

NODE_DIM = 3
EDGE_DIM = 3
MIDDLE = 20
NUM_LAYERS = 12
OUT_DIM = 2
OUT_PAD = 128  # lane-dense output width; wrapper slices back to OUT_DIM


def _mm(a, b):
    return jnp.dot(a, b, preferred_element_type=jnp.float32)


def mpn_kernel(M_ref, H_ref, idx_col_ref, idx_row_ref, wslab_ref, out_ref,
               *, num_layers, offs, use_bf16):
    f32 = jnp.float32
    oh_dt = jnp.bfloat16 if use_bf16 else f32
    N = M_ref.shape[0]
    E = H_ref.shape[0]
    MID = MIDDLE

    slab = wslab_ref[...]                       # one DMA; everything else is slices

    def W(name):
        r, h, w = offs[name]
        return slab[r:r + h, :w]

    # ---------------- prologue (runs once) ----------------
    idx_col = idx_col_ref[...]                  # [2E,1] int32: rows 0:E past, E:2E future
    idx_row = idx_row_ref[...]                  # [2 ,E] int32: row 0 past, row 1 future

    # Gather one-hot, stacked: rows 0:E gather by past (M_j), rows E:2E by future (M_i).
    col_ids = jax.lax.broadcasted_iota(jnp.int32, (2 * E, N), 1)
    oh_pf = (col_ids == idx_col).astype(oh_dt)  # [2E, N]
    oh_p = oh_pf[:E]
    oh_f = oh_pf[E:]

    # Scatter one-hots + exact scatter-mean scales.
    row_ids = jax.lax.broadcasted_iota(jnp.int32, (N, E), 0)
    maskT_p = row_ids == idx_row[0:1, :]
    maskT_f = row_ids == idx_row[1:2, :]
    inv_p = 1.0 / jnp.maximum(jnp.sum(maskT_p.astype(f32), axis=1, keepdims=True), 1.0)
    inv_f = 1.0 / jnp.maximum(jnp.sum(maskT_f.astype(f32), axis=1, keepdims=True), 1.0)
    if use_bf16:
        # keep one-hots exact in bf16; apply the (f32) mean scale per layer instead.
        ohT_p = maskT_p.astype(oh_dt)
        ohT_f = maskT_f.astype(oh_dt)
    else:
        # fold 1/cnt into the f32 scatter one-hots once (commutes with right-multiply).
        ohT_p = maskT_p.astype(f32) * inv_p
        ohT_f = maskT_f.astype(f32) * inv_f

    M0 = M_ref[...]
    H0 = H_ref[...]

    # Layer-0 gather term G0 (lanes 0:20 -> mlp_e hidden, 20:40 -> p1, 40:60 -> f1).
    G0 = _mm(oh_p, _mm(M0, W("w_gp60"))) + _mm(oh_f, _mm(M0, W("w_gf60")))       # [E,60]
    # Loop-invariant init_M branch of mlp_past/mlp_future (biases bp1|bf1 included).
    initPF = (_mm(oh_p, _mm(M0, W("w_ip40"))) + _mm(oh_f, _mm(M0, W("w_if40")))
              + jnp.broadcast_to(W("b_pf_init"), (E, 2 * MID)))                  # [E,40]
    # Hterm = H @ we1_h + be1 (full bias-included H contribution to mlp_e's hidden).
    Hterm0 = _mm(H0, W("we1_h")) + jnp.broadcast_to(W("be1"), (E, MID))          # [E,20]

    # Pre-broadcast loop biases once (hoisted; broadcast_in_dim is not CSE'd).
    b_h1all = jnp.broadcast_to(W("b_h1all"), (E, 3 * MID))
    b_pfv = jnp.broadcast_to(W("b_pfv"), (E, 2 * MID))
    bv1 = jnp.broadcast_to(W("bv1"), (N, MID))
    b_G = jnp.broadcast_to(W("b_G"), (E, 3 * MID))

    w_h1all = W("w_h1all")    # [20,60] = we2 @ [wp1_h | wf1_h | we1_h]
    w_pfv = W("w_pfv")        # [40,40] = blockdiag(wp2@wv1_a, wf2@wv1_b)
    w_vgp = W("w_vgp")        # [20,60] = wv2 @ w_gp60
    w_vgf = W("w_vgf")        # [20,60] = wv2 @ w_gf60

    def cast(x):
        return x.astype(oh_dt) if use_bf16 else x

    # ---------------- shared layers (fully unrolled) ----------------
    def body(_, carry):
        G, Hterm, _ = carry
        h1 = jnp.maximum(G[:, :MID] + Hterm, 0.0)                          # mlp_e hidden
        hw_ht = _mm(h1, w_h1all) + b_h1all                                 # [E,60]: HW_p|HW_f|Hterm'
        pf1 = jnp.maximum(G[:, MID:] + hw_ht[:, :2 * MID] + initPF, 0.0)   # p1 | f1  [E,40]
        MV = _mm(pf1, w_pfv) + b_pfv                                       # Mi_msg@wv1_a | Mj_msg@wv1_b
        S_f = _mm(ohT_f, cast(MV[:, :MID]))                                # scatter(-mean) by future
        S_p = _mm(ohT_p, cast(MV[:, MID:]))                                # scatter(-mean) by past
        if use_bf16:
            S = S_f * inv_f + S_p * inv_p
        else:
            S = S_f + S_p
        v1 = jnp.maximum(S + bv1, 0.0)                                     # mlp_v hidden  [N,20]
        Gv = _mm(oh_pf, cast(v1))                                          # stacked gather [2E,20]
        G_new = _mm(Gv[:E], w_vgp) + _mm(Gv[E:], w_vgf) + b_G              # next-layer gather term
        return (G_new, hw_ht[:, 2 * MID:], h1)

    h1_init = jnp.zeros((E, MID), f32)
    _, _, h1_last = jax.lax.fori_loop(0, num_layers, body, (G0, Hterm0, h1_init),
                                      unroll=True)

    # ---------------- final mlp(H) with we2/be2 folded in; lane-dense output ----------------
    o1 = jnp.maximum(_mm(h1_last, W("w_hm1")) + jnp.broadcast_to(W("b_hm1"), (E, MID)), 0.0)
    out_ref[...] = _mm(o1, W("wm2p")) + jnp.broadcast_to(W("bm2p"), (E, OUT_PAD))


# ---------------------------------------------------------------------------
# Wrapper-side weight preparation (plain JAX glue, runs once).
# ---------------------------------------------------------------------------
def _pack_slab(named_arrays):
    """Stack 2-D f32 arrays into one [R,128] slab; each block 8-row aligned."""
    lanes = 128
    offsets = {}
    blocks = []
    r = 0
    for name, a in named_arrays:
        a = jnp.asarray(a, jnp.float32)
        h, w = a.shape
        hp = ((h + 7) // 8) * 8
        blocks.append(jnp.zeros((hp, lanes), jnp.float32).at[:h, :w].set(a))
        offsets[name] = (r, h, w)
        r += hp
    return jnp.concatenate(blocks, axis=0), offsets


def _prep_weights(params):
    we1, wp1, wf1, wv1 = params["we1"], params["wp1"], params["wf1"], params["wv1"]
    we1_mi, we1_mj, we1_h = we1[:NODE_DIM], we1[NODE_DIM:2 * NODE_DIM], we1[2 * NODE_DIM:]
    wp1_mi, wp1_h, wp1_init = wp1[:NODE_DIM], wp1[NODE_DIM:2 * NODE_DIM], wp1[2 * NODE_DIM:]
    wf1_mj, wf1_h, wf1_init = wf1[:NODE_DIM], wf1[NODE_DIM:2 * NODE_DIM], wf1[2 * NODE_DIM:]
    wv1_a, wv1_b = wv1[:NODE_DIM], wv1[NODE_DIM:]
    we2, be2, be1 = params["we2"], params["be2"], params["be1"]
    Z = jnp.zeros((NODE_DIM, MIDDLE), jnp.float32)

    # 60-wide gather weights: lanes 0:20 mlp_e hidden, 20:40 -> p1, 40:60 -> f1.
    w_gp60 = jnp.concatenate([we1_mj, Z, wf1_mj], axis=1)   # applied to M[past]   (M_j)
    w_gf60 = jnp.concatenate([we1_mi, wp1_mi, Z], axis=1)   # applied to M[future] (M_i)

    # h1-driven weights: H'@wp1_h | H'@wf1_h | next layer's (H'@we1_h + be1).
    w_hpf_h = jnp.concatenate([wp1_h, wf1_h, we1_h], axis=1)            # [3, 60]
    w_h1all = we2 @ w_hpf_h                                             # [20,60]
    b_h1all = jnp.concatenate([be2 @ wp1_h, be2 @ wf1_h, be2 @ we1_h + be1], axis=1)

    # mlp_past/mlp_future second layers fused with mlp_v's first layer, block-diag batched.
    wpv = params["wp2"] @ wv1_a
    bpv = params["bp2"] @ wv1_a
    wfv = params["wf2"] @ wv1_b
    bfv = params["bf2"] @ wv1_b
    w_pfv = (jnp.zeros((2 * MIDDLE, 2 * MIDDLE), jnp.float32)
             .at[:MIDDLE, :MIDDLE].set(wpv).at[MIDDLE:, MIDDLE:].set(wfv))
    b_pfv = jnp.concatenate([bpv, bfv], axis=1)

    # Next-layer gather term from v1: G' = (oh_p@v1)@w_vgp + (oh_f@v1)@w_vgf + b_G.
    wv2, bv2 = params["wv2"], params["bv2"]
    w_vgp = wv2 @ w_gp60
    w_vgf = wv2 @ w_gf60
    b_G = bv2 @ (w_gp60 + w_gf60)

    # Loop-invariant init_M branch (p in lanes 0:20, f in 20:40).
    w_ip40 = jnp.concatenate([wp1_init, Z], axis=1)
    w_if40 = jnp.concatenate([Z, wf1_init], axis=1)
    b_pf_init = jnp.concatenate([params["bp1"], params["bf1"]], axis=1)

    # Final mlp with H = h1@we2+be2 folded in; lane-dense padded second layer.
    w_hm1 = we2 @ params["wm1"]
    b_hm1 = be2 @ params["wm1"] + params["bm1"]
    wm2p = jnp.zeros((MIDDLE, OUT_PAD), jnp.float32).at[:, :OUT_DIM].set(params["wm2"])
    bm2p = jnp.zeros((1, OUT_PAD), jnp.float32).at[:, :OUT_DIM].set(params["bm2"])

    named = [
        ("w_gp60", w_gp60), ("w_gf60", w_gf60), ("we1_h", we1_h), ("be1", be1),
        ("w_ip40", w_ip40), ("w_if40", w_if40), ("b_pf_init", b_pf_init),
        ("w_h1all", w_h1all), ("b_h1all", b_h1all),
        ("w_pfv", w_pfv), ("b_pfv", b_pfv), ("bv1", params["bv1"]),
        ("w_vgp", w_vgp), ("w_vgf", w_vgf), ("b_G", b_G),
        ("w_hm1", w_hm1), ("b_hm1", b_hm1), ("wm2p", wm2p), ("bm2p", bm2p),
    ]
    return _pack_slab(named)


def init_linear(key, fan_in, fan_out):
    """Deterministic nn.Linear-style init; weight stored as [fan_in, fan_out]."""
    k1, k2 = jax.random.split(key)
    bound = 1.0 / np.sqrt(fan_in)
    W = jax.random.uniform(k1, (fan_in, fan_out), jnp.float32, -bound, bound)
    b = jax.random.uniform(k2, (1, fan_out), jnp.float32, -bound, bound)
    return W, b


def make_params(key):
    ks = jax.random.split(key, 10)
    p = {}
    p["we1"], p["be1"] = init_linear(ks[0], 2 * NODE_DIM + EDGE_DIM, MIDDLE)
    p["we2"], p["be2"] = init_linear(ks[1], MIDDLE, EDGE_DIM)
    p["wp1"], p["bp1"] = init_linear(ks[2], NODE_DIM + EDGE_DIM + NODE_DIM, MIDDLE)
    p["wp2"], p["bp2"] = init_linear(ks[3], MIDDLE, NODE_DIM)
    p["wf1"], p["bf1"] = init_linear(ks[4], NODE_DIM + EDGE_DIM + NODE_DIM, MIDDLE)
    p["wf2"], p["bf2"] = init_linear(ks[5], MIDDLE, NODE_DIM)
    p["wv1"], p["bv1"] = init_linear(ks[6], NODE_DIM + EDGE_DIM, MIDDLE)
    p["wv2"], p["bv2"] = init_linear(ks[7], MIDDLE, NODE_DIM)
    p["wm1"], p["bm1"] = init_linear(ks[8], EDGE_DIM, MIDDLE)
    p["wm2"], p["bm2"] = init_linear(ks[9], MIDDLE, 2)
    return p


def mpn_forward(M, H, edge_index, params, num_layers=NUM_LAYERS):
    assert num_layers >= 1, "folded kernel assumes at least one message-passing layer"
    N, E = M.shape[0], H.shape[0]
    past = edge_index[0].astype(jnp.int32)
    future = edge_index[1].astype(jnp.int32)

    idx_col = jnp.concatenate([past, future]).reshape(2 * E, 1)   # sublane layout (gather)
    idx_row = jnp.stack([past, future], axis=0)                   # lane layout   (scatter)
    wslab, offs = _prep_weights(params)

    # bf16 only where the O(E*N) one-hot footprint matters; f32 end-to-end at toy sizes.
    use_bf16 = (N * E) >= (1 << 18)

    vmem = pl.BlockSpec(memory_space=pltpu.MemorySpace.VMEM)
    out_padded = pl.pallas_call(
        functools.partial(mpn_kernel, num_layers=num_layers, offs=offs, use_bf16=use_bf16),
        out_shape=jax.ShapeDtypeStruct((E, OUT_PAD), jnp.float32),
        in_specs=[vmem] * 5,
        out_specs=vmem,
    )(M.astype(jnp.float32), H.astype(jnp.float32), idx_col, idx_row, wslab)
    return out_padded[:, :OUT_DIM]


def mpn_reference(M, H, edge_index, params, num_layers=NUM_LAYERS):
    """Pure-JAX f32 reference mirroring the PyTorch module."""
    past, future = edge_index[0], edge_index[1]
    N = M.shape[0]
    init_M = M

    def scatter_mean(vals, idx):
        s = jnp.zeros((N, vals.shape[1]), jnp.float32).at[idx].add(vals)
        c = jnp.zeros((N, 1), jnp.float32).at[idx].add(1.0)
        return s / jnp.maximum(c, 1.0)

    def mlp(x, w1, b1, w2, b2):
        return jnp.maximum(x @ w1 + b1, 0.0) @ w2 + b2

    for _ in range(num_layers):
        M_i, M_j = M[future], M[past]
        H = mlp(jnp.concatenate([M_i, M_j, H], 1),
                params["we1"], params["be1"], params["we2"], params["be2"])
        Mi_msg = mlp(jnp.concatenate([M_i, H, init_M[past]], 1),
                     params["wp1"], params["bp1"], params["wp2"], params["bp2"])
        Mj_msg = mlp(jnp.concatenate([M_j, H, init_M[future]], 1),
                     params["wf1"], params["bf1"], params["wf2"], params["bf2"])
        agg = jnp.concatenate([scatter_mean(Mi_msg, future), scatter_mean(Mj_msg, past)], 1)
        M = mlp(agg, params["wv1"], params["bv1"], params["wv2"], params["bv2"])
    return mlp(H, params["wm1"], params["bm1"], params["wm2"], params["bm2"])


if __name__ == "__main__":
    key = jax.random.PRNGKey(0)
    k_m, k_h, k_e, k_p = jax.random.split(key, 4)

    N, E = 8, 16
    M = jax.random.normal(k_m, (N, NODE_DIM), jnp.float32)
    H = jax.random.normal(k_h, (E, EDGE_DIM), jnp.float32)
    edge_index = jax.random.randint(k_e, (2, E), 0, N, jnp.int32)
    params = make_params(k_p)

    out = jax.block_until_ready(mpn_forward(M, H, edge_index, params))
    ref = jax.block_until_ready(mpn_reference(M, H, edge_index, params))

    assert out.shape == (E, OUT_DIM)
    assert bool(jnp.all(jnp.isfinite(out)))
    # At this size the kernel runs f32 end-to-end (bf16 one-hots are gated off); only
    # exact weight-folding reassociations differ from the reference.
    np.testing.assert_allclose(np.asarray(out), np.asarray(ref), rtol=5e-3, atol=1e-3)

    print("KERNEL_OK")
</pallas_src>

<mosaic_0001>
module attributes {stable_mosaic.version = 11 : i64} {
  func.func @mpn_kernel(%arg0: memref<8x3xf32, #tpu.memory_space<vmem>>, %arg1: memref<16x3xf32, #tpu.memory_space<vmem>>, %arg2: memref<32x1xi32, #tpu.memory_space<vmem>>, %arg3: memref<2x16xi32, #tpu.memory_space<vmem>>, %arg4: memref<264x128xf32, #tpu.memory_space<vmem>>, %arg5: memref<16x128xf32, #tpu.memory_space<vmem>>) attributes {dimension_semantics = [], scalar_prefetch = 0 : i64, scratch_operands = 0 : i64, tpu.core_type = #tpu.core_type<tc>} {
    %c0 = arith.constant 0 : index
    %c0_0 = arith.constant 0 : index
    %0 = vector.load %arg4[%c0, %c0_0] : memref<264x128xf32, #tpu.memory_space<vmem>>, vector<264x128xf32>
    %c0_1 = arith.constant 0 : index
    %c0_2 = arith.constant 0 : index
    %1 = vector.load %arg2[%c0_1, %c0_2] : memref<32x1xi32, #tpu.memory_space<vmem>>, vector<32x1xi32>
    %c0_3 = arith.constant 0 : index
    %c0_4 = arith.constant 0 : index
    %2 = vector.load %arg3[%c0_3, %c0_4] : memref<2x16xi32, #tpu.memory_space<vmem>>, vector<2x16xi32>
    %3 = tpu.iota {dimensions = array<i32: 1>} : vector<32x8xi32>
    %4 = vector.broadcast %1 : vector<32x1xi32> to vector<32x8xi32>
    %5 = arith.cmpi eq, %3, %4 : vector<32x8xi32>
    %6 = arith.extui %5 : vector<32x8xi1> to vector<32x8xi32>
    %7 = arith.sitofp %6 : vector<32x8xi32> to vector<32x8xf32>
    %8 = vector.extract_strided_slice %7 {offsets = [0, 0], sizes = [16, 8], strides = [1, 1]} : vector<32x8xf32> to vector<16x8xf32>
    %9 = vector.extract_strided_slice %7 {offsets = [16, 0], sizes = [16, 8], strides = [1, 1]} : vector<32x8xf32> to vector<16x8xf32>
    %10 = tpu.iota {dimensions = array<i32: 0>} : vector<8x16xi32>
    %11 = vector.extract_strided_slice %2 {offsets = [0, 0], sizes = [1, 16], strides = [1, 1]} : vector<2x16xi32> to vector<1x16xi32>
    %12 = vector.broadcast %11 : vector<1x16xi32> to vector<8x16xi32>
    %13 = arith.cmpi eq, %10, %12 : vector<8x16xi32>
    %14 = vector.extract_strided_slice %2 {offsets = [1, 0], sizes = [1, 16], strides = [1, 1]} : vector<2x16xi32> to vector<1x16xi32>
    %15 = vector.broadcast %14 : vector<1x16xi32> to vector<8x16xi32>
    %16 = arith.cmpi eq, %10, %15 : vector<8x16xi32>
    %17 = arith.extui %13 : vector<8x16xi1> to vector<8x16xi32>
    %18 = arith.sitofp %17 : vector<8x16xi32> to vector<8x16xf32>
    %cst = arith.constant dense<0.000000e+00> : vector<8xf32>
    %19 = vector.multi_reduction <add>, %18, %cst [1] : vector<8x16xf32> to vector<8xf32>
    %20 = vector.shape_cast %19 : vector<8xf32> to vector<8x1xf32>
    %cst_5 = arith.constant 1.000000e+00 : f32
    %21 = vector.broadcast %cst_5 : f32 to vector<8x1xf32>
    %22 = arith.maximumf %20, %21 : vector<8x1xf32>
    %cst_6 = arith.constant 1.000000e+00 : f32
    %23 = vector.broadcast %cst_6 : f32 to vector<8x1xf32>
    %24 = arith.divf %23, %22 : vector<8x1xf32>
    %25 = arith.extui %16 : vector<8x16xi1> to vector<8x16xi32>
    %26 = arith.sitofp %25 : vector<8x16xi32> to vector<8x16xf32>
    %cst_7 = arith.constant dense<0.000000e+00> : vector<8xf32>
    %27 = vector.multi_reduction <add>, %26, %cst_7 [1] : vector<8x16xf32> to vector<8xf32>
    %28 = vector.shape_cast %27 : vector<8xf32> to vector<8x1xf32>
    %cst_8 = arith.constant 1.000000e+00 : f32
    %29 = vector.broadcast %cst_8 : f32 to vector<8x1xf32>
    %30 = arith.maximumf %28, %29 : vector<8x1xf32>
    %cst_9 = arith.constant 1.000000e+00 : f32
    %31 = vector.broadcast %cst_9 : f32 to vector<8x1xf32>
    %32 = arith.divf %31, %30 : vector<8x1xf32>
    %33 = arith.extui %13 : vector<8x16xi1> to vector<8x16xi32>
    %34 = arith.sitofp %33 : vector<8x16xi32> to vector<8x16xf32>
    %35 = vector.broadcast %24 : vector<8x1xf32> to vector<8x16xf32>
    %36 = arith.mulf %34, %35 : vector<8x16xf32>
    %37 = arith.extui %16 : vector<8x16xi1> to vector<8x16xi32>
    %38 = arith.sitofp %37 : vector<8x16xi32> to vector<8x16xf32>
    %39 = vector.broadcast %32 : vector<8x1xf32> to vector<8x16xf32>
    %40 = arith.mulf %38, %39 : vector<8x16xf32>
    %c0_10 = arith.constant 0 : index
    %c0_11 = arith.constant 0 : index
    %41 = vector.load %arg0[%c0_10, %c0_11] : memref<8x3xf32, #tpu.memory_space<vmem>>, vector<8x3xf32>
    %c0_12 = arith.constant 0 : index
    %c0_13 = arith.constant 0 : index
    %42 = vector.load %arg1[%c0_12, %c0_13] : memref<16x3xf32, #tpu.memory_space<vmem>>, vector<16x3xf32>
    %43 = vector.extract_strided_slice %0 {offsets = [0, 0], sizes = [3, 60], strides = [1, 1]} : vector<264x128xf32> to vector<3x60xf32>
    %cst_14 = arith.constant dense<0.000000e+00> : vector<8x60xf32>
    %44 = tpu.matmul %41, %43, %cst_14 {dimension_numbers = #tpu.dot_dimension_numbers<[1], [0], [0], [1], [0, 0, 1, 1], [], []>} : vector<8x3xf32>, vector<3x60xf32>, vector<8x60xf32> -> vector<8x60xf32>
    %cst_15 = arith.constant dense<0.000000e+00> : vector<16x60xf32>
    %45 = tpu.matmul %8, %44, %cst_15 {dimension_numbers = #tpu.dot_dimension_numbers<[1], [0], [0], [1], [0, 0, 1, 1], [], []>} : vector<16x8xf32>, vector<8x60xf32>, vector<16x60xf32> -> vector<16x60xf32>
    %46 = vector.extract_strided_slice %0 {offsets = [8, 0], sizes = [3, 60], strides = [1, 1]} : vector<264x128xf32> to vector<3x60xf32>
    %cst_16 = arith.constant dense<0.000000e+00> : vector<8x60xf32>
    %47 = tpu.matmul %41, %46, %cst_16 {dimension_numbers = #tpu.dot_dimension_numbers<[1], [0], [0], [1], [0, 0, 1, 1], [], []>} : vector<8x3xf32>, vector<3x60xf32>, vector<8x60xf32> -> vector<8x60xf32>
    %cst_17 = arith.constant dense<0.000000e+00> : vector<16x60xf32>
    %48 = tpu.matmul %9, %47, %cst_17 {dimension_numbers = #tpu.dot_dimension_numbers<[1], [0], [0], [1], [0, 0, 1, 1], [], []>} : vector<16x8xf32>, vector<8x60xf32>, vector<16x60xf32> -> vector<16x60xf32>
    %49 = arith.addf %45, %48 : vector<16x60xf32>
    %50 = vector.extract_strided_slice %0 {offsets = [32, 0], sizes = [3, 40], strides = [1, 1]} : vector<264x128xf32> to vector<3x40xf32>
    %cst_18 = arith.constant dense<0.000000e+00> : vector<8x40xf32>
    %51 = tpu.matmul %41, %50, %cst_18 {dimension_numbers = #tpu.dot_dimension_numbers<[1], [0], [0], [1], [0, 0, 1, 1], [], []>} : vector<8x3xf32>, vector<3x40xf32>, vector<8x40xf32> -> vector<8x40xf32>
    %cst_19 = arith.constant dense<0.000000e+00> : vector<16x40xf32>
    %52 = tpu.matmul %8, %51, %cst_19 {dimension_numbers = #tpu.dot_dimension_numbers<[1], [0], [0], [1], [0, 0, 1, 1], [], []>} : vector<16x8xf32>, vector<8x40xf32>, vector<16x40xf32> -> vector<16x40xf32>
    %53 = vector.extract_strided_slice %0 {offsets = [40, 0], sizes = [3, 40], strides = [1, 1]} : vector<264x128xf32> to vector<3x40xf32>
    %cst_20 = arith.constant dense<0.000000e+00> : vector<8x40xf32>
    %54 = tpu.matmul %41, %53, %cst_20 {dimension_numbers = #tpu.dot_dimension_numbers<[1], [0], [0], [1], [0, 0, 1, 1], [], []>} : vector<8x3xf32>, vector<3x40xf32>, vector<8x40xf32> -> vector<8x40xf32>
    %cst_21 = arith.constant dense<0.000000e+00> : vector<16x40xf32>
    %55 = tpu.matmul %9, %54, %cst_21 {dimension_numbers = #tpu.dot_dimension_numbers<[1], [0], [0], [1], [0, 0, 1, 1], [], []>} : vector<16x8xf32>, vector<8x40xf32>, vector<16x40xf32> -> vector<16x40xf32>
    %56 = arith.addf %52, %55 : vector<16x40xf32>
    %57 = vector.extract_strided_slice %0 {offsets = [48, 0], sizes = [1, 40], strides = [1, 1]} : vector<264x128xf32> to vector<1x40xf32>
    %58 = vector.shape_cast %57 : vector<1x40xf32> to vector<1x40xf32>
    %59 = vector.broadcast %58 : vector<1x40xf32> to vector<16x40xf32>
    %60 = arith.addf %56, %59 : vector<16x40xf32>
    %61 = vector.extract_strided_slice %0 {offsets = [16, 0], sizes = [3, 20], strides = [1, 1]} : vector<264x128xf32> to vector<3x20xf32>
    %cst_22 = arith.constant dense<0.000000e+00> : vector<16x20xf32>
    %62 = tpu.matmul %42, %61, %cst_22 {dimension_numbers = #tpu.dot_dimension_numbers<[1], [0], [0], [1], [0, 0, 1, 1], [], []>} : vector<16x3xf32>, vector<3x20xf32>, vector<16x20xf32> -> vector<16x20xf32>
    %63 = vector.extract_strided_slice %0 {offsets = [24, 0], sizes = [1, 20], strides = [1, 1]} : vector<264x128xf32> to vector<1x20xf32>
    %64 = vector.shape_cast %63 : vector<1x20xf32> to vector<1x20xf32>
    %65 = vector.broadcast %64 : vector<1x20xf32> to vector<16x20xf32>
    %66 = arith.addf %62, %65 : vector<16x20xf32>
    %67 = vector.extract_strided_slice %0 {offsets = [80, 0], sizes = [1, 60], strides = [1, 1]} : vector<264x128xf32> to vector<1x60xf32>
    %68 = vector.shape_cast %67 : vector<1x60xf32> to vector<1x60xf32>
    %69 = vector.broadcast %68 : vector<1x60xf32> to vector<16x60xf32>
    %70 = vector.extract_strided_slice %0 {offsets = [128, 0], sizes = [1, 40], strides = [1, 1]} : vector<264x128xf32> to vector<1x40xf32>
    %71 = vector.shape_cast %70 : vector<1x40xf32> to vector<1x40xf32>
    %72 = vector.broadcast %71 : vector<1x40xf32> to vector<16x40xf32>
    %73 = vector.extract_strided_slice %0 {offsets = [136, 0], sizes = [1, 20], strides = [1, 1]} : vector<264x128xf32> to vector<1x20xf32>
    %74 = vector.shape_cast %73 : vector<1x20xf32> to vector<1x20xf32>
    %75 = vector.broadcast %74 : vector<1x20xf32> to vector<8x20xf32>
    %76 = vector.extract_strided_slice %0 {offsets = [192, 0], sizes = [1, 60], strides = [1, 1]} : vector<264x128xf32> to vector<1x60xf32>
    %77 = vector.shape_cast %76 : vector<1x60xf32> to vector<1x60xf32>
    %78 = vector.broadcast %77 : vector<1x60xf32> to vector<16x60xf32>
    %79 = vector.extract_strided_slice %0 {offsets = [56, 0], sizes = [20, 60], strides = [1, 1]} : vector<264x128xf32> to vector<20x60xf32>
    %80 = vector.extract_strided_slice %0 {offsets = [88, 0], sizes = [40, 40], strides = [1, 1]} : vector<264x128xf32> to vector<40x40xf32>
    %81 = vector.extract_strided_slice %0 {offsets = [144, 0], sizes = [20, 60], strides = [1, 1]} : vector<264x128xf32> to vector<20x60xf32>
    %82 = vector.extract_strided_slice %0 {offsets = [168, 0], sizes = [20, 60], strides = [1, 1]} : vector<264x128xf32> to vector<20x60xf32>
    %cst_23 = arith.constant 0.000000e+00 : f32
    %83 = vector.broadcast %cst_23 : f32 to vector<16x20xf32>
    %c0_i32 = arith.constant 0 : i32
    %84 = vector.extract_strided_slice %49 {offsets = [0, 0], sizes = [16, 20], strides = [1, 1]} : vector<16x60xf32> to vector<16x20xf32>
    %85 = arith.addf %84, %66 : vector<16x20xf32>
    %cst_24 = arith.constant 0.000000e+00 : f32
    %86 = vector.broadcast %cst_24 : f32 to vector<16x20xf32>
    %87 = arith.maximumf %85, %86 : vector<16x20xf32>
    %cst_25 = arith.constant dense<0.000000e+00> : vector<16x60xf32>
    %88 = tpu.matmul %87, %79, %cst_25 {dimension_numbers = #tpu.dot_dimension_numbers<[1], [0], [0], [1], [0, 0, 1, 1], [], []>} : vector<16x20xf32>, vector<20x60xf32>, vector<16x60xf32> -> vector<16x60xf32>
    %89 = arith.addf %88, %69 : vector<16x60xf32>
    %90 = vector.extract_strided_slice %49 {offsets = [0, 20], sizes = [16, 40], strides = [1, 1]} : vector<16x60xf32> to vector<16x40xf32>
    %91 = vector.extract_strided_slice %89 {offsets = [0, 0], sizes = [16, 40], strides = [1, 1]} : vector<16x60xf32> to vector<16x40xf32>
    %92 = arith.addf %90, %91 : vector<16x40xf32>
    %93 = arith.addf %92, %60 : vector<16x40xf32>
    %cst_26 = arith.constant 0.000000e+00 : f32
    %94 = vector.broadcast %cst_26 : f32 to vector<16x40xf32>
    %95 = arith.maximumf %93, %94 : vector<16x40xf32>
    %cst_27 = arith.constant dense<0.000000e+00> : vector<16x40xf32>
    %96 = tpu.matmul %95, %80, %cst_27 {dimension_numbers = #tpu.dot_dimension_numbers<[1], [0], [0], [1], [0, 0, 1, 1], [], []>} : vector<16x40xf32>, vector<40x40xf32>, vector<16x40xf32> -> vector<16x40xf32>
    %97 = arith.addf %96, %72 : vector<16x40xf32>
    %98 = vector.extract_strided_slice %97 {offsets = [0, 0], sizes = [16, 20], strides = [1, 1]} : vector<16x40xf32> to vector<16x20xf32>
    %cst_28 = arith.constant dense<0.000000e+00> : vector<8x20xf32>
    %99 = tpu.matmul %40, %98, %cst_28 {dimension_numbers = #tpu.dot_dimension_numbers<[1], [0], [0], [1], [0, 0, 1, 1], [], []>} : vector<8x16xf32>, vector<16x20xf32>, vector<8x20xf32> -> vector<8x20xf32>
    %100 = vector.extract_strided_slice %97 {offsets = [0, 20], sizes = [16, 20], strides = [1, 1]} : vector<16x40xf32> to vector<16x20xf32>
    %cst_29 = arith.constant dense<0.000000e+00> : vector<8x20xf32>
    %101 = tpu.matmul %36, %100, %cst_29 {dimension_numbers = #tpu.dot_dimension_numbers<[1], [0], [0], [1], [0, 0, 1, 1], [], []>} : vector<8x16xf32>, vector<16x20xf32>, vector<8x20xf32> -> vector<8x20xf32>
    %102 = arith.addf %99, %101 : vector<8x20xf32>
    %103 = arith.addf %102, %75 : vector<8x20xf32>
    %cst_30 = arith.constant 0.000000e+00 : f32
    %104 = vector.broadcast %cst_30 : f32 to vector<8x20xf32>
    %105 = arith.maximumf %103, %104 : vector<8x20xf32>
    %cst_31 = arith.constant dense<0.000000e+00> : vector<32x20xf32>
    %106 = tpu.matmul %7, %105, %cst_31 {dimension_numbers = #tpu.dot_dimension_numbers<[1], [0], [0], [1], [0, 0, 1, 1], [], []>} : vector<32x8xf32>, vector<8x20xf32>, vector<32x20xf32> -> vector<32x20xf32>
    %107 = vector.extract_strided_slice %106 {offsets = [0, 0], sizes = [16, 20], strides = [1, 1]} : vector<32x20xf32> to vector<16x20xf32>
    %cst_32 = arith.constant dense<0.000000e+00> : vector<16x60xf32>
    %108 = tpu.matmul %107, %81, %cst_32 {dimension_numbers = #tpu.dot_dimension_numbers<[1], [0], [0], [1], [0, 0, 1, 1], [], []>} : vector<16x20xf32>, vector<20x60xf32>, vector<16x60xf32> -> vector<16x60xf32>
    %109 = vector.extract_strided_slice %106 {offsets = [16, 0], sizes = [16, 20], strides = [1, 1]} : vector<32x20xf32> to vector<16x20xf32>
    %cst_33 = arith.constant dense<0.000000e+00> : vector<16x60xf32>
    %110 = tpu.matmul %109, %82, %cst_33 {dimension_numbers = #tpu.dot_dimension_numbers<[1], [0], [0], [1], [0, 0, 1, 1], [], []>} : vector<16x20xf32>, vector<20x60xf32>, vector<16x60xf32> -> vector<16x60xf32>
    %111 = arith.addf %108, %110 : vector<16x60xf32>
    %112 = arith.addf %111, %78 : vector<16x60xf32>
    %113 = vector.extract_strided_slice %89 {offsets = [0, 40], sizes = [16, 20], strides = [1, 1]} : vector<16x60xf32> to vector<16x20xf32>
    %c1_i32 = arith.constant 1 : i32
    %114 = vector.extract_strided_slice %112 {offsets = [0, 0], sizes = [16, 20], strides = [1, 1]} : vector<16x60xf32> to vector<16x20xf32>
    %115 = arith.addf %114, %113 : vector<16x20xf32>
    %cst_34 = arith.constant 0.000000e+00 : f32
    %116 = vector.broadcast %cst_34 : f32 to vector<16x20xf32>
    %117 = arith.maximumf %115, %116 : vector<16x20xf32>
    %cst_35 = arith.constant dense<0.000000e+00> : vector<16x60xf32>
    %118 = tpu.matmul %117, %79, %cst_35 {dimension_numbers = #tpu.dot_dimension_numbers<[1], [0], [0], [1], [0, 0, 1, 1], [], []>} : vector<16x20xf32>, vector<20x60xf32>, vector<16x60xf32> -> vector<16x60xf32>
    %119 = arith.addf %118, %69 : vector<16x60xf32>
    %120 = vector.extract_strided_slice %112 {offsets = [0, 20], sizes = [16, 40], strides = [1, 1]} : vector<16x60xf32> to vector<16x40xf32>
    %121 = vector.extract_strided_slice %119 {offsets = [0, 0], sizes = [16, 40], strides = [1, 1]} : vector<16x60xf32> to vector<16x40xf32>
    %122 = arith.addf %120, %121 : vector<16x40xf32>
    %123 = arith.addf %122, %60 : vector<16x40xf32>
    %cst_36 = arith.constant 0.000000e+00 : f32
    %124 = vector.broadcast %cst_36 : f32 to vector<16x40xf32>
    %125 = arith.maximumf %123, %124 : vector<16x40xf32>
    %cst_37 = arith.constant dense<0.000000e+00> : vector<16x40xf32>
    %126 = tpu.matmul %125, %80, %cst_37 {dimension_numbers = #tpu.dot_dimension_numbers<[1], [0], [0], [1], [0, 0, 1, 1], [], []>} : vector<16x40xf32>, vector<40x40xf32>, vector<16x40xf32> -> vector<16x40xf32>
    %127 = arith.addf %126, %72 : vector<16x40xf32>
    %128 = vector.extract_strided_slice %127 {offsets = [0, 0], sizes = [16, 20], strides = [1, 1]} : vector<16x40xf32> to vector<16x20xf32>
    %cst_38 = arith.constant dense<0.000000e+00> : vector<8x20xf32>
    %129 = tpu.matmul %40, %128, %cst_38 {dimension_numbers = #tpu.dot_dimension_numbers<[1], [0], [0], [1], [0, 0, 1, 1], [], []>} : vector<8x16xf32>, vector<16x20xf32>, vector<8x20xf32> -> vector<8x20xf32>
    %130 = vector.extract_strided_slice %127 {offsets = [0, 20], sizes = [16, 20], strides = [1, 1]} : vector<16x40xf32> to vector<16x20xf32>
    %cst_39 = arith.constant dense<0.000000e+00> : vector<8x20xf32>
    %131 = tpu.matmul %36, %130, %cst_39 {dimension_numbers = #tpu.dot_dimension_numbers<[1], [0], [0], [1], [0, 0, 1, 1], [], []>} : vector<8x16xf32>, vector<16x20xf32>, vector<8x20xf32> -> vector<8x20xf32>
    %132 = arith.addf %129, %131 : vector<8x20xf32>
    %133 = arith.addf %132, %75 : vector<8x20xf32>
    %cst_40 = arith.constant 0.000000e+00 : f32
    %134 = vector.broadcast %cst_40 : f32 to vector<8x20xf32>
    %135 = arith.maximumf %133, %134 : vector<8x20xf32>
    %cst_41 = arith.constant dense<0.000000e+00> : vector<32x20xf32>
    %136 = tpu.matmul %7, %135, %cst_41 {dimension_numbers = #tpu.dot_dimension_numbers<[1], [0], [0], [1], [0, 0, 1, 1], [], []>} : vector<32x8xf32>, vector<8x20xf32>, vector<32x20xf32> -> vector<32x20xf32>
    %137 = vector.extract_strided_slice %136 {offsets = [0, 0], sizes = [16, 20], strides = [1, 1]} : vector<32x20xf32> to vector<16x20xf32>
    %cst_42 = arith.constant dense<0.000000e+00> : vector<16x60xf32>
    %138 = tpu.matmul %137, %81, %cst_42 {dimension_numbers = #tpu.dot_dimension_numbers<[1], [0], [0], [1], [0, 0, 1, 1], [], []>} : vector<16x20xf32>, vector<20x60xf32>, vector<16x60xf32> -> vector<16x60xf32>
    %139 = vector.extract_strided_slice %136 {offsets = [16, 0], sizes = [16, 20], strides = [1, 1]} : vector<32x20xf32> to vector<16x20xf32>
    %cst_43 = arith.constant dense<0.000000e+00> : vector<16x60xf32>
    %140 = tpu.matmul %139, %82, %cst_43 {dimension_numbers = #tpu.dot_dimension_numbers<[1], [0], [0], [1], [0, 0, 1, 1], [], []>} : vector<16x20xf32>, vector<20x60xf32>, vector<16x60xf32> -> vector<16x60xf32>
    %141 = arith.addf %138, %140 : vector<16x60xf32>
    %142 = arith.addf %141, %78 : vector<16x60xf32>
    %143 = vector.extract_strided_slice %119 {offsets = [0, 40], sizes = [16, 20], strides = [1, 1]} : vector<16x60xf32> to vector<16x20xf32>
    %c2_i32 = arith.constant 2 : i32
    %144 = vector.extract_strided_slice %142 {offsets = [0, 0], sizes = [16, 20], strides = [1, 1]} : vector<16x60xf32> to vector<16x20xf32>
    %145 = arith.addf %144, %143 : vector<16x20xf32>
    %cst_44 = arith.constant 0.000000e+00 : f32
    %146 = vector.broadcast %cst_44 : f32 to vector<16x20xf32>
    %147 = arith.maximumf %145, %146 : vector<16x20xf32>
    %cst_45 = arith.constant dense<0.000000e+00> : vector<16x60xf32>
    %148 = tpu.matmul %147, %79, %cst_45 {dimension_numbers = #tpu.dot_dimension_numbers<[1], [0], [0], [1], [0, 0, 1, 1], [], []>} : vector<16x20xf32>, vector<20x60xf32>, vector<16x60xf32> -> vector<16x60xf32>
    %149 = arith.addf %148, %69 : vector<16x60xf32>
    %150 = vector.extract_strided_slice %142 {offsets = [0, 20], sizes = [16, 40], strides = [1, 1]} : vector<16x60xf32> to vector<16x40xf32>
    %151 = vector.extract_strided_slice %149 {offsets = [0, 0], sizes = [16, 40], strides = [1, 1]} : vector<16x60xf32> to vector<16x40xf32>
    %152 = arith.addf %150, %151 : vector<16x40xf32>
    %153 = arith.addf %152, %60 : vector<16x40xf32>
    %cst_46 = arith.constant 0.000000e+00 : f32
    %154 = vector.broadcast %cst_46 : f32 to vector<16x40xf32>
    %155 = arith.maximumf %153, %154 : vector<16x40xf32>
    %cst_47 = arith.constant dense<0.000000e+00> : vector<16x40xf32>
    %156 = tpu.matmul %155, %80, %cst_47 {dimension_numbers = #tpu.dot_dimension_numbers<[1], [0], [0], [1], [0, 0, 1, 1], [], []>} : vector<16x40xf32>, vector<40x40xf32>, vector<16x40xf32> -> vector<16x40xf32>
    %157 = arith.addf %156, %72 : vector<16x40xf32>
    %158 = vector.extract_strided_slice %157 {offsets = [0, 0], sizes = [16, 20], strides = [1, 1]} : vector<16x40xf32> to vector<16x20xf32>
    %cst_48 = arith.constant dense<0.000000e+00> : vector<8x20xf32>
    %159 = tpu.matmul %40, %158, %cst_48 {dimension_numbers = #tpu.dot_dimension_numbers<[1], [0], [0], [1], [0, 0, 1, 1], [], []>} : vector<8x16xf32>, vector<16x20xf32>, vector<8x20xf32> -> vector<8x20xf32>
    %160 = vector.extract_strided_slice %157 {offsets = [0, 20], sizes = [16, 20], strides = [1, 1]} : vector<16x40xf32> to vector<16x20xf32>
    %cst_49 = arith.constant dense<0.000000e+00> : vector<8x20xf32>
    %161 = tpu.matmul %36, %160, %cst_49 {dimension_numbers = #tpu.dot_dimension_numbers<[1], [0], [0], [1], [0, 0, 1, 1], [], []>} : vector<8x16xf32>, vector<16x20xf32>, vector<8x20xf32> -> vector<8x20xf32>
    %162 = arith.addf %159, %161 : vector<8x20xf32>
    %163 = arith.addf %162, %75 : vector<8x20xf32>
    %cst_50 = arith.constant 0.000000e+00 : f32
    %164 = vector.broadcast %cst_50 : f32 to vector<8x20xf32>
    %165 = arith.maximumf %163, %164 : vector<8x20xf32>
    %cst_51 = arith.constant dense<0.000000e+00> : vector<32x20xf32>
    %166 = tpu.matmul %7, %165, %cst_51 {dimension_numbers = #tpu.dot_dimension_numbers<[1], [0], [0], [1], [0, 0, 1, 1], [], []>} : vector<32x8xf32>, vector<8x20xf32>, vector<32x20xf32> -> vector<32x20xf32>
    %167 = vector.extract_strided_slice %166 {offsets = [0, 0], sizes = [16, 20], strides = [1, 1]} : vector<32x20xf32> to vector<16x20xf32>
    %cst_52 = arith.constant dense<0.000000e+00> : vector<16x60xf32>
    %168 = tpu.matmul %167, %81, %cst_52 {dimension_numbers = #tpu.dot_dimension_numbers<[1], [0], [0], [1], [0, 0, 1, 1], [], []>} : vector<16x20xf32>, vector<20x60xf32>, vector<16x60xf32> -> vector<16x60xf32>
    %169 = vector.extract_strided_slice %166 {offsets = [16, 0], sizes = [16, 20], strides = [1, 1]} : vector<32x20xf32> to vector<16x20xf32>
    %cst_53 = arith.constant dense<0.000000e+00> : vector<16x60xf32>
    %170 = tpu.matmul %169, %82, %cst_53 {dimension_numbers = #tpu.dot_dimension_numbers<[1], [0], [0], [1], [0, 0, 1, 1], [], []>} : vector<16x20xf32>, vector<20x60xf32>, vector<16x60xf32> -> vector<16x60xf32>
    %171 = arith.addf %168, %170 : vector<16x60xf32>
    %172 = arith.addf %171, %78 : vector<16x60xf32>
    %173 = vector.extract_strided_slice %149 {offsets = [0, 40], sizes = [16, 20], strides = [1, 1]} : vector<16x60xf32> to vector<16x20xf32>
    %c3_i32 = arith.constant 3 : i32
    %174 = vector.extract_strided_slice %172 {offsets = [0, 0], sizes = [16, 20], strides = [1, 1]} : vector<16x60xf32> to vector<16x20xf32>
    %175 = arith.addf %174, %173 : vector<16x20xf32>
    %cst_54 = arith.constant 0.000000e+00 : f32
    %176 = vector.broadcast %cst_54 : f32 to vector<16x20xf32>
    %177 = arith.maximumf %175, %176 : vector<16x20xf32>
    %cst_55 = arith.constant dense<0.000000e+00> : vector<16x60xf32>
    %178 = tpu.matmul %177, %79, %cst_55 {dimension_numbers = #tpu.dot_dimension_numbers<[1], [0], [0], [1], [0, 0, 1, 1], [], []>} : vector<16x20xf32>, vector<20x60xf32>, vector<16x60xf32> -> vector<16x60xf32>
    %179 = arith.addf %178, %69 : vector<16x60xf32>
    %180 = vector.extract_strided_slice %172 {offsets = [0, 20], sizes = [16, 40], strides = [1, 1]} : vector<16x60xf32> to vector<16x40xf32>
    %181 = vector.extract_strided_slice %179 {offsets = [0, 0], sizes = [16, 40], strides = [1, 1]} : vector<16x60xf32> to vector<16x40xf32>
    %182 = arith.addf %180, %181 : vector<16x40xf32>
    %183 = arith.addf %182, %60 : vector<16x40xf32>
    %cst_56 = arith.constant 0.000000e+00 : f32
    %184 = vector.broadcast %cst_56 : f32 to vector<16x40xf32>
    %185 = arith.maximumf %183, %184 : vector<16x40xf32>
    %cst_57 = arith.constant dense<0.000000e+00> : vector<16x40xf32>
    %186 = tpu.matmul %185, %80, %cst_57 {dimension_numbers = #tpu.dot_dimension_numbers<[1], [0], [0], [1], [0, 0, 1, 1], [], []>} : vector<16x40xf32>, vector<40x40xf32>, vector<16x40xf32> -> vector<16x40xf32>
    %187 = arith.addf %186, %72 : vector<16x40xf32>
    %188 = vector.extract_strided_slice %187 {offsets = [0, 0], sizes = [16, 20], strides = [1, 1]} : vector<16x40xf32> to vector<16x20xf32>
    %cst_58 = arith.constant dense<0.000000e+00> : vector<8x20xf32>
    %189 = tpu.matmul %40, %188, %cst_58 {dimension_numbers = #tpu.dot_dimension_numbers<[1], [0], [0], [1], [0, 0, 1, 1], [], []>} : vector<8x16xf32>, vector<16x20xf32>, vector<8x20xf32> -> vector<8x20xf32>
    %190 = vector.extract_strided_slice %187 {offsets = [0, 20], sizes = [16, 20], strides = [1, 1]} : vector<16x40xf32> to vector<16x20xf32>
    %cst_59 = arith.constant dense<0.000000e+00> : vector<8x20xf32>
    %191 = tpu.matmul %36, %190, %cst_59 {dimension_numbers = #tpu.dot_dimension_numbers<[1], [0], [0], [1], [0, 0, 1, 1], [], []>} : vector<8x16xf32>, vector<16x20xf32>, vector<8x20xf32> -> vector<8x20xf32>
    %192 = arith.addf %189, %191 : vector<8x20xf32>
    %193 = arith.addf %192, %75 : vector<8x20xf32>
    %cst_60 = arith.constant 0.000000e+00 : f32
    %194 = vector.broadcast %cst_60 : f32 to vector<8x20xf32>
    %195 = arith.maximumf %193, %194 : vector<8x20xf32>
    %cst_61 = arith.constant dense<0.000000e+00> : vector<32x20xf32>
    %196 = tpu.matmul %7, %195, %cst_61 {dimension_numbers = #tpu.dot_dimension_numbers<[1], [0], [0], [1], [0, 0, 1, 1], [], []>} : vector<32x8xf32>, vector<8x20xf32>, vector<32x20xf32> -> vector<32x20xf32>
    %197 = vector.extract_strided_slice %196 {offsets = [0, 0], sizes = [16, 20], strides = [1, 1]} : vector<32x20xf32> to vector<16x20xf32>
    %cst_62 = arith.constant dense<0.000000e+00> : vector<16x60xf32>
    %198 = tpu.matmul %197, %81, %cst_62 {dimension_numbers = #tpu.dot_dimension_numbers<[1], [0], [0], [1], [0, 0, 1, 1], [], []>} : vector<16x20xf32>, vector<20x60xf32>, vector<16x60xf32> -> vector<16x60xf32>
    %199 = vector.extract_strided_slice %196 {offsets = [16, 0], sizes = [16, 20], strides = [1, 1]} : vector<32x20xf32> to vector<16x20xf32>
    %cst_63 = arith.constant dense<0.000000e+00> : vector<16x60xf32>
    %200 = tpu.matmul %199, %82, %cst_63 {dimension_numbers = #tpu.dot_dimension_numbers<[1], [0], [0], [1], [0, 0, 1, 1], [], []>} : vector<16x20xf32>, vector<20x60xf32>, vector<16x60xf32> -> vector<16x60xf32>
    %201 = arith.addf %198, %200 : vector<16x60xf32>
    %202 = arith.addf %201, %78 : vector<16x60xf32>
    %203 = vector.extract_strided_slice %179 {offsets = [0, 40], sizes = [16, 20], strides = [1, 1]} : vector<16x60xf32> to vector<16x20xf32>
    %c4_i32 = arith.constant 4 : i32
    %204 = vector.extract_strided_slice %202 {offsets = [0, 0], sizes = [16, 20], strides = [1, 1]} : vector<16x60xf32> to vector<16x20xf32>
    %205 = arith.addf %204, %203 : vector<16x20xf32>
    %cst_64 = arith.constant 0.000000e+00 : f32
    %206 = vector.broadcast %cst_64 : f32 to vector<16x20xf32>
    %207 = arith.maximumf %205, %206 : vector<16x20xf32>
    %cst_65 = arith.constant dense<0.000000e+00> : vector<16x60xf32>
    %208 = tpu.matmul %207, %79, %cst_65 {dimension_numbers = #tpu.dot_dimension_numbers<[1], [0], [0], [1], [0, 0, 1, 1], [], []>} : vector<16x20xf32>, vector<20x60xf32>, vector<16x60xf32> -> vector<16x60xf32>
    %209 = arith.addf %208, %69 : vector<16x60xf32>
    %210 = vector.extract_strided_slice %202 {offsets = [0, 20], sizes = [16, 40], strides = [1, 1]} : vector<16x60xf32> to vector<16x40xf32>
    %211 = vector.extract_strided_slice %209 {offsets = [0, 0], sizes = [16, 40], strides = [1, 1]} : vector<16x60xf32> to vector<16x40xf32>
    %212 = arith.addf %210, %211 : vector<16x40xf32>
    %213 = arith.addf %212, %60 : vector<16x40xf32>
    %cst_66 = arith.constant 0.000000e+00 : f32
    %214 = vector.broadcast %cst_66 : f32 to vector<16x40xf32>
    %215 = arith.maximumf %213, %214 : vector<16x40xf32>
    %cst_67 = arith.constant dense<0.000000e+00> : vector<16x40xf32>
    %216 = tpu.matmul %215, %80, %cst_67 {dimension_numbers = #tpu.dot_dimension_numbers<[1], [0], [0], [1], [0, 0, 1, 1], [], []>} : vector<16x40xf32>, vector<40x40xf32>, vector<16x40xf32> -> vector<16x40xf32>
    %217 = arith.addf %216, %72 : vector<16x40xf32>
    %218 = vector.extract_strided_slice %217 {offsets = [0, 0], sizes = [16, 20], strides = [1, 1]} : vector<16x40xf32> to vector<16x20xf32>
    %cst_68 = arith.constant dense<0.000000e+00> : vector<8x20xf32>
    %219 = tpu.matmul %40, %218, %cst_68 {dimension_numbers = #tpu.dot_dimension_numbers<[1], [0], [0], [1], [0, 0, 1, 1], [], []>} : vector<8x16xf32>, vector<16x20xf32>, vector<8x20xf32> -> vector<8x20xf32>
    %220 = vector.extract_strided_slice %217 {offsets = [0, 20], sizes = [16, 20], strides = [1, 1]} : vector<16x40xf32> to vector<16x20xf32>
    %cst_69 = arith.constant dense<0.000000e+00> : vector<8x20xf32>
    %221 = tpu.matmul %36, %220, %cst_69 {dimension_numbers = #tpu.dot_dimension_numbers<[1], [0], [0], [1], [0, 0, 1, 1], [], []>} : vector<8x16xf32>, vector<16x20xf32>, vector<8x20xf32> -> vector<8x20xf32>
    %222 = arith.addf %219, %221 : vector<8x20xf32>
    %223 = arith.addf %222, %75 : vector<8x20xf32>
    %cst_70 = arith.constant 0.000000e+00 : f32
    %224 = vector.broadcast %cst_70 : f32 to vector<8x20xf32>
    %225 = arith.maximumf %223, %224 : vector<8x20xf32>
    %cst_71 = arith.constant dense<0.000000e+00> : vector<32x20xf32>
    %226 = tpu.matmul %7, %225, %cst_71 {dimension_numbers = #tpu.dot_dimension_numbers<[1], [0], [0], [1], [0, 0, 1, 1], [], []>} : vector<32x8xf32>, vector<8x20xf32>, vector<32x20xf32> -> vector<32x20xf32>
    %227 = vector.extract_strided_slice %226 {offsets = [0, 0], sizes = [16, 20], strides = [1, 1]} : vector<32x20xf32> to vector<16x20xf32>
    %cst_72 = arith.constant dense<0.000000e+00> : vector<16x60xf32>
    %228 = tpu.matmul %227, %81, %cst_72 {dimension_numbers = #tpu.dot_dimension_numbers<[1], [0], [0], [1], [0, 0, 1, 1], [], []>} : vector<16x20xf32>, vector<20x60xf32>, vector<16x60xf32> -> vector<16x60xf32>
    %229 = vector.extract_strided_slice %226 {offsets = [16, 0], sizes = [16, 20], strides = [1, 1]} : vector<32x20xf32> to vector<16x20xf32>
    %cst_73 = arith.constant dense<0.000000e+00> : vector<16x60xf32>
    %230 = tpu.matmul %229, %82, %cst_73 {dimension_numbers = #tpu.dot_dimension_numbers<[1], [0], [0], [1], [0, 0, 1, 1], [], []>} : vector<16x20xf32>, vector<20x60xf32>, vector<16x60xf32> -> vector<16x60xf32>
    %231 = arith.addf %228, %230 : vector<16x60xf32>
    %232 = arith.addf %231, %78 : vector<16x60xf32>
    %233 = vector.extract_strided_slice %209 {offsets = [0, 40], sizes = [16, 20], strides = [1, 1]} : vector<16x60xf32> to vector<16x20xf32>
    %c5_i32 = arith.constant 5 : i32
    %234 = vector.extract_strided_slice %232 {offsets = [0, 0], sizes = [16, 20], strides = [1, 1]} : vector<16x60xf32> to vector<16x20xf32>
    %235 = arith.addf %234, %233 : vector<16x20xf32>
    %cst_74 = arith.constant 0.000000e+00 : f32
    %236 = vector.broadcast %cst_74 : f32 to vector<16x20xf32>
    %237 = arith.maximumf %235, %236 : vector<16x20xf32>
    %cst_75 = arith.constant dense<0.000000e+00> : vector<16x60xf32>
    %238 = tpu.matmul %237, %79, %cst_75 {dimension_numbers = #tpu.dot_dimension_numbers<[1], [0], [0], [1], [0, 0, 1, 1], [], []>} : vector<16x20xf32>, vector<20x60xf32>, vector<16x60xf32> -> vector<16x60xf32>
    %239 = arith.addf %238, %69 : vector<16x60xf32>
    %240 = vector.extract_strided_slice %232 {offsets = [0, 20], sizes = [16, 40], strides = [1, 1]} : vector<16x60xf32> to vector<16x40xf32>
    %241 = vector.extract_strided_slice %239 {offsets = [0, 0], sizes = [16, 40], strides = [1, 1]} : vector<16x60xf32> to vector<16x40xf32>
    %242 = arith.addf %240, %241 : vector<16x40xf32>
    %243 = arith.addf %242, %60 : vector<16x40xf32>
    %cst_76 = arith.constant 0.000000e+00 : f32
    %244 = vector.broadcast %cst_76 : f32 to vector<16x40xf32>
    %245 = arith.maximumf %243, %244 : vector<16x40xf32>
    %cst_77 = arith.constant dense<0.000000e+00> : vector<16x40xf32>
    %246 = tpu.matmul %245, %80, %cst_77 {dimension_numbers = #tpu.dot_dimension_numbers<[1], [0], [0], [1], [0, 0, 1, 1], [], []>} : vector<16x40xf32>, vector<40x40xf32>, vector<16x40xf32> -> vector<16x40xf32>
    %247 = arith.addf %246, %72 : vector<16x40xf32>
    %248 = vector.extract_strided_slice %247 {offsets = [0, 0], sizes = [16, 20], strides = [1, 1]} : vector<16x40xf32> to vector<16x20xf32>
    %cst_78 = arith.constant dense<0.000000e+00> : vector<8x20xf32>
    %249 = tpu.matmul %40, %248, %cst_78 {dimension_numbers = #tpu.dot_dimension_numbers<[1], [0], [0], [1], [0, 0, 1, 1], [], []>} : vector<8x16xf32>, vector<16x20xf32>, vector<8x20xf32> -> vector<8x20xf32>
    %250 = vector.extract_strided_slice %247 {offsets = [0, 20], sizes = [16, 20], strides = [1, 1]} : vector<16x40xf32> to vector<16x20xf32>
    %cst_79 = arith.constant dense<0.000000e+00> : vector<8x20xf32>
    %251 = tpu.matmul %36, %250, %cst_79 {dimension_numbers = #tpu.dot_dimension_numbers<[1], [0], [0], [1], [0, 0, 1, 1], [], []>} : vector<8x16xf32>, vector<16x20xf32>, vector<8x20xf32> -> vector<8x20xf32>
    %252 = arith.addf %249, %251 : vector<8x20xf32>
    %253 = arith.addf %252, %75 : vector<8x20xf32>
    %cst_80 = arith.constant 0.000000e+00 : f32
    %254 = vector.broadcast %cst_80 : f32 to vector<8x20xf32>
    %255 = arith.maximumf %253, %254 : vector<8x20xf32>
    %cst_81 = arith.constant dense<0.000000e+00> : vector<32x20xf32>
    %256 = tpu.matmul %7, %255, %cst_81 {dimension_numbers = #tpu.dot_dimension_numbers<[1], [0], [0], [1], [0, 0, 1, 1], [], []>} : vector<32x8xf32>, vector<8x20xf32>, vector<32x20xf32> -> vector<32x20xf32>
    %257 = vector.extract_strided_slice %256 {offsets = [0, 0], sizes = [16, 20], strides = [1, 1]} : vector<32x20xf32> to vector<16x20xf32>
    %cst_82 = arith.constant dense<0.000000e+00> : vector<16x60xf32>
    %258 = tpu.matmul %257, %81, %cst_82 {dimension_numbers = #tpu.dot_dimension_numbers<[1], [0], [0], [1], [0, 0, 1, 1], [], []>} : vector<16x20xf32>, vector<20x60xf32>, vector<16x60xf32> -> vector<16x60xf32>
    %259 = vector.extract_strided_slice %256 {offsets = [16, 0], sizes = [16, 20], strides = [1, 1]} : vector<32x20xf32> to vector<16x20xf32>
    %cst_83 = arith.constant dense<0.000000e+00> : vector<16x60xf32>
    %260 = tpu.matmul %259, %82, %cst_83 {dimension_numbers = #tpu.dot_dimension_numbers<[1], [0], [0], [1], [0, 0, 1, 1], [], []>} : vector<16x20xf32>, vector<20x60xf32>, vector<16x60xf32> -> vector<16x60xf32>
    %261 = arith.addf %258, %260 : vector<16x60xf32>
    %262 = arith.addf %261, %78 : vector<16x60xf32>
    %263 = vector.extract_strided_slice %239 {offsets = [0, 40], sizes = [16, 20], strides = [1, 1]} : vector<16x60xf32> to vector<16x20xf32>
    %c6_i32 = arith.constant 6 : i32
    %264 = vector.extract_strided_slice %262 {offsets = [0, 0], sizes = [16, 20], strides = [1, 1]} : vector<16x60xf32> to vector<16x20xf32>
    %265 = arith.addf %264, %263 : vector<16x20xf32>
    %cst_84 = arith.constant 0.000000e+00 : f32
    %266 = vector.broadcast %cst_84 : f32 to vector<16x20xf32>
    %267 = arith.maximumf %265, %266 : vector<16x20xf32>
    %cst_85 = arith.constant dense<0.000000e+00> : vector<16x60xf32>
    %268 = tpu.matmul %267, %79, %cst_85 {dimension_numbers = #tpu.dot_dimension_numbers<[1], [0], [0], [1], [0, 0, 1, 1], [], []>} : vector<16x20xf32>, vector<20x60xf32>, vector<16x60xf32> -> vector<16x60xf32>
    %269 = arith.addf %268, %69 : vector<16x60xf32>
    %270 = vector.extract_strided_slice %262 {offsets = [0, 20], sizes = [16, 40], strides = [1, 1]} : vector<16x60xf32> to vector<16x40xf32>
    %271 = vector.extract_strided_slice %269 {offsets = [0, 0], sizes = [16, 40], strides = [1, 1]} : vector<16x60xf32> to vector<16x40xf32>
    %272 = arith.addf %270, %271 : vector<16x40xf32>
    %273 = arith.addf %272, %60 : vector<16x40xf32>
    %cst_86 = arith.constant 0.000000e+00 : f32
    %274 = vector.broadcast %cst_86 : f32 to vector<16x40xf32>
    %275 = arith.maximumf %273, %274 : vector<16x40xf32>
    %cst_87 = arith.constant dense<0.000000e+00> : vector<16x40xf32>
    %276 = tpu.matmul %275, %80, %cst_87 {dimension_numbers = #tpu.dot_dimension_numbers<[1], [0], [0], [1], [0, 0, 1, 1], [], []>} : vector<16x40xf32>, vector<40x40xf32>, vector<16x40xf32> -> vector<16x40xf32>
    %277 = arith.addf %276, %72 : vector<16x40xf32>
    %278 = vector.extract_strided_slice %277 {offsets = [0, 0], sizes = [16, 20], strides = [1, 1]} : vector<16x40xf32> to vector<16x20xf32>
    %cst_88 = arith.constant dense<0.000000e+00> : vector<8x20xf32>
    %279 = tpu.matmul %40, %278, %cst_88 {dimension_numbers = #tpu.dot_dimension_numbers<[1], [0], [0], [1], [0, 0, 1, 1], [], []>} : vector<8x16xf32>, vector<16x20xf32>, vector<8x20xf32> -> vector<8x20xf32>
    %280 = vector.extract_strided_slice %277 {offsets = [0, 20], sizes = [16, 20], strides = [1, 1]} : vector<16x40xf32> to vector<16x20xf32>
    %cst_89 = arith.constant dense<0.000000e+00> : vector<8x20xf32>
    %281 = tpu.matmul %36, %280, %cst_89 {dimension_numbers = #tpu.dot_dimension_numbers<[1], [0], [0], [1], [0, 0, 1, 1], [], []>} : vector<8x16xf32>, vector<16x20xf32>, vector<8x20xf32> -> vector<8x20xf32>
    %282 = arith.addf %279, %281 : vector<8x20xf32>
    %283 = arith.addf %282, %75 : vector<8x20xf32>
    %cst_90 = arith.constant 0.000000e+00 : f32
    %284 = vector.broadcast %cst_90 : f32 to vector<8x20xf32>
    %285 = arith.maximumf %283, %284 : vector<8x20xf32>
    %cst_91 = arith.constant dense<0.000000e+00> : vector<32x20xf32>
    %286 = tpu.matmul %7, %285, %cst_91 {dimension_numbers = #tpu.dot_dimension_numbers<[1], [0], [0], [1], [0, 0, 1, 1], [], []>} : vector<32x8xf32>, vector<8x20xf32>, vector<32x20xf32> -> vector<32x20xf32>
    %287 = vector.extract_strided_slice %286 {offsets = [0, 0], sizes = [16, 20], strides = [1, 1]} : vector<32x20xf32> to vector<16x20xf32>
    %cst_92 = arith.constant dense<0.000000e+00> : vector<16x60xf32>
    %288 = tpu.matmul %287, %81, %cst_92 {dimension_numbers = #tpu.dot_dimension_numbers<[1], [0], [0], [1], [0, 0, 1, 1], [], []>} : vector<16x20xf32>, vector<20x60xf32>, vector<16x60xf32> -> vector<16x60xf32>
    %289 = vector.extract_strided_slice %286 {offsets = [16, 0], sizes = [16, 20], strides = [1, 1]} : vector<32x20xf32> to vector<16x20xf32>
    %cst_93 = arith.constant dense<0.000000e+00> : vector<16x60xf32>
    %290 = tpu.matmul %289, %82, %cst_93 {dimension_numbers = #tpu.dot_dimension_numbers<[1], [0], [0], [1], [0, 0, 1, 1], [], []>} : vector<16x20xf32>, vector<20x60xf32>, vector<16x60xf32> -> vector<16x60xf32>
    %291 = arith.addf %288, %290 : vector<16x60xf32>
    %292 = arith.addf %291, %78 : vector<16x60xf32>
    %293 = vector.extract_strided_slice %269 {offsets = [0, 40], sizes = [16, 20], strides = [1, 1]} : vector<16x60xf32> to vector<16x20xf32>
    %c7_i32 = arith.constant 7 : i32
    %294 = vector.extract_strided_slice %292 {offsets = [0, 0], sizes = [16, 20], strides = [1, 1]} : vector<16x60xf32> to vector<16x20xf32>
    %295 = arith.addf %294, %293 : vector<16x20xf32>
    %cst_94 = arith.constant 0.000000e+00 : f32
    %296 = vector.broadcast %cst_94 : f32 to vector<16x20xf32>
    %297 = arith.maximumf %295, %296 : vector<16x20xf32>
    %cst_95 = arith.constant dense<0.000000e+00> : vector<16x60xf32>
    %298 = tpu.matmul %297, %79, %cst_95 {dimension_numbers = #tpu.dot_dimension_numbers<[1], [0], [0], [1], [0, 0, 1, 1], [], []>} : vector<16x20xf32>, vector<20x60xf32>, vector<16x60xf32> -> vector<16x60xf32>
    %299 = arith.addf %298, %69 : vector<16x60xf32>
    %300 = vector.extract_strided_slice %292 {offsets = [0, 20], sizes = [16, 40], strides = [1, 1]} : vector<16x60xf32> to vector<16x40xf32>
    %301 = vector.extract_strided_slice %299 {offsets = [0, 0], sizes = [16, 40], strides = [1, 1]} : vector<16x60xf32> to vector<16x40xf32>
    %302 = arith.addf %300, %301 : vector<16x40xf32>
    %303 = arith.addf %302, %60 : vector<16x40xf32>
    %cst_96 = arith.constant 0.000000e+00 : f32
    %304 = vector.broadcast %cst_96 : f32 to vector<16x40xf32>
    %305 = arith.maximumf %303, %304 : vector<16x40xf32>
    %cst_97 = arith.constant dense<0.000000e+00> : vector<16x40xf32>
    %306 = tpu.matmul %305, %80, %cst_97 {dimension_numbers = #tpu.dot_dimension_numbers<[1], [0], [0], [1], [0, 0, 1, 1], [], []>} : vector<16x40xf32>, vector<40x40xf32>, vector<16x40xf32> -> vector<16x40xf32>
    %307 = arith.addf %306, %72 : vector<16x40xf32>
    %308 = vector.extract_strided_slice %307 {offsets = [0, 0], sizes = [16, 20], strides = [1, 1]} : vector<16x40xf32> to vector<16x20xf32>
    %cst_98 = arith.constant dense<0.000000e+00> : vector<8x20xf32>
    %309 = tpu.matmul %40, %308, %cst_98 {dimension_numbers = #tpu.dot_dimension_numbers<[1], [0], [0], [1], [0, 0, 1, 1], [], []>} : vector<8x16xf32>, vector<16x20xf32>, vector<8x20xf32> -> vector<8x20xf32>
    %310 = vector.extract_strided_slice %307 {offsets = [0, 20], sizes = [16, 20], strides = [1, 1]} : vector<16x40xf32> to vector<16x20xf32>
    %cst_99 = arith.constant dense<0.000000e+00> : vector<8x20xf32>
    %311 = tpu.matmul %36, %310, %cst_99 {dimension_numbers = #tpu.dot_dimension_numbers<[1], [0], [0], [1], [0, 0, 1, 1], [], []>} : vector<8x16xf32>, vector<16x20xf32>, vector<8x20xf32> -> vector<8x20xf32>
    %312 = arith.addf %309, %311 : vector<8x20xf32>
    %313 = arith.addf %312, %75 : vector<8x20xf32>
    %cst_100 = arith.constant 0.000000e+00 : f32
    %314 = vector.broadcast %cst_100 : f32 to vector<8x20xf32>
    %315 = arith.maximumf %313, %314 : vector<8x20xf32>
    %cst_101 = arith.constant dense<0.000000e+00> : vector<32x20xf32>
    %316 = tpu.matmul %7, %315, %cst_101 {dimension_numbers = #tpu.dot_dimension_numbers<[1], [0], [0], [1], [0, 0, 1, 1], [], []>} : vector<32x8xf32>, vector<8x20xf32>, vector<32x20xf32> -> vector<32x20xf32>
    %317 = vector.extract_strided_slice %316 {offsets = [0, 0], sizes = [16, 20], strides = [1, 1]} : vector<32x20xf32> to vector<16x20xf32>
    %cst_102 = arith.constant dense<0.000000e+00> : vector<16x60xf32>
    %318 = tpu.matmul %317, %81, %cst_102 {dimension_numbers = #tpu.dot_dimension_numbers<[1], [0], [0], [1], [0, 0, 1, 1], [], []>} : vector<16x20xf32>, vector<20x60xf32>, vector<16x60xf32> -> vector<16x60xf32>
    %319 = vector.extract_strided_slice %316 {offsets = [16, 0], sizes = [16, 20], strides = [1, 1]} : vector<32x20xf32> to vector<16x20xf32>
    %cst_103 = arith.constant dense<0.000000e+00> : vector<16x60xf32>
    %320 = tpu.matmul %319, %82, %cst_103 {dimension_numbers = #tpu.dot_dimension_numbers<[1], [0], [0], [1], [0, 0, 1, 1], [], []>} : vector<16x20xf32>, vector<20x60xf32>, vector<16x60xf32> -> vector<16x60xf32>
    %321 = arith.addf %318, %320 : vector<16x60xf32>
    %322 = arith.addf %321, %78 : vector<16x60xf32>
    %323 = vector.extract_strided_slice %299 {offsets = [0, 40], sizes = [16, 20], strides = [1, 1]} : vector<16x60xf32> to vector<16x20xf32>
    %c8_i32 = arith.constant 8 : i32
    %324 = vector.extract_strided_slice %322 {offsets = [0, 0], sizes = [16, 20], strides = [1, 1]} : vector<16x60xf32> to vector<16x20xf32>
    %325 = arith.addf %324, %323 : vector<16x20xf32>
    %cst_104 = arith.constant 0.000000e+00 : f32
    %326 = vector.broadcast %cst_104 : f32 to vector<16x20xf32>
    %327 = arith.maximumf %325, %326 : vector<16x20xf32>
    %cst_105 = arith.constant dense<0.000000e+00> : vector<16x60xf32>
    %328 = tpu.matmul %327, %79, %cst_105 {dimension_numbers = #tpu.dot_dimension_numbers<[1], [0], [0], [1], [0, 0, 1, 1], [], []>} : vector<16x20xf32>, vector<20x60xf32>, vector<16x60xf32> -> vector<16x60xf32>
    %329 = arith.addf %328, %69 : vector<16x60xf32>
    %330 = vector.extract_strided_slice %322 {offsets = [0, 20], sizes = [16, 40], strides = [1, 1]} : vector<16x60xf32> to vector<16x40xf32>
    %331 = vector.extract_strided_slice %329 {offsets = [0, 0], sizes = [16, 40], strides = [1, 1]} : vector<16x60xf32> to vector<16x40xf32>
    %332 = arith.addf %330, %331 : vector<16x40xf32>
    %333 = arith.addf %332, %60 : vector<16x40xf32>
    %cst_106 = arith.constant 0.000000e+00 : f32
    %334 = vector.broadcast %cst_106 : f32 to vector<16x40xf32>
    %335 = arith.maximumf %333, %334 : vector<16x40xf32>
    %cst_107 = arith.constant dense<0.000000e+00> : vector<16x40xf32>
    %336 = tpu.matmul %335, %80, %cst_107 {dimension_numbers = #tpu.dot_dimension_numbers<[1], [0], [0], [1], [0, 0, 1, 1], [], []>} : vector<16x40xf32>, vector<40x40xf32>, vector<16x40xf32> -> vector<16x40xf32>
    %337 = arith.addf %336, %72 : vector<16x40xf32>
    %338 = vector.extract_strided_slice %337 {offsets = [0, 0], sizes = [16, 20], strides = [1, 1]} : vector<16x40xf32> to vector<16x20xf32>
    %cst_108 = arith.constant dense<0.000000e+00> : vector<8x20xf32>
    %339 = tpu.matmul %40, %338, %cst_108 {dimension_numbers = #tpu.dot_dimension_numbers<[1], [0], [0], [1], [0, 0, 1, 1], [], []>} : vector<8x16xf32>, vector<16x20xf32>, vector<8x20xf32> -> vector<8x20xf32>
    %340 = vector.extract_strided_slice %337 {offsets = [0, 20], sizes = [16, 20], strides = [1, 1]} : vector<16x40xf32> to vector<16x20xf32>
    %cst_109 = arith.constant dense<0.000000e+00> : vector<8x20xf32>
    %341 = tpu.matmul %36, %340, %cst_109 {dimension_numbers = #tpu.dot_dimension_numbers<[1], [0], [0], [1], [0, 0, 1, 1], [], []>} : vector<8x16xf32>, vector<16x20xf32>, vector<8x20xf32> -> vector<8x20xf32>
    %342 = arith.addf %339, %341 : vector<8x20xf32>
    %343 = arith.addf %342, %75 : vector<8x20xf32>
    %cst_110 = arith.constant 0.000000e+00 : f32
    %344 = vector.broadcast %cst_110 : f32 to vector<8x20xf32>
    %345 = arith.maximumf %343, %344 : vector<8x20xf32>
    %cst_111 = arith.constant dense<0.000000e+00> : vector<32x20xf32>
    %346 = tpu.matmul %7, %345, %cst_111 {dimension_numbers = #tpu.dot_dimension_numbers<[1], [0], [0], [1], [0, 0, 1, 1], [], []>} : vector<32x8xf32>, vector<8x20xf32>, vector<32x20xf32> -> vector<32x20xf32>
    %347 = vector.extract_strided_slice %346 {offsets = [0, 0], sizes = [16, 20], strides = [1, 1]} : vector<32x20xf32> to vector<16x20xf32>
    %cst_112 = arith.constant dense<0.000000e+00> : vector<16x60xf32>
    %348 = tpu.matmul %347, %81, %cst_112 {dimension_numbers = #tpu.dot_dimension_numbers<[1], [0], [0], [1], [0, 0, 1, 1], [], []>} : vector<16x20xf32>, vector<20x60xf32>, vector<16x60xf32> -> vector<16x60xf32>
    %349 = vector.extract_strided_slice %346 {offsets = [16, 0], sizes = [16, 20], strides = [1, 1]} : vector<32x20xf32> to vector<16x20xf32>
    %cst_113 = arith.constant dense<0.000000e+00> : vector<16x60xf32>
    %350 = tpu.matmul %349, %82, %cst_113 {dimension_numbers = #tpu.dot_dimension_numbers<[1], [0], [0], [1], [0, 0, 1, 1], [], []>} : vector<16x20xf32>, vector<20x60xf32>, vector<16x60xf32> -> vector<16x60xf32>
    %351 = arith.addf %348, %350 : vector<16x60xf32>
    %352 = arith.addf %351, %78 : vector<16x60xf32>
    %353 = vector.extract_strided_slice %329 {offsets = [0, 40], sizes = [16, 20], strides = [1, 1]} : vector<16x60xf32> to vector<16x20xf32>
    %c9_i32 = arith.constant 9 : i32
    %354 = vector.extract_strided_slice %352 {offsets = [0, 0], sizes = [16, 20], strides = [1, 1]} : vector<16x60xf32> to vector<16x20xf32>
    %355 = arith.addf %354, %353 : vector<16x20xf32>
    %cst_114 = arith.constant 0.000000e+00 : f32
    %356 = vector.broadcast %cst_114 : f32 to vector<16x20xf32>
    %357 = arith.maximumf %355, %356 : vector<16x20xf32>
    %cst_115 = arith.constant dense<0.000000e+00> : vector<16x60xf32>
    %358 = tpu.matmul %357, %79, %cst_115 {dimension_numbers = #tpu.dot_dimension_numbers<[1], [0], [0], [1], [0, 0, 1, 1], [], []>} : vector<16x20xf32>, vector<20x60xf32>, vector<16x60xf32> -> vector<16x60xf32>
    %359 = arith.addf %358, %69 : vector<16x60xf32>
    %360 = vector.extract_strided_slice %352 {offsets = [0, 20], sizes = [16, 40], strides = [1, 1]} : vector<16x60xf32> to vector<16x40xf32>
    %361 = vector.extract_strided_slice %359 {offsets = [0, 0], sizes = [16, 40], strides = [1, 1]} : vector<16x60xf32> to vector<16x40xf32>
    %362 = arith.addf %360, %361 : vector<16x40xf32>
    %363 = arith.addf %362, %60 : vector<16x40xf32>
    %cst_116 = arith.constant 0.000000e+00 : f32
    %364 = vector.broadcast %cst_116 : f32 to vector<16x40xf32>
    %365 = arith.maximumf %363, %364 : vector<16x40xf32>
    %cst_117 = arith.constant dense<0.000000e+00> : vector<16x40xf32>
    %366 = tpu.matmul %365, %80, %cst_117 {dimension_numbers = #tpu.dot_dimension_numbers<[1], [0], [0], [1], [0, 0, 1, 1], [], []>} : vector<16x40xf32>, vector<40x40xf32>, vector<16x40xf32> -> vector<16x40xf32>
    %367 = arith.addf %366, %72 : vector<16x40xf32>
    %368 = vector.extract_strided_slice %367 {offsets = [0, 0], sizes = [16, 20], strides = [1, 1]} : vector<16x40xf32> to vector<16x20xf32>
    %cst_118 = arith.constant dense<0.000000e+00> : vector<8x20xf32>
    %369 = tpu.matmul %40, %368, %cst_118 {dimension_numbers = #tpu.dot_dimension_numbers<[1], [0], [0], [1], [0, 0, 1, 1], [], []>} : vector<8x16xf32>, vector<16x20xf32>, vector<8x20xf32> -> vector<8x20xf32>
    %370 = vector.extract_strided_slice %367 {offsets = [0, 20], sizes = [16, 20], strides = [1, 1]} : vector<16x40xf32> to vector<16x20xf32>
    %cst_119 = arith.constant dense<0.000000e+00> : vector<8x20xf32>
    %371 = tpu.matmul %36, %370, %cst_119 {dimension_numbers = #tpu.dot_dimension_numbers<[1], [0], [0], [1], [0, 0, 1, 1], [], []>} : vector<8x16xf32>, vector<16x20xf32>, vector<8x20xf32> -> vector<8x20xf32>
    %372 = arith.addf %369, %371 : vector<8x20xf32>
    %373 = arith.addf %372, %75 : vector<8x20xf32>
    %cst_120 = arith.constant 0.000000e+00 : f32
    %374 = vector.broadcast %cst_120 : f32 to vector<8x20xf32>
    %375 = arith.maximumf %373, %374 : vector<8x20xf32>
    %cst_121 = arith.constant dense<0.000000e+00> : vector<32x20xf32>
    %376 = tpu.matmul %7, %375, %cst_121 {dimension_numbers = #tpu.dot_dimension_numbers<[1], [0], [0], [1], [0, 0, 1, 1], [], []>} : vector<32x8xf32>, vector<8x20xf32>, vector<32x20xf32> -> vector<32x20xf32>
    %377 = vector.extract_strided_slice %376 {offsets = [0, 0], sizes = [16, 20], strides = [1, 1]} : vector<32x20xf32> to vector<16x20xf32>
    %cst_122 = arith.constant dense<0.000000e+00> : vector<16x60xf32>
    %378 = tpu.matmul %377, %81, %cst_122 {dimension_numbers = #tpu.dot_dimension_numbers<[1], [0], [0], [1], [0, 0, 1, 1], [], []>} : vector<16x20xf32>, vector<20x60xf32>, vector<16x60xf32> -> vector<16x60xf32>
    %379 = vector.extract_strided_slice %376 {offsets = [16, 0], sizes = [16, 20], strides = [1, 1]} : vector<32x20xf32> to vector<16x20xf32>
    %cst_123 = arith.constant dense<0.000000e+00> : vector<16x60xf32>
    %380 = tpu.matmul %379, %82, %cst_123 {dimension_numbers = #tpu.dot_dimension_numbers<[1], [0], [0], [1], [0, 0, 1, 1], [], []>} : vector<16x20xf32>, vector<20x60xf32>, vector<16x60xf32> -> vector<16x60xf32>
    %381 = arith.addf %378, %380 : vector<16x60xf32>
    %382 = arith.addf %381, %78 : vector<16x60xf32>
    %383 = vector.extract_strided_slice %359 {offsets = [0, 40], sizes = [16, 20], strides = [1, 1]} : vector<16x60xf32> to vector<16x20xf32>
    %c10_i32 = arith.constant 10 : i32
    %384 = vector.extract_strided_slice %382 {offsets = [0, 0], sizes = [16, 20], strides = [1, 1]} : vector<16x60xf32> to vector<16x20xf32>
    %385 = arith.addf %384, %383 : vector<16x20xf32>
    %cst_124 = arith.constant 0.000000e+00 : f32
    %386 = vector.broadcast %cst_124 : f32 to vector<16x20xf32>
    %387 = arith.maximumf %385, %386 : vector<16x20xf32>
    %cst_125 = arith.constant dense<0.000000e+00> : vector<16x60xf32>
    %388 = tpu.matmul %387, %79, %cst_125 {dimension_numbers = #tpu.dot_dimension_numbers<[1], [0], [0], [1], [0, 0, 1, 1], [], []>} : vector<16x20xf32>, vector<20x60xf32>, vector<16x60xf32> -> vector<16x60xf32>
    %389 = arith.addf %388, %69 : vector<16x60xf32>
    %390 = vector.extract_strided_slice %382 {offsets = [0, 20], sizes = [16, 40], strides = [1, 1]} : vector<16x60xf32> to vector<16x40xf32>
    %391 = vector.extract_strided_slice %389 {offsets = [0, 0], sizes = [16, 40], strides = [1, 1]} : vector<16x60xf32> to vector<16x40xf32>
    %392 = arith.addf %390, %391 : vector<16x40xf32>
    %393 = arith.addf %392, %60 : vector<16x40xf32>
    %cst_126 = arith.constant 0.000000e+00 : f32
    %394 = vector.broadcast %cst_126 : f32 to vector<16x40xf32>
    %395 = arith.maximumf %393, %394 : vector<16x40xf32>
    %cst_127 = arith.constant dense<0.000000e+00> : vector<16x40xf32>
    %396 = tpu.matmul %395, %80, %cst_127 {dimension_numbers = #tpu.dot_dimension_numbers<[1], [0], [0], [1], [0, 0, 1, 1], [], []>} : vector<16x40xf32>, vector<40x40xf32>, vector<16x40xf32> -> vector<16x40xf32>
    %397 = arith.addf %396, %72 : vector<16x40xf32>
    %398 = vector.extract_strided_slice %397 {offsets = [0, 0], sizes = [16, 20], strides = [1, 1]} : vector<16x40xf32> to vector<16x20xf32>
    %cst_128 = arith.constant dense<0.000000e+00> : vector<8x20xf32>
    %399 = tpu.matmul %40, %398, %cst_128 {dimension_numbers = #tpu.dot_dimension_numbers<[1], [0], [0], [1], [0, 0, 1, 1], [], []>} : vector<8x16xf32>, vector<16x20xf32>, vector<8x20xf32> -> vector<8x20xf32>
    %400 = vector.extract_strided_slice %397 {offsets = [0, 20], sizes = [16, 20], strides = [1, 1]} : vector<16x40xf32> to vector<16x20xf32>
    %cst_129 = arith.constant dense<0.000000e+00> : vector<8x20xf32>
    %401 = tpu.matmul %36, %400, %cst_129 {dimension_numbers = #tpu.dot_dimension_numbers<[1], [0], [0], [1], [0, 0, 1, 1], [], []>} : vector<8x16xf32>, vector<16x20xf32>, vector<8x20xf32> -> vector<8x20xf32>
    %402 = arith.addf %399, %401 : vector<8x20xf32>
    %403 = arith.addf %402, %75 : vector<8x20xf32>
    %cst_130 = arith.constant 0.000000e+00 : f32
    %404 = vector.broadcast %cst_130 : f32 to vector<8x20xf32>
    %405 = arith.maximumf %403, %404 : vector<8x20xf32>
    %cst_131 = arith.constant dense<0.000000e+00> : vector<32x20xf32>
    %406 = tpu.matmul %7, %405, %cst_131 {dimension_numbers = #tpu.dot_dimension_numbers<[1], [0], [0], [1], [0, 0, 1, 1], [], []>} : vector<32x8xf32>, vector<8x20xf32>, vector<32x20xf32> -> vector<32x20xf32>
    %407 = vector.extract_strided_slice %406 {offsets = [0, 0], sizes = [16, 20], strides = [1, 1]} : vector<32x20xf32> to vector<16x20xf32>
    %cst_132 = arith.constant dense<0.000000e+00> : vector<16x60xf32>
    %408 = tpu.matmul %407, %81, %cst_132 {dimension_numbers = #tpu.dot_dimension_numbers<[1], [0], [0], [1], [0, 0, 1, 1], [], []>} : vector<16x20xf32>, vector<20x60xf32>, vector<16x60xf32> -> vector<16x60xf32>
    %409 = vector.extract_strided_slice %406 {offsets = [16, 0], sizes = [16, 20], strides = [1, 1]} : vector<32x20xf32> to vector<16x20xf32>
    %cst_133 = arith.constant dense<0.000000e+00> : vector<16x60xf32>
    %410 = tpu.matmul %409, %82, %cst_133 {dimension_numbers = #tpu.dot_dimension_numbers<[1], [0], [0], [1], [0, 0, 1, 1], [], []>} : vector<16x20xf32>, vector<20x60xf32>, vector<16x60xf32> -> vector<16x60xf32>
    %411 = arith.addf %408, %410 : vector<16x60xf32>
    %412 = arith.addf %411, %78 : vector<16x60xf32>
    %413 = vector.extract_strided_slice %389 {offsets = [0, 40], sizes = [16, 20], strides = [1, 1]} : vector<16x60xf32> to vector<16x20xf32>
    %c11_i32 = arith.constant 11 : i32
    %414 = vector.extract_strided_slice %412 {offsets = [0, 0], sizes = [16, 20], strides = [1, 1]} : vector<16x60xf32> to vector<16x20xf32>
    %415 = arith.addf %414, %413 : vector<16x20xf32>
    %cst_134 = arith.constant 0.000000e+00 : f32
    %416 = vector.broadcast %cst_134 : f32 to vector<16x20xf32>
    %417 = arith.maximumf %415, %416 : vector<16x20xf32>
    %cst_135 = arith.constant dense<0.000000e+00> : vector<16x60xf32>
    %418 = tpu.matmul %417, %79, %cst_135 {dimension_numbers = #tpu.dot_dimension_numbers<[1], [0], [0], [1], [0, 0, 1, 1], [], []>} : vector<16x20xf32>, vector<20x60xf32>, vector<16x60xf32> -> vector<16x60xf32>
    %419 = arith.addf %418, %69 : vector<16x60xf32>
    %420 = vector.extract_strided_slice %412 {offsets = [0, 20], sizes = [16, 40], strides = [1, 1]} : vector<16x60xf32> to vector<16x40xf32>
    %421 = vector.extract_strided_slice %419 {offsets = [0, 0], sizes = [16, 40], strides = [1, 1]} : vector<16x60xf32> to vector<16x40xf32>
    %422 = arith.addf %420, %421 : vector<16x40xf32>
    %423 = arith.addf %422, %60 : vector<16x40xf32>
    %cst_136 = arith.constant 0.000000e+00 : f32
    %424 = vector.broadcast %cst_136 : f32 to vector<16x40xf32>
    %425 = arith.maximumf %423, %424 : vector<16x40xf32>
    %cst_137 = arith.constant dense<0.000000e+00> : vector<16x40xf32>
    %426 = tpu.matmul %425, %80, %cst_137 {dimension_numbers = #tpu.dot_dimension_numbers<[1], [0], [0], [1], [0, 0, 1, 1], [], []>} : vector<16x40xf32>, vector<40x40xf32>, vector<16x40xf32> -> vector<16x40xf32>
    %427 = arith.addf %426, %72 : vector<16x40xf32>
    %428 = vector.extract_strided_slice %427 {offsets = [0, 0], sizes = [16, 20], strides = [1, 1]} : vector<16x40xf32> to vector<16x20xf32>
    %cst_138 = arith.constant dense<0.000000e+00> : vector<8x20xf32>
    %429 = tpu.matmul %40, %428, %cst_138 {dimension_numbers = #tpu.dot_dimension_numbers<[1], [0], [0], [1], [0, 0, 1, 1], [], []>} : vector<8x16xf32>, vector<16x20xf32>, vector<8x20xf32> -> vector<8x20xf32>
    %430 = vector.extract_strided_slice %427 {offsets = [0, 20], sizes = [16, 20], strides = [1, 1]} : vector<16x40xf32> to vector<16x20xf32>
    %cst_139 = arith.constant dense<0.000000e+00> : vector<8x20xf32>
    %431 = tpu.matmul %36, %430, %cst_139 {dimension_numbers = #tpu.dot_dimension_numbers<[1], [0], [0], [1], [0, 0, 1, 1], [], []>} : vector<8x16xf32>, vector<16x20xf32>, vector<8x20xf32> -> vector<8x20xf32>
    %432 = arith.addf %429, %431 : vector<8x20xf32>
    %433 = arith.addf %432, %75 : vector<8x20xf32>
    %cst_140 = arith.constant 0.000000e+00 : f32
    %434 = vector.broadcast %cst_140 : f32 to vector<8x20xf32>
    %435 = arith.maximumf %433, %434 : vector<8x20xf32>
    %cst_141 = arith.constant dense<0.000000e+00> : vector<32x20xf32>
    %436 = tpu.matmul %7, %435, %cst_141 {dimension_numbers = #tpu.dot_dimension_numbers<[1], [0], [0], [1], [0, 0, 1, 1], [], []>} : vector<32x8xf32>, vector<8x20xf32>, vector<32x20xf32> -> vector<32x20xf32>
    %437 = vector.extract_strided_slice %436 {offsets = [0, 0], sizes = [16, 20], strides = [1, 1]} : vector<32x20xf32> to vector<16x20xf32>
    %cst_142 = arith.constant dense<0.000000e+00> : vector<16x60xf32>
    %438 = tpu.matmul %437, %81, %cst_142 {dimension_numbers = #tpu.dot_dimension_numbers<[1], [0], [0], [1], [0, 0, 1, 1], [], []>} : vector<16x20xf32>, vector<20x60xf32>, vector<16x60xf32> -> vector<16x60xf32>
    %439 = vector.extract_strided_slice %436 {offsets = [16, 0], sizes = [16, 20], strides = [1, 1]} : vector<32x20xf32> to vector<16x20xf32>
    %cst_143 = arith.constant dense<0.000000e+00> : vector<16x60xf32>
    %440 = tpu.matmul %439, %82, %cst_143 {dimension_numbers = #tpu.dot_dimension_numbers<[1], [0], [0], [1], [0, 0, 1, 1], [], []>} : vector<16x20xf32>, vector<20x60xf32>, vector<16x60xf32> -> vector<16x60xf32>
    %441 = arith.addf %438, %440 : vector<16x60xf32>
    %442 = arith.addf %441, %78 : vector<16x60xf32>
    %443 = vector.extract_strided_slice %419 {offsets = [0, 40], sizes = [16, 20], strides = [1, 1]} : vector<16x60xf32> to vector<16x20xf32>
    %444 = vector.extract_strided_slice %0 {offsets = [200, 0], sizes = [20, 20], strides = [1, 1]} : vector<264x128xf32> to vector<20x20xf32>
    %cst_144 = arith.constant dense<0.000000e+00> : vector<16x20xf32>
    %445 = tpu.matmul %417, %444, %cst_144 {dimension_numbers = #tpu.dot_dimension_numbers<[1], [0], [0], [1], [0, 0, 1, 1], [], []>} : vector<16x20xf32>, vector<20x20xf32>, vector<16x20xf32> -> vector<16x20xf32>
    %446 = vector.extract_strided_slice %0 {offsets = [224, 0], sizes = [1, 20], strides = [1, 1]} : vector<264x128xf32> to vector<1x20xf32>
    %447 = vector.shape_cast %446 : vector<1x20xf32> to vector<1x20xf32>
    %448 = vector.broadcast %447 : vector<1x20xf32> to vector<16x20xf32>
    %449 = arith.addf %445, %448 : vector<16x20xf32>
    %cst_145 = arith.constant 0.000000e+00 : f32
    %450 = vector.broadcast %cst_145 : f32 to vector<16x20xf32>
    %451 = arith.maximumf %449, %450 : vector<16x20xf32>
    %452 = vector.extract_strided_slice %0 {offsets = [232, 0], sizes = [20, 128], strides = [1, 1]} : vector<264x128xf32> to vector<20x128xf32>
    %cst_146 = arith.constant dense<0.000000e+00> : vector<16x128xf32>
    %453 = tpu.matmul %451, %452, %cst_146 {dimension_numbers = #tpu.dot_dimension_numbers<[1], [0], [0], [1], [0, 0, 1, 1], [], []>} : vector<16x20xf32>, vector<20x128xf32>, vector<16x128xf32> -> vector<16x128xf32>
    %454 = vector.extract_strided_slice %0 {offsets = [256, 0], sizes = [1, 128], strides = [1, 1]} : vector<264x128xf32> to vector<1x128xf32>
    %455 = vector.shape_cast %454 : vector<1x128xf32> to vector<1x128xf32>
    %456 = vector.broadcast %455 : vector<1x128xf32> to vector<16x128xf32>
    %457 = arith.addf %453, %456 : vector<16x128xf32>
    %c0_147 = arith.constant 0 : index
    %c0_148 = arith.constant 0 : index
    %458 = vector.load %arg5[%c0_147, %c0_148] : memref<16x128xf32, #tpu.memory_space<vmem>>, vector<16x128xf32>
    tpu.vector_store %arg5[%c0_147, %c0_148], %457 {strides = array<i32>} : memref<16x128xf32, #tpu.memory_space<vmem>>, vector<16x128xf32>,
    return
  }
}

</mosaic_0001>

<bundles_post_ra>
// kernel: tpu_custom_call.1
= control target key start
LH: loop header
LB: loop body
LE: loop exit
PB: predicated region body
PF: predicated region fallthrough
CT: control target
= control target key end

     0   :  { %10 = vsyncpa [#allocation3], 0  ;;  %s10312_s0 = inlined_call_operand.vmem [shape: f32[8,3], index: 0, kind: input, shape index: {}]   ;;  %s10313_s1 = inlined_call_operand.vmem [shape: f32[16,3], index: 1, kind: input, shape index: {}]   ;;  %s10314_s2 = inlined_call_operand.vmem [shape: s32[32,1], index: 2, kind: input, shape index: {}]   ;;  %s10315_s3 = inlined_call_operand.vmem [shape: s32[2,16], index: 3, kind: input, shape index: {}]   ;;  %s10316_s4 = inlined_call_operand.hbm [shape: f32[264,128], index: 4, kind: input, shape index: {}]   ;;  %s10317_s5 = inlined_call_operand.hbm [shape: f32[16,128], index: 5, kind: output, shape index: {}]  }
   0x1   :  { %11 = vsyncpa [#allocation4], 0  ;;  %s9362_s18 = smov [#allocation2]   ;;  %s9314_s22 = scalar_lea.hbm %s10316_s4, 4224 }
   0x2   :  { %s25_s19 = sshll.u32 %s9362_s18, 4  ;;  %p9315_p0 = scmp.ne.s32.totalorder %s10316_s4, %s9314_s22  ;;  %s26_s19 = int_to_ptr.vmem [resolvable:$true] %s25_s19 }
   0x3   :  { %p9318_p1 = scmp.lt.u32.totalorder %s9314_s22, %s10316_s4 }
   0x5   :  { %p9320_p2 = pnand %p9318_p1, %p9315_p0 }
   0x7   :  { %9323 = shalt.err (!%p9320_p2)
}
   0x8   :  { %s9324_s27 = scalar_lea.vmem %s26_s19, 4224  ;;  %p9329_p4 = scmp.lt.s32.totalorder %s26_s19, %s26_s19 }
   0x9   :  { %p9325_p3 = scmp.ne.s32.totalorder %s26_s19, %s9324_s27  ;;  %p9330_p5 = scmp.lt.s32.totalorder %s9324_s27, %s9324_s27 }
   0xb   :  { %p9331_p6 = por %p9330_p5, %p9329_p4 }
   0xd   :  { %p9332_p7 = pnand %p9331_p6, %p9325_p3 }
   0xf   :  { %9335 = shalt.err (!%p9332_p7)
}
  0x10   :  { %s9363_s28 = smov 128   ;;  %s9364_s29 = smov 8  }
  0x11   :  { %31 = dma.hbm_to_vmem [thread:$0]  %s10316_s4, 4224, %s26_s19, [#allocation3], %s9363_s28, %s9363_s28, %s9364_s29  }
  0x12   :  { %9358 = dma.done.wait [#allocation3], 4224  }
  0x13   :  { %9359 = vsyncadd [#allocation3], 4294963072  ;;  %v9365_v0 = vmov 0.0   ;;  %vm9366_vm0 = vmmov 0   ;;  %v9367_v1 = vmov 0   ;;  %vm137_vm1 = vcmask 1042432  }
  0x14   :  { %8173 = vmatprep.subr.mxu1 %v9365_v0  ;;  %8175 = vmatprep.mubr.msk.f32.mxu1 %vm9366_vm0, %v9365_v0  ;;  %vm133_vm2 = vcmask 23552   ;;  %v35_v2 = vld [vmem:[#allocation2] sm:$0xff]  ;;  %v130_v3 = vld [vmem:[%s10312_s0] sm:$0xff]  ;;  %v70_v5 = vld [vmem:[%s10314_s2 + $0x10] sm:$0xff]  ;;  %v73_v14 = vlaneseq  ;;  %vm284_vm3 = vcmask 64512   ;;  %vm864_vm8 = vcmask 1043456  }
  0x15   :  { %9249 = vset.pattern.permute.xlu0 %v9367_v1  ;;  %9250 = vset.pattern.permute.xlu1 %v9367_v1  ;;  %v36_v4 = vld [vmem:[#allocation2 + $0x8] sm:$0xff]  ;;  %v39_v7 = vld [vmem:[#allocation2 + $0x20] sm:$0xff]  ;;  %v69_v9 = vld [vmem:[%s10314_s2 + $0x8] sm:$0xff]  ;;  %vm857_vm9 = vcmask 162816   ;;  %s9369_s18 = smov 108   ;;  %vm113_vm11 = vcmask 130048  }
  0x16   :  { %8174 = vmatpush3.msk.msra.mxu1 %vm137_vm1, %v35_v2  ;;  %v68_v6 = vld [vmem:[%s10314_s2] sm:$0xff]  ;;  %82 = vperm.xlu0 %9249, %v70_v5   ;;  %v71_v8 = vld [vmem:[%s10314_s2 + $0x18] sm:$0xff]  ;;  %v37_v11 = vld [vmem:[#allocation2 + $0x10] sm:$0xff]  ;;  %v74_v15 = vand.u32 127, %v73_v14  ;;  %v9501_v38 = vshrl.u32 %v73_v14, 7  ;;  %s9370_s21 = smov 88  }
  0x17   :  { %8176 = vmatmul.mubr.msk.f32.vlgmr.msra.gmra.mrb[0].mxu1 %vm133_vm2, %v130_v3  ;;  %8178 = vmatprep.subr.mxu1 %v9365_v0  ;;  %v40_v10 = vld [vmem:[#allocation2 + $0x28] sm:$0xff]  ;;  %v132_v13 = vld [vmem:[%s10313_s1 + $0x8] sm:$0xff]  ;;  %v42_v34 = vld [vmem:[#allocation2 + $0x38] sm:$0xff]  ;;  %vm971_vm13 = vcmask 326656  }
  0x18   :  { %8179 = vmatpush3.msk.msra.mxu1 %vm137_vm1, %v36_v4  ;;  %8180 = vmatprep.mubr.msk.f32.mxu1 %vm9366_vm0, %v9365_v0  ;;  %v131_v12 = vld [vmem:[%s10313_s1] sm:$0xff]  ;;  %v43_v35 = vld [vmem:[#allocation2 + $0x40] sm:$0xff]  ;;  %v9504_v39 = vsub.s32 0, %v9501_v38  ;;  %v38_v40 = vld [vmem:[#allocation2 + $0x18] sm:$0xff]  ;;  %s9368_s1 = smov 20  }
  0x19   :  { %8193 = vmatprep.subr.mxu1 %v9365_v0  ;;  %76 = vperm.xlu1 %9250, %v68_v6   ;;  %v9491_v36 = vpack.c.bf16 %v43_v35, %v42_v34  ;;  %v9495_v37 = vld [vmem:[#allocation2 + $0x48] sm:$0xff]  ;;  %v45_v52 = vld [vmem:[#allocation2 + $0x50] sm:$0xff]  ;;  %v46_v62 = vld [vmem:[#allocation2 + $0x58] sm:$0xff] }
  0x1a   :  { %85 = vperm.xlu0 %9249, %v71_v8   ;;  %v752_v41 = vrot.slane %v38_v40, %v9504_v39  ;;  %v9512_v53 = vrot.slane %v45_v52, %v9504_v39  ;;  %v41_v54 = vld [vmem:[#allocation2 + $0x30] sm:$0xff]  ;;  %v47_v63 = vld [vmem:[#allocation2 + $0x60] sm:$0xff]  ;;  %v48_v1 = vld [vmem:[#allocation2 + $0x68] sm:$0xff] }
  0x1b   :  { %8181 = vmatmul.mubr.msk.f32.vlgmr.msra.gmra.mrb[2].mxu1 %vm133_vm2, %v130_v3  ;;  %v746_v56 = vrot.slane %v41_v54, %v9504_v39  ;;  %v9524_v2 = vpack.c.bf16 %v47_v63, %v46_v62  ;;  %v9532_v5 = vld [vmem:[#allocation2 + $0x78] sm:$0xff] }
  0x1c   :  { %8194 = vmatpush3.msk.msra.mxu1 %vm137_vm1, %v39_v7  ;;  %8195 = vmatprep.mubr.msk.f32.mxu1 %vm9366_vm0, %v9365_v0 }
  0x1d   :  { %8198 = vmatprep.subr.mxu1 %v9365_v0  ;;  %79 = vperm.xlu1 %9250, %v69_v9  }
  0x1f   :  { %8196 = vmatmul.mubr.msk.f32.vlgmr.msra.gmra.mrb[4].mxu1 %vm133_vm2, %v130_v3 }
  0x20   :  { %8199 = vmatpush3.msk.msra.mxu1 %vm137_vm1, %v40_v10  ;;  %8200 = vmatprep.mubr.msk.f32.mxu1 %vm9366_vm0, %v9365_v0 }
  0x21   :  { %8213 = vmatprep.subr.msk.mxu1 %vm137_vm1, %v37_v11 }
  0x23   :  { %8201 = vmatmul.mubr.msk.f32.vlgmr.msra.gmra.mrb[6].mxu1 %vm133_vm2, %v130_v3  ;;  %v49_v3 = vld [vmem:[#allocation2 + $0x70] sm:$0xff] }
  0x24   :  { %8215 = vmatprep.mubr.msk.f32.mxu1 %vm133_vm2, %v131_v12  ;;  %8214 = vmatpush3.msk.msra.mxu1 %vm137_vm1, %v37_v11  ;;  %v9526_v4 = vpack.c.bf16 %v49_v3, %v48_v1  ;;  %v56_v1 = vld [vmem:[#allocation2 + $0xa8] sm:$0xff]  ;;  %v57_v3 = vld [vmem:[#allocation2 + $0xb0] sm:$0xff] }
  0x25   :  { %8919 = vmatprep.subr.bf16.mxu1 %v9491_v36 }
  0x27   :  { %8216 = vmatmul.mubr.msk.f32.vlgmr.msra.gmra.mrb[8].mxu1 %vm133_vm2, %v132_v13 }
  0x28   :  { %8921 = vmatpush3.bf16.msra.mxu1 %v9491_v36 }
  0x29   :  { %8222 = vmatprep.subr.msk.mxu1 %vm864_vm8, %v9495_v37 }
  0x2c   :  { %8223 = vmatpush3.msk.msra.mxu1 %vm864_vm8, %v9495_v37 }
  0x95   :  { %v83_v16 = vpop.permute.xlu0 %82 }
  0x96   :  { %vm89_vm4 = vcmp.eq.s32.totalorder %v74_v15, %v83_v16  ;;  %v108_v16 = vsub.s32 1, %v9501_v38 }
  0x97   :  { %v9464_v17 = vsel %vm89_vm4, 1.0, %v9365_v0 }
  0x98   :  { %8185 = vmatprep.mubr.msk.f32.mxu0 %vm284_vm3, %v9464_v17  ;;  %v77_v21 = vpop.permute.xlu1 %76 }
  0x99   :  { %v86_v18 = vpop.permute.xlu0 %85  ;;  %vm87_vm5 = vcmp.eq.s32.totalorder %v74_v15, %v77_v21 }
  0x9a   :  { %vm90_vm6 = vcmp.eq.s32.totalorder %v74_v15, %v86_v18  ;;  %v9469_v23 = vsel %vm87_vm5, 1.0, %v9365_v0  ;;  %v72_v18 = vld [vmem:[%s10315_s3] sm:$0x3]  ;;  %s9372_s3 = smov [#allocation5]  }
  0x9b   :  { %v9472_v25 = vsel %vm90_vm6, 1.0, %v9365_v0  ;;  %s7547_s22 = sshll.u32 %s9372_s3, 4  ;;  %s7548_s22 = int_to_ptr.vmem [resolvable:$true] %s7547_s22 }
  0x9c   :  { %v80_v26 = vpop.permute.xlu1 %79  ;;  %s9336_s23 = scalar_lea.vmem %s7548_s22, 256  ;;  %p9341_p9 = scmp.lt.s32.totalorder %s7548_s22, %s7548_s22 }
  0x9d   :  { %vm88_vm7 = vcmp.eq.s32.totalorder %v74_v15, %v80_v26  ;;  %p9337_p8 = scmp.ne.s32.totalorder %s7548_s22, %s9336_s23  ;;  %p9342_p10 = scmp.lt.s32.totalorder %s9336_s23, %s9336_s23 }
  0x9e   :  { %v9479_v31 = vsel %vm88_vm7, 1.0, %v9365_v0 }
  0x9f   :  { %p9343_p11 = por %p9342_p10, %p9341_p9 }
  0xa1   :  { %p9344_p12 = pnand %p9343_p11, %p9337_p8 }
  0xea   :  { %v207_v19 = vpop.f32.mrb[0].mxu1 }
  0xeb   :  { %v8177_v20 = vpop.f32.mrb[1].mxu1 }
  0xee   :  { %v280_v22 = vpop.f32.mrb[2].mxu1 }
  0xef   :  { %v8182_v24 = vpop.f32.mrb[3].mxu1  ;;  %8183 = vmatprep.subr.mxu0 %v280_v22 }
  0xf0   :  { %8184 = vmatpush3.msra.mxu0 %v280_v22  ;;  %v104_v22 = vrot.slane %v72_v18, %v9504_v39 }
  0xf1   :  { %8186 = vmatmul.mubr.msk.f32.vlgmr.msra.gmra.mrb[0].mxu0 %vm284_vm3, %v9472_v25  ;;  %8188 = vmatprep.subr.mxu0 %v207_v19 }
  0xf2   :  { %8189 = vmatpush3.msra.mxu0 %v207_v19  ;;  %8190 = vmatprep.mubr.msk.f32.mxu0 %vm284_vm3, %v9469_v23  ;;  %v516_v27 = vpop.f32.mrb[4].mxu1  ;;  %v109_v19 = vrot.slane %v72_v18, %v108_v16  ;;  %vm105_vm12 = vcmp.eq.s32.totalorder %v9501_v38, %v104_v22  ;;  %v9611_v18 = vld [vmem:[#allocation2 + $0xa0] sm:$0xff] }
  0xf3   :  { %v8197_v28 = vpop.f32.mrb[5].mxu1  ;;  %v7563_v24 = vsel %vm105_vm12, 1.0, %v9365_v0 }
  0xf4   :  { %vm110_vm10 = vcmp.eq.s32.totalorder %v9501_v38, %v109_v19  ;;  %v114_v26 = vsel %vm113_vm11, %v7563_v24, 0.0  ;;  %v59_v19 = vld [vmem:[#allocation2 + $0xc0] sm:$0xff] }
  0xf5   :  { %v7564_v20 = vsel %vm110_vm10, 1.0, %v9365_v0 }
  0xf6   :  { %v589_v29 = vpop.f32.mrb[6].mxu1  ;;  %v122_v21 = vsel %vm113_vm11, %v7564_v20, 0.0 }
  0xf7   :  { %8203 = vmatprep.subr.mxu0 %v589_v29  ;;  %v8202_v30 = vpop.f32.mrb[7].mxu1 }
  0xf8   :  { %v9371_v30 = vmov 0.0|0.0  }
  0xf9   :  { %8191 = vmatmul.mubr.msk.f32.vlgmr.msra.gmra.mrb[0].mxu0 %vm284_vm3, %v9479_v31  ;;  %8930 = vmatprep.subr.bf16.mxu1 %v9371_v30 }
  0xfa   :  { %8205 = vmatprep.mubr.msk.f32.mxu0 %vm284_vm3, %v9464_v17  ;;  %8204 = vmatpush3.msra.mxu0 %v589_v29  ;;  %v8217_v32 = vpop.f32.mrb[8].mxu1  ;;  %v51_v29 = vld [vmem:[#allocation2 + $0x80] sm:$0xff] }
  0xfb   :  { %8208 = vmatprep.subr.mxu0 %v516_v27  ;;  %v828_v33 = vpop.f32.mrb[9].mxu1  ;;  %v834_v42 = vadd.f32 %v8217_v32, %v752_v41  ;;  %v9562_v32 = vrot.slane %v51_v29, %v9504_v39 }
  0xfc   :  { %v829_v43 = vadd.f32 %v828_v33, %v752_v41 }
  0xfd   :  { %8206 = vmatmul.mubr.msk.f32.vlgmr.msra.gmra.mrb[2].mxu0 %vm284_vm3, %v9472_v25 }
  0xfe   :  { %8210 = vmatprep.mubr.msk.f32.mxu0 %vm284_vm3, %v9469_v23  ;;  %8209 = vmatpush3.msra.mxu0 %v516_v27 }
  0xff   :  { %8923 = vmatprep.subr.bf16.mxu0 %v9524_v2 }
 0x105   :  { %8211 = vmatmul.mubr.msk.f32.vlgmr.msra.gmra.mrb[2].mxu0 %vm284_vm3, %v9479_v31 }
 0x106   :  { %8925 = vmatpush3.bf16.msra.mxu0 %v9524_v2 }
 0x107   :  { %8927 = vmatprep.subr.bf16.mxu0 %v9526_v4 }
 0x10a   :  { %8929 = vmatpush3.bf16.msra.mxu0 %v9526_v4 }
 0x10b   :  { %8235 = vmatprep.subr.mxu0 %v9532_v5 }
 0x10e   :  { %8236 = vmatpush3.msra.mxu0 %v9532_v5 }
 0x1cc   :  { %v8192_v44 = vpop.f32.mrb[0].mxu0 }
 0x1cd   :  { %v854_v45 = vadd.f32 %v8192_v44, %v834_v42  ;;  %v438_v46 = vpop.f32.mrb[1].mxu0 }
 0x1ce   :  { %v853_v47 = vadd.f32 %v829_v43, %v438_v46 }
 0x1cf   :  { %v856_v49 = vmax.f32 %v854_v45, 0.0 }
 0x1d0   :  { %v855_v48 = vmax.f32 %v853_v47, 0.0 }
 0x1d2   :  { %8224 = vmatprep.mubr.msk.f32.mxu1 %vm857_vm9, %v855_v48 }
 0x1d3   :  { %8225 = vmatmul.mubr.msk.f32.vlgmr.msra.gmra.mrb[10].mxu1 %vm857_vm9, %v856_v49 }
 0x1d4   :  { %8244 = vmatprep.mubr.msk.f32.mxu1 %vm9366_vm0, %v9365_v0 }
 0x1d8   :  { %v8212_v50 = vpop.f32.mrb[2].mxu0 }
 0x1d9   :  { %v734_v51 = vpop.f32.mrb[3].mxu0  ;;  %v748_v60 = vadd.f32 %v8212_v50, %v746_v56 }
 0x1da   :  { %v747_v61 = vadd.f32 %v746_v56, %v734_v51 }
 0x2a6   :  { %v8226_v55 = vpop.f32.mrb[10].mxu1 }
 0x2a7   :  { %v9516_v57 = vadd.f32 %v8226_v55, %v9512_v53  ;;  %v934_v58 = vpop.f32.mrb[11].mxu1  ;;  %v52_v55 = vld [vmem:[#allocation2 + $0x88] sm:$0xff] }
 0x2a8   :  { %v935_v59 = vadd.f32 %v934_v58, %v9512_v53  ;;  %v9581_v58 = vrot.slane %v52_v55, %v9504_v39 }
 0x2a9   :  { %947 = vrot.lane.b32.xlu1 %v9516_v57, %s9368_s1 }
 0x2aa   :  { %945 = vrot.lane.b32.xlu0 %v935_v59, %s9368_s1 }
 0x2ad   :  { %957 = vrot.lane.b32.xlu1 %v748_v60, %s9368_s1 }
 0x2ae   :  { %955 = vrot.lane.b32.xlu0 %v747_v61, %s9368_s1 }
 0x31b   :  { %v948_v6 = vpop.permute.xlu1 %947 }
 0x31c   :  { %v946_v7 = vpop.permute.xlu0 %945  ;;  %v952_v8 = vadd.f32 %v8192_v44, %v948_v6  ;;  %v9597_v6 = vpack.c.bf16 %v57_v3, %v56_v1 }
 0x31d   :  { %v951_v9 = vadd.f32 %v946_v7, %v438_v46  ;;  %v9601_v7 = vld [vmem:[#allocation2 + $0xb8] sm:$0xff] }
 0x31f   :  { %v9536_v10 = vpop.permute.xlu1 %957 }
 0x320   :  { %v9538_v11 = vpop.permute.xlu0 %955  ;;  %v962_v12 = vadd.f32 %v9536_v10, %v952_v8  ;;  %v53_v8 = vld [vmem:[#allocation2 + $0x90] sm:$0xff] }
 0x321   :  { %v961_v13 = vadd.f32 %v9538_v11, %v951_v9  ;;  %v54_v9 = vld [vmem:[#allocation2 + $0x98] sm:$0xff] }
 0x322   :  { %v964_v14 = vmax.f32 %v962_v12, 0.0  ;;  %v9607_v12 = vpack.c.bf16 %v54_v9, %v53_v8 }
 0x323   :  { %v963_v15 = vmax.f32 %v961_v13, 0.0 }
 0x324   :  { %969 = vrot.lane.b32.xlu1 %v964_v14, %s9369_s18 }
 0x325   :  { %967 = vrot.lane.b32.xlu0 %v963_v15, %s9369_s18 }
 0x344   :  { %115 = vadd.xlane.f32.xlu0 %v114_v26 }
 0x348   :  { %123 = vadd.xlane.f32.xlu1 %v122_v21 }
 0x359   :  { %1462 = vrot.lane.b32.xlu1 %v935_v59, %s9370_s21 }
 0x396   :  { %v970_v28 = vpop.permute.xlu1 %969 }
 0x397   :  { %v968_v27 = vpop.permute.xlu0 %967 }
 0x398   :  { %8237 = vmatprep.mubr.msk.f32.mxu0 %vm971_vm13, %v968_v27 }
 0x399   :  { %8238 = vmatmul.mubr.msk.f32.vlgmr.msra.gmra.mrb[4].mxu0 %vm971_vm13, %v970_v28 }
 0x39a   :  { %8256 = vmatprep.mubr.msk.f32.mxu0 %vm284_vm3, %v9469_v23 }
 0x3d1   :  { %v116_v42 = vpop.xlane.xlu0 %115 }
 0x3d2   :  { %v117_v43 = vmax.f32 %v116_v42, 1.0 }
 0x3d4   :  { %9306 = vrcp.f32 %v117_v43 }
 0x3d5   :  { %v124_v44 = vpop.xlane.xlu1 %123 }
 0x3d6   :  { %v125_v45 = vmax.f32 %v124_v44, 1.0 }
 0x3d8   :  { %9308 = vrcp.f32 %v125_v45 }
 0x3d9   :  { %v1463_v28 = vpop.permute.xlu1 %1462 }
 0x3de   :  { %v9307_v47 = vpop.eup %9306 }
 0x3df   :  { %v9569_v51 = vmul.f32 %v9307_v47, %v7563_v24 }
 0x3e2   :  { %v9309_v52 = vpop.eup %9308 }
 0x3e3   :  { %v9572_v54 = vmul.f32 %v9309_v52, %v7564_v20  ;;  %v9625_v20 = vrot.slane %v59_v19, %v9504_v39 }
 0x46c   :  { %v8239_v33 = vpop.f32.mrb[4].mxu0 }
 0x46d   :  { %v1048_v34 = vadd.f32 %v8239_v33, %v9562_v32  ;;  %v1042_v35 = vpop.f32.mrb[5].mxu0 }
 0x46e   :  { %v1043_v38 = vadd.f32 %v1042_v35, %v9562_v32 }
 0x470   :  { %v9251_v40 = vpack.i.bf16 %v1048_v34, %v1043_v38  ;;  %v8934_v41 = vpack.c.bf16 %v1048_v34, %v1043_v38 }
 0x472   :  { %9252 = vrot.lane.b32.xlu0 %v9251_v40, %s9369_s18 }
 0x476   :  { %1464 = vrot.lane.b32.xlu0 %v9516_v57, %s9370_s21 }
 0x4e4   :  { %v9253_v46 = vpop.permute.xlu0 %9252 }
 0x4e5   :  { %v9255_v48 = vunpack.i.h.bf16 %v9253_v46  ;;  %v9254_v49 = vunpack.i.l.bf16 %v9253_v46 }
 0x4e7   :  { %v8931_v50 = vpack.c.bf16 %v9255_v48, %v9254_v49 }
 0x4e8   :  { %v1465_v26 = vpop.permute.xlu0 %1464 }
 0x4e9   :  { %8932 = vmatpush3.bf16.msra.mxu1 %v8931_v50 }
 0x4ea   :  { %8933 = vmatprep.subr.bf16.mxu1 %v9371_v30 }
 0x4ec   :  { %8245 = vmatmul.mubr.msk.f32.vlgmr.msra.gmra.mrb[12].mxu1 %vm113_vm11, %v9569_v51 }
 0x4ed   :  { %8935 = vmatpush3.bf16.msra.mxu1 %v8934_v41  ;;  %8251 = vmatprep.mubr.msk.f32.mxu1 %vm9366_vm0, %v9365_v0 }
 0x4ee   :  { %8937 = vmatprep.subr.bf16.mxu1 %v9597_v6 }
 0x4f0   :  { %8252 = vmatmul.mubr.msk.f32.vlgmr.msra.gmra.mrb[14].mxu1 %vm113_vm11, %v9572_v54 }
 0x4f1   :  { %8939 = vmatpush3.bf16.msra.mxu1 %v9597_v6 }
 0x4f2   :  { %8266 = vmatprep.subr.msk.mxu1 %vm864_vm8, %v9601_v7 }
 0x4f5   :  { %8267 = vmatpush3.msk.msra.mxu1 %vm864_vm8, %v9601_v7 }
 0x4f6   :  { %8941 = vmatprep.subr.bf16.mxu1 %v9607_v12 }
 0x5bf   :  { %v1128_v56 = vpop.f32.mrb[12].mxu1 }
 0x5c0   :  { %v8246_v57 = vpop.f32.mrb[13].mxu1 }
 0x5c3   :  { %v1201_v59 = vpop.f32.mrb[14].mxu1 }
 0x5c4   :  { %v1202_v60 = vadd.f32 %v1201_v59, %v1128_v56  ;;  %v8253_v61 = vpop.f32.mrb[15].mxu1 }
 0x5c6   :  { %v1205_v62 = vadd.f32 %v1202_v60, %v9581_v58 }
 0x5c8   :  { %v1206_v63 = vmax.f32 %v1205_v62, 0.0 }
 0x5ca   :  { %8254 = vmatprep.subr.mxu0 %v1206_v63 }
 0x5cb   :  { %8255 = vmatpush3.msra.mxu0 %v1206_v63 }
 0x5cc   :  { %8257 = vmatmul.mubr.msk.f32.vlgmr.msra.gmra.mrb[6].mxu0 %vm284_vm3, %v9479_v31  ;;  %8945 = vmatprep.subr.bf16.mxu0 %v9491_v36 }
 0x5cd   :  { %8259 = vmatprep.mubr.msk.f32.mxu0 %vm284_vm3, %v9464_v17  ;;  %8947 = vmatpush3.bf16.msra.mxu0 %v9491_v36 }
 0x5ce   :  { %8284 = vmatprep.subr.msk.mxu0 %vm864_vm8, %v9495_v37 }
 0x5d0   :  { %8260 = vmatmul.mubr.msk.f32.gmra.mrb[8].mxu0 %vm284_vm3, %v9472_v25 }
 0x5d1   :  { %8285 = vmatpush3.msk.msra.mxu0 %vm864_vm8, %v9495_v37 }
 0x5d2   :  { %8949 = vmatprep.subr.bf16.mxu0 %v9524_v2 }
 0x69f   :  { %v8258_v13 = vpop.f32.mrb[6].mxu0 }
 0x6a0   :  { %v1273_v14 = vpop.f32.mrb[7].mxu0 }
 0x6a3   :  { %v8261_v15 = vpop.f32.mrb[8].mxu0 }
 0x6a4   :  { %v1283_v16 = vpop.f32.mrb[9].mxu0 }
 0x6a5   :  { %8268 = vmatprep.mubr.msk.f32.mxu1 %vm857_vm9, %v1283_v16 }
 0x6a6   :  { %8269 = vmatmul.mubr.msk.f32.vlgmr.msra.gmra.mrb[16].mxu1 %vm857_vm9, %v8261_v15 }
 0x6a7   :  { %8277 = vmatprep.mubr.msk.f32.mxu1 %vm857_vm9, %v1273_v14  ;;  %8943 = vmatpush3.bf16.msra.mxu1 %v9607_v12 }
 0x6a8   :  { %8275 = vmatprep.subr.msk.mxu1 %vm864_vm8, %v9611_v18 }
 0x6ab   :  { %8276 = vmatpush3.msk.msra.mxu1 %vm864_vm8, %v9611_v18 }
 0x6ac   :  { %8956 = vmatprep.subr.bf16.mxu1 %v9371_v30 }
 0x6ae   :  { %8278 = vmatmul.mubr.msk.f32.vlgmr.msra.gmra.mrb[16].mxu1 %vm857_vm9, %v8258_v13 }
 0x6af   :  { %8306 = vmatprep.mubr.msk.f32.mxu1 %vm9366_vm0, %v9365_v0 }
 0x781   :  { %v8279_v21 = vpop.f32.mrb[16].mxu1 }
 0x782   :  { %v1461_v22 = vadd.f32 %v8279_v21, %v9625_v20  ;;  %v1451_v24 = vpop.f32.mrb[17].mxu1 }
 0x783   :  { %v1460_v27 = vadd.f32 %v1451_v24, %v9625_v20 }
 0x784   :  { %v1469_v29 = vadd.f32 %v1465_v26, %v1461_v22 }
 0x785   :  { %v1468_v33 = vadd.f32 %v1463_v28, %v1460_v27 }
 0x786   :  { %v1471_v35 = vmax.f32 %v1469_v29, 0.0 }
 0x787   :  { %v1470_v34 = vmax.f32 %v1468_v33, 0.0 }
 0x789   :  { %8286 = vmatprep.mubr.msk.f32.mxu0 %vm857_vm9, %v1470_v34 }
 0x78a   :  { %8287 = vmatmul.mubr.msk.f32.vlgmr.msra.gmra.mrb[10].mxu0 %vm857_vm9, %v1471_v35 }
 0x78b   :  { %8951 = vmatpush3.bf16.msra.mxu0 %v9524_v2 }
 0x78c   :  { %8953 = vmatprep.subr.bf16.mxu0 %v9526_v4 }
 0x78f   :  { %8955 = vmatpush3.bf16.msra.mxu0 %v9526_v4 }
 0x790   :  { %8297 = vmatprep.subr.mxu0 %v9532_v5 }
 0x793   :  { %8298 = vmatpush3.msra.mxu0 %v9532_v5 }
 0x794   :  { %8963 = vmatprep.subr.bf16.mxu0 %v9597_v6 }
 0x85d   :  { %v8288_v38 = vpop.f32.mrb[10].mxu0 }
 0x85e   :  { %v1550_v40 = vadd.f32 %v8288_v38, %v9512_v53  ;;  %v1544_v41 = vpop.f32.mrb[11].mxu0 }
 0x85f   :  { %v1545_v42 = vadd.f32 %v1544_v41, %v9512_v53 }
 0x860   :  { %1557 = vrot.lane.b32.xlu0 %v1550_v40, %s9368_s1 }
 0x861   :  { %1555 = vrot.lane.b32.xlu1 %v1545_v42, %s9368_s1 }
 0x8d2   :  { %v1558_v43 = vpop.permute.xlu0 %1557 }
 0x8d3   :  { %v1562_v44 = vadd.f32 %v1558_v43, %v1461_v22  ;;  %v1556_v45 = vpop.permute.xlu1 %1555 }
 0x8d4   :  { %v1561_v46 = vadd.f32 %v1556_v45, %v1460_v27 }
 0x8d5   :  { %v1564_v47 = vadd.f32 %v1562_v44, %v9536_v10 }
 0x8d6   :  { %v1563_v48 = vadd.f32 %v1561_v46, %v9538_v11 }
 0x8d7   :  { %v1566_v49 = vmax.f32 %v1564_v47, 0.0 }
 0x8d8   :  { %v1565_v50 = vmax.f32 %v1563_v48, 0.0 }
 0x8d9   :  { %1571 = vrot.lane.b32.xlu0 %v1566_v49, %s9369_s18 }
 0x8da   :  { %1569 = vrot.lane.b32.xlu1 %v1565_v50, %s9369_s18 }
 0x8dd   :  { %2051 = vrot.lane.b32.xlu0 %v1545_v42, %s9370_s21 }
 0x94b   :  { %v1572_v55 = vpop.permute.xlu0 %1571 }
 0x94c   :  { %v1570_v52 = vpop.permute.xlu1 %1569 }
 0x94d   :  { %8299 = vmatprep.mubr.msk.f32.mxu0 %vm971_vm13, %v1570_v52 }
 0x94e   :  { %8300 = vmatmul.mubr.msk.f32.vlgmr.msra.gmra.mrb[12].mxu0 %vm971_vm13, %v1572_v55 }
 0x94f   :  { %8965 = vmatpush3.bf16.msra.mxu0 %v9597_v6  ;;  %v2052_v38 = vpop.permute.xlu0 %2051 }
 0x950   :  { %8328 = vmatprep.subr.msk.mxu0 %vm864_vm8, %v9601_v7 }
 0x953   :  { %8329 = vmatpush3.msk.msra.mxu0 %vm864_vm8, %v9601_v7 }
 0x954   :  { %8967 = vmatprep.subr.bf16.mxu0 %v9607_v12 }
 0xa21   :  { %v8301_v56 = vpop.f32.mrb[12].mxu0 }
 0xa22   :  { %v1649_v57 = vadd.f32 %v8301_v56, %v9562_v32  ;;  %v1643_v59 = vpop.f32.mrb[13].mxu0 }
 0xa23   :  { %v1644_v60 = vadd.f32 %v1643_v59, %v9562_v32 }
 0xa25   :  { %v9256_v61 = vpack.i.bf16 %v1649_v57, %v1644_v60  ;;  %v8960_v62 = vpack.c.bf16 %v1649_v57, %v1644_v60 }
 0xa27   :  { %9257 = vrot.lane.b32.xlu1 %v9256_v61, %s9369_s18 }
 0xa2b   :  { %2053 = vrot.lane.b32.xlu1 %v1550_v40, %s9370_s21 }
 0xa99   :  { %v9258_v63 = vpop.permute.xlu1 %9257 }
 0xa9a   :  { %v9260_v1 = vunpack.i.h.bf16 %v9258_v63  ;;  %v9259_v3 = vunpack.i.l.bf16 %v9258_v63 }
 0xa9c   :  { %v8957_v8 = vpack.c.bf16 %v9260_v1, %v9259_v3 }
 0xa9d   :  { %v2054_v34 = vpop.permute.xlu1 %2053 }
 0xa9e   :  { %8958 = vmatpush3.bf16.msra.mxu1 %v8957_v8 }
 0xa9f   :  { %8959 = vmatprep.subr.bf16.mxu1 %v9371_v30 }
 0xaa1   :  { %8307 = vmatmul.mubr.msk.f32.vlgmr.msra.gmra.mrb[18].mxu1 %vm113_vm11, %v9569_v51 }
 0xaa2   :  { %8961 = vmatpush3.bf16.msra.mxu1 %v8960_v62  ;;  %8313 = vmatprep.mubr.msk.f32.mxu1 %vm9366_vm0, %v9365_v0 }
 0xaa5   :  { %8314 = vmatmul.mubr.msk.f32.vlgmr.msra.gmra.mrb[20].mxu1 %vm113_vm11, %v9572_v54 }
 0xaa6   :  { %8318 = vmatprep.mubr.msk.f32.mxu1 %vm284_vm3, %v9469_v23 }
 0xb74   :  { %v1726_v9 = vpop.f32.mrb[18].mxu1 }
 0xb75   :  { %v8308_v13 = vpop.f32.mrb[19].mxu1 }
 0xb78   :  { %v1796_v14 = vpop.f32.mrb[20].mxu1 }
 0xb79   :  { %v1797_v15 = vadd.f32 %v1796_v14, %v1726_v9  ;;  %v8315_v16 = vpop.f32.mrb[21].mxu1 }
 0xb7b   :  { %v1800_v19 = vadd.f32 %v1797_v15, %v9581_v58 }
 0xb7d   :  { %v1801_v21 = vmax.f32 %v1800_v19, 0.0 }
 0xb7f   :  { %8316 = vmatprep.subr.mxu1 %v1801_v21 }
 0xb80   :  { %8317 = vmatpush3.msra.mxu1 %v1801_v21 }
 0xb81   :  { %8319 = vmatmul.mubr.msk.f32.vlgmr.msra.gmra.mrb[22].mxu1 %vm284_vm3, %v9479_v31  ;;  %8971 = vmatprep.subr.bf16.mxu1 %v9491_v36 }
 0xb82   :  { %8321 = vmatprep.mubr.msk.f32.mxu1 %vm284_vm3, %v9464_v17  ;;  %8973 = vmatpush3.bf16.msra.mxu1 %v9491_v36 }
 0xb83   :  { %8346 = vmatprep.subr.msk.mxu1 %vm864_vm8, %v9495_v37 }
 0xb85   :  { %8322 = vmatmul.mubr.msk.f32.gmra.mrb[24].mxu1 %vm284_vm3, %v9472_v25 }
 0xb86   :  { %8347 = vmatpush3.msk.msra.mxu1 %vm864_vm8, %v9495_v37 }
 0xb87   :  { %8975 = vmatprep.subr.bf16.mxu1 %v9524_v2 }
 0xc54   :  { %v8320_v22 = vpop.f32.mrb[22].mxu1 }
 0xc55   :  { %v1868_v24 = vpop.f32.mrb[23].mxu1 }
 0xc58   :  { %v8323_v26 = vpop.f32.mrb[24].mxu1 }
 0xc59   :  { %v1878_v27 = vpop.f32.mrb[25].mxu1 }
 0xc5a   :  { %8330 = vmatprep.mubr.msk.f32.mxu0 %vm857_vm9, %v1878_v27 }
 0xc5b   :  { %8331 = vmatmul.mubr.msk.f32.vlgmr.msra.gmra.mrb[14].mxu0 %vm857_vm9, %v8323_v26 }
 0xc5c   :  { %8339 = vmatprep.mubr.msk.f32.mxu0 %vm857_vm9, %v1868_v24  ;;  %8969 = vmatpush3.bf16.msra.mxu0 %v9607_v12 }
 0xc5d   :  { %8337 = vmatprep.subr.msk.mxu0 %vm864_vm8, %v9611_v18 }
 0xc60   :  { %8338 = vmatpush3.msk.msra.mxu0 %vm864_vm8, %v9611_v18 }
 0xc61   :  { %8982 = vmatprep.subr.bf16.mxu0 %v9371_v30 }
 0xc63   :  { %8340 = vmatmul.mubr.msk.f32.vlgmr.msra.gmra.mrb[14].mxu0 %vm857_vm9, %v8320_v22 }
 0xc64   :  { %8368 = vmatprep.mubr.msk.f32.mxu0 %vm9366_vm0, %v9365_v0 }
 0xd36   :  { %v8341_v28 = vpop.f32.mrb[14].mxu0 }
 0xd37   :  { %v2050_v29 = vadd.f32 %v8341_v28, %v9625_v20  ;;  %v2040_v33 = vpop.f32.mrb[15].mxu0 }
 0xd38   :  { %v2049_v35 = vadd.f32 %v2040_v33, %v9625_v20 }
 0xd39   :  { %v2058_v40 = vadd.f32 %v2054_v34, %v2050_v29 }
 0xd3a   :  { %v2057_v41 = vadd.f32 %v2052_v38, %v2049_v35 }
 0xd3b   :  { %v2060_v43 = vmax.f32 %v2058_v40, 0.0 }
 0xd3c   :  { %v2059_v42 = vmax.f32 %v2057_v41, 0.0 }
 0xd3e   :  { %8348 = vmatprep.mubr.msk.f32.mxu1 %vm857_vm9, %v2059_v42 }
 0xd3f   :  { %8349 = vmatmul.mubr.msk.f32.vlgmr.msra.gmra.mrb[26].mxu1 %vm857_vm9, %v2060_v43 }
 0xd40   :  { %8977 = vmatpush3.bf16.msra.mxu1 %v9524_v2 }
 0xd41   :  { %8979 = vmatprep.subr.bf16.mxu1 %v9526_v4 }
 0xd44   :  { %8981 = vmatpush3.bf16.msra.mxu1 %v9526_v4 }
 0xd45   :  { %8359 = vmatprep.subr.mxu1 %v9532_v5 }
 0xd48   :  { %8360 = vmatpush3.msra.mxu1 %v9532_v5 }
 0xd49   :  { %8989 = vmatprep.subr.bf16.mxu1 %v9597_v6 }
 0xe12   :  { %v8350_v44 = vpop.f32.mrb[26].mxu1 }
 0xe13   :  { %v2139_v45 = vadd.f32 %v8350_v44, %v9512_v53  ;;  %v2133_v46 = vpop.f32.mrb[27].mxu1 }
 0xe14   :  { %v2134_v47 = vadd.f32 %v2133_v46, %v9512_v53 }
 0xe15   :  { %2146 = vrot.lane.b32.xlu1 %v2139_v45, %s9368_s1 }
 0xe16   :  { %2144 = vrot.lane.b32.xlu0 %v2134_v47, %s9368_s1 }
 0xe87   :  { %v2147_v48 = vpop.permute.xlu1 %2146 }
 0xe88   :  { %v2151_v49 = vadd.f32 %v2147_v48, %v2050_v29  ;;  %v2145_v50 = vpop.permute.xlu0 %2144 }
 0xe89   :  { %v2150_v52 = vadd.f32 %v2145_v50, %v2049_v35 }
 0xe8a   :  { %v2153_v55 = vadd.f32 %v2151_v49, %v9536_v10 }
 0xe8b   :  { %v2152_v56 = vadd.f32 %v2150_v52, %v9538_v11 }
 0xe8c   :  { %v2155_v57 = vmax.f32 %v2153_v55, 0.0 }
 0xe8d   :  { %v2154_v59 = vmax.f32 %v2152_v56, 0.0 }
 0xe8e   :  { %2160 = vrot.lane.b32.xlu1 %v2155_v57, %s9369_s18 }
 0xe8f   :  { %2158 = vrot.lane.b32.xlu0 %v2154_v59, %s9369_s18 }
 0xe92   :  { %2640 = vrot.lane.b32.xlu1 %v2134_v47, %s9370_s21 }
 0xf00   :  { %v2161_v61 = vpop.permute.xlu1 %2160 }
 0xf01   :  { %v2159_v60 = vpop.permute.xlu0 %2158 }
 0xf02   :  { %8361 = vmatprep.mubr.msk.f32.mxu1 %vm971_vm13, %v2159_v60 }
 0xf03   :  { %8362 = vmatmul.mubr.msk.f32.vlgmr.msra.gmra.mrb[28].mxu1 %vm971_vm13, %v2161_v61 }
 0xf04   :  { %8991 = vmatpush3.bf16.msra.mxu1 %v9597_v6  ;;  %v2641_v44 = vpop.permute.xlu1 %2640 }
 0xf05   :  { %8390 = vmatprep.subr.msk.mxu1 %vm864_vm8, %v9601_v7 }
 0xf08   :  { %8391 = vmatpush3.msk.msra.mxu1 %vm864_vm8, %v9601_v7 }
 0xf09   :  { %8993 = vmatprep.subr.bf16.mxu1 %v9607_v12 }
 0xfd6   :  { %v8363_v62 = vpop.f32.mrb[28].mxu1 }
 0xfd7   :  { %v2238_v63 = vadd.f32 %v8363_v62, %v9562_v32  ;;  %v2232_v1 = vpop.f32.mrb[29].mxu1 }
 0xfd8   :  { %v2233_v3 = vadd.f32 %v2232_v1, %v9562_v32 }
 0xfda   :  { %v9261_v8 = vpack.i.bf16 %v2238_v63, %v2233_v3  ;;  %v8986_v9 = vpack.c.bf16 %v2238_v63, %v2233_v3 }
 0xfdc   :  { %9262 = vrot.lane.b32.xlu0 %v9261_v8, %s9369_s18 }
 0xfe0   :  { %2642 = vrot.lane.b32.xlu0 %v2139_v45, %s9370_s21 }
0x104e   :  { %v9263_v13 = vpop.permute.xlu0 %9262 }
0x104f   :  { %v9265_v14 = vunpack.i.h.bf16 %v9263_v13  ;;  %v9264_v15 = vunpack.i.l.bf16 %v9263_v13 }
0x1051   :  { %v8983_v16 = vpack.c.bf16 %v9265_v14, %v9264_v15 }
0x1052   :  { %v2643_v42 = vpop.permute.xlu0 %2642 }
0x1053   :  { %8984 = vmatpush3.bf16.msra.mxu0 %v8983_v16 }
0x1054   :  { %8985 = vmatprep.subr.bf16.mxu0 %v9371_v30 }
0x1056   :  { %8369 = vmatmul.mubr.msk.f32.vlgmr.msra.gmra.mrb[16].mxu0 %vm113_vm11, %v9569_v51 }
0x1057   :  { %8987 = vmatpush3.bf16.msra.mxu0 %v8986_v9  ;;  %8375 = vmatprep.mubr.msk.f32.mxu0 %vm9366_vm0, %v9365_v0 }
0x105a   :  { %8376 = vmatmul.mubr.msk.f32.vlgmr.msra.gmra.mrb[18].mxu0 %vm113_vm11, %v9572_v54 }
0x105b   :  { %8380 = vmatprep.mubr.msk.f32.mxu0 %vm284_vm3, %v9469_v23 }
0x1129   :  { %v2315_v19 = vpop.f32.mrb[16].mxu0 }
0x112a   :  { %v8370_v21 = vpop.f32.mrb[17].mxu0 }
0x112d   :  { %v2385_v22 = vpop.f32.mrb[18].mxu0 }
0x112e   :  { %v2386_v24 = vadd.f32 %v2385_v22, %v2315_v19  ;;  %v8377_v26 = vpop.f32.mrb[19].mxu0 }
0x1130   :  { %v2389_v27 = vadd.f32 %v2386_v24, %v9581_v58 }
0x1132   :  { %v2390_v28 = vmax.f32 %v2389_v27, 0.0 }
0x1134   :  { %8378 = vmatprep.subr.mxu0 %v2390_v28 }
0x1135   :  { %8379 = vmatpush3.msra.mxu0 %v2390_v28 }
0x1136   :  { %8381 = vmatmul.mubr.msk.f32.vlgmr.msra.gmra.mrb[20].mxu0 %vm284_vm3, %v9479_v31  ;;  %8997 = vmatprep.subr.bf16.mxu0 %v9491_v36 }
0x1137   :  { %8383 = vmatprep.mubr.msk.f32.mxu0 %vm284_vm3, %v9464_v17  ;;  %8999 = vmatpush3.bf16.msra.mxu0 %v9491_v36 }
0x1138   :  { %8408 = vmatprep.subr.msk.mxu0 %vm864_vm8, %v9495_v37 }
0x113a   :  { %8384 = vmatmul.mubr.msk.f32.gmra.mrb[22].mxu0 %vm284_vm3, %v9472_v25 }
0x113b   :  { %8409 = vmatpush3.msk.msra.mxu0 %vm864_vm8, %v9495_v37 }
0x113c   :  { %9001 = vmatprep.subr.bf16.mxu0 %v9524_v2 }
0x1209   :  { %v8382_v29 = vpop.f32.mrb[20].mxu0 }
0x120a   :  { %v2457_v33 = vpop.f32.mrb[21].mxu0 }
0x120d   :  { %v8385_v34 = vpop.f32.mrb[22].mxu0 }
0x120e   :  { %v2467_v35 = vpop.f32.mrb[23].mxu0 }
0x120f   :  { %8392 = vmatprep.mubr.msk.f32.mxu1 %vm857_vm9, %v2467_v35 }
0x1210   :  { %8393 = vmatmul.mubr.msk.f32.vlgmr.msra.gmra.mrb[30].mxu1 %vm857_vm9, %v8385_v34 }
0x1211   :  { %8401 = vmatprep.mubr.msk.f32.mxu1 %vm857_vm9, %v2457_v33  ;;  %8995 = vmatpush3.bf16.msra.mxu1 %v9607_v12 }
0x1212   :  { %8399 = vmatprep.subr.msk.mxu1 %vm864_vm8, %v9611_v18 }
0x1215   :  { %8400 = vmatpush3.msk.msra.mxu1 %vm864_vm8, %v9611_v18 }
0x1216   :  { %9008 = vmatprep.subr.bf16.mxu1 %v9371_v30 }
0x1218   :  { %8402 = vmatmul.mubr.msk.f32.vlgmr.msra.gmra.mrb[30].mxu1 %vm857_vm9, %v8382_v29 }
0x1219   :  { %8430 = vmatprep.mubr.msk.f32.mxu1 %vm9366_vm0, %v9365_v0 }
0x12eb   :  { %v8403_v38 = vpop.f32.mrb[30].mxu1 }
0x12ec   :  { %v2639_v40 = vadd.f32 %v8403_v38, %v9625_v20  ;;  %v2629_v41 = vpop.f32.mrb[31].mxu1 }
0x12ed   :  { %v2638_v43 = vadd.f32 %v2629_v41, %v9625_v20 }
0x12ee   :  { %v2647_v45 = vadd.f32 %v2643_v42, %v2639_v40 }
0x12ef   :  { %v2646_v46 = vadd.f32 %v2641_v44, %v2638_v43 }
0x12f0   :  { %v2649_v48 = vmax.f32 %v2647_v45, 0.0 }
0x12f1   :  { %v2648_v47 = vmax.f32 %v2646_v46, 0.0 }
0x12f3   :  { %8410 = vmatprep.mubr.msk.f32.mxu0 %vm857_vm9, %v2648_v47 }
0x12f4   :  { %8411 = vmatmul.mubr.msk.f32.vlgmr.msra.gmra.mrb[24].mxu0 %vm857_vm9, %v2649_v48 }
0x12f5   :  { %9003 = vmatpush3.bf16.msra.mxu0 %v9524_v2 }
0x12f6   :  { %9005 = vmatprep.subr.bf16.mxu0 %v9526_v4 }
0x12f9   :  { %9007 = vmatpush3.bf16.msra.mxu0 %v9526_v4 }
0x12fa   :  { %8421 = vmatprep.subr.mxu0 %v9532_v5 }
0x12fd   :  { %8422 = vmatpush3.msra.mxu0 %v9532_v5 }
0x12fe   :  { %9015 = vmatprep.subr.bf16.mxu0 %v9597_v6 }
0x13c7   :  { %v8412_v49 = vpop.f32.mrb[24].mxu0 }
0x13c8   :  { %v2728_v50 = vadd.f32 %v8412_v49, %v9512_v53  ;;  %v2722_v52 = vpop.f32.mrb[25].mxu0 }
0x13c9   :  { %v2723_v55 = vadd.f32 %v2722_v52, %v9512_v53 }
0x13ca   :  { %2735 = vrot.lane.b32.xlu0 %v2728_v50, %s9368_s1 }
0x13cb   :  { %2733 = vrot.lane.b32.xlu1 %v2723_v55, %s9368_s1 }
0x143c   :  { %v2736_v56 = vpop.permute.xlu0 %2735 }
0x143d   :  { %v2740_v57 = vadd.f32 %v2736_v56, %v2639_v40  ;;  %v2734_v59 = vpop.permute.xlu1 %2733 }
0x143e   :  { %v2739_v60 = vadd.f32 %v2734_v59, %v2638_v43 }
0x143f   :  { %v2742_v61 = vadd.f32 %v2740_v57, %v9536_v10 }
0x1440   :  { %v2741_v62 = vadd.f32 %v2739_v60, %v9538_v11 }
0x1441   :  { %v2744_v63 = vmax.f32 %v2742_v61, 0.0 }
0x1442   :  { %v2743_v1 = vmax.f32 %v2741_v62, 0.0 }
0x1443   :  { %2749 = vrot.lane.b32.xlu0 %v2744_v63, %s9369_s18 }
0x1444   :  { %2747 = vrot.lane.b32.xlu1 %v2743_v1, %s9369_s18 }
0x1447   :  { %3229 = vrot.lane.b32.xlu0 %v2723_v55, %s9370_s21 }
0x14b5   :  { %v2750_v8 = vpop.permute.xlu0 %2749 }
0x14b6   :  { %v2748_v3 = vpop.permute.xlu1 %2747 }
0x14b7   :  { %8423 = vmatprep.mubr.msk.f32.mxu0 %vm971_vm13, %v2748_v3 }
0x14b8   :  { %8424 = vmatmul.mubr.msk.f32.vlgmr.msra.gmra.mrb[26].mxu0 %vm971_vm13, %v2750_v8 }
0x14b9   :  { %9017 = vmatpush3.bf16.msra.mxu0 %v9597_v6  ;;  %v3230_v48 = vpop.permute.xlu0 %3229 }
0x14ba   :  { %8452 = vmatprep.subr.msk.mxu0 %vm864_vm8, %v9601_v7 }
0x14bd   :  { %8453 = vmatpush3.msk.msra.mxu0 %vm864_vm8, %v9601_v7 }
0x14be   :  { %9019 = vmatprep.subr.bf16.mxu0 %v9607_v12 }
0x158b   :  { %v8425_v9 = vpop.f32.mrb[26].mxu0 }
0x158c   :  { %v2827_v13 = vadd.f32 %v8425_v9, %v9562_v32  ;;  %v2821_v14 = vpop.f32.mrb[27].mxu0 }
0x158d   :  { %v2822_v15 = vadd.f32 %v2821_v14, %v9562_v32 }
0x158f   :  { %v9266_v16 = vpack.i.bf16 %v2827_v13, %v2822_v15  ;;  %v9012_v19 = vpack.c.bf16 %v2827_v13, %v2822_v15 }
0x1591   :  { %9267 = vrot.lane.b32.xlu1 %v9266_v16, %s9369_s18 }
0x1595   :  { %3231 = vrot.lane.b32.xlu1 %v2728_v50, %s9370_s21 }
0x1603   :  { %v9268_v21 = vpop.permute.xlu1 %9267 }
0x1604   :  { %v9270_v22 = vunpack.i.h.bf16 %v9268_v21  ;;  %v9269_v24 = vunpack.i.l.bf16 %v9268_v21 }
0x1606   :  { %v9009_v26 = vpack.c.bf16 %v9270_v22, %v9269_v24 }
0x1607   :  { %v3232_v46 = vpop.permute.xlu1 %3231 }
0x1608   :  { %9010 = vmatpush3.bf16.msra.mxu1 %v9009_v26 }
0x1609   :  { %9011 = vmatprep.subr.bf16.mxu1 %v9371_v30 }
0x160b   :  { %8431 = vmatmul.mubr.msk.f32.vlgmr.msra.gmra.mrb[32].mxu1 %vm113_vm11, %v9569_v51 }
0x160c   :  { %9013 = vmatpush3.bf16.msra.mxu1 %v9012_v19  ;;  %8437 = vmatprep.mubr.msk.f32.mxu1 %vm9366_vm0, %v9365_v0 }
0x160f   :  { %8438 = vmatmul.mubr.msk.f32.vlgmr.msra.gmra.mrb[34].mxu1 %vm113_vm11, %v9572_v54 }
0x1610   :  { %8442 = vmatprep.mubr.msk.f32.mxu1 %vm284_vm3, %v9469_v23 }
0x16de   :  { %v2904_v27 = vpop.f32.mrb[32].mxu1 }
0x16df   :  { %v8432_v28 = vpop.f32.mrb[33].mxu1 }
0x16e2   :  { %v2974_v29 = vpop.f32.mrb[34].mxu1 }
0x16e3   :  { %v2975_v33 = vadd.f32 %v2974_v29, %v2904_v27  ;;  %v8439_v34 = vpop.f32.mrb[35].mxu1 }
0x16e5   :  { %v2978_v35 = vadd.f32 %v2975_v33, %v9581_v58 }
0x16e7   :  { %v2979_v38 = vmax.f32 %v2978_v35, 0.0 }
0x16e9   :  { %8440 = vmatprep.subr.mxu1 %v2979_v38 }
0x16ea   :  { %8441 = vmatpush3.msra.mxu1 %v2979_v38 }
0x16eb   :  { %8443 = vmatmul.mubr.msk.f32.vlgmr.msra.gmra.mrb[36].mxu1 %vm284_vm3, %v9479_v31  ;;  %9023 = vmatprep.subr.bf16.mxu1 %v9491_v36 }
0x16ec   :  { %8445 = vmatprep.mubr.msk.f32.mxu1 %vm284_vm3, %v9464_v17  ;;  %9025 = vmatpush3.bf16.msra.mxu1 %v9491_v36 }
0x16ed   :  { %8470 = vmatprep.subr.msk.mxu1 %vm864_vm8, %v9495_v37 }
0x16ef   :  { %8446 = vmatmul.mubr.msk.f32.gmra.mrb[38].mxu1 %vm284_vm3, %v9472_v25 }
0x16f0   :  { %8471 = vmatpush3.msk.msra.mxu1 %vm864_vm8, %v9495_v37 }
0x16f1   :  { %9027 = vmatprep.subr.bf16.mxu1 %v9524_v2 }
0x17be   :  { %v8444_v40 = vpop.f32.mrb[36].mxu1 }
0x17bf   :  { %v3046_v41 = vpop.f32.mrb[37].mxu1 }
0x17c2   :  { %v8447_v42 = vpop.f32.mrb[38].mxu1 }
0x17c3   :  { %v3056_v43 = vpop.f32.mrb[39].mxu1 }
0x17c4   :  { %8454 = vmatprep.mubr.msk.f32.mxu0 %vm857_vm9, %v3056_v43 }
0x17c5   :  { %8455 = vmatmul.mubr.msk.f32.vlgmr.msra.gmra.mrb[28].mxu0 %vm857_vm9, %v8447_v42 }
0x17c6   :  { %8463 = vmatprep.mubr.msk.f32.mxu0 %vm857_vm9, %v3046_v41  ;;  %9021 = vmatpush3.bf16.msra.mxu0 %v9607_v12 }
0x17c7   :  { %8461 = vmatprep.subr.msk.mxu0 %vm864_vm8, %v9611_v18 }
0x17ca   :  { %8462 = vmatpush3.msk.msra.mxu0 %vm864_vm8, %v9611_v18 }
0x17cb   :  { %9034 = vmatprep.subr.bf16.mxu0 %v9371_v30 }
0x17cd   :  { %8464 = vmatmul.mubr.msk.f32.vlgmr.msra.gmra.mrb[28].mxu0 %vm857_vm9, %v8444_v40 }
0x17ce   :  { %8492 = vmatprep.mubr.msk.f32.mxu0 %vm9366_vm0, %v9365_v0 }
0x18a0   :  { %v8465_v37 = vpop.f32.mrb[28].mxu0 }
0x18a1   :  { %v3228_v44 = vadd.f32 %v8465_v37, %v9625_v20  ;;  %v3218_v45 = vpop.f32.mrb[29].mxu0  ;;  %v9872_v37 = vld [vmem:[#allocation2 + $0x48] sm:$0xff] }
0x18a2   :  { %v3227_v47 = vadd.f32 %v3218_v45, %v9625_v20 }
0x18a3   :  { %v3236_v49 = vadd.f32 %v3232_v46, %v3228_v44 }
0x18a4   :  { %v3235_v50 = vadd.f32 %v3230_v48, %v3227_v47 }
0x18a5   :  { %v3238_v55 = vmax.f32 %v3236_v49, 0.0 }
0x18a6   :  { %v3237_v52 = vmax.f32 %v3235_v50, 0.0 }
0x18a8   :  { %8472 = vmatprep.mubr.msk.f32.mxu1 %vm857_vm9, %v3237_v52 }
0x18a9   :  { %8473 = vmatmul.mubr.msk.f32.vlgmr.msra.gmra.mrb[40].mxu1 %vm857_vm9, %v3238_v55 }
0x18aa   :  { %9029 = vmatpush3.bf16.msra.mxu1 %v9524_v2 }
0x18ab   :  { %9031 = vmatprep.subr.bf16.mxu1 %v9526_v4 }
0x18ae   :  { %9033 = vmatpush3.bf16.msra.mxu1 %v9526_v4 }
0x18af   :  { %8483 = vmatprep.subr.mxu1 %v9532_v5 }
0x18b2   :  { %8484 = vmatpush3.msra.mxu1 %v9532_v5 }
0x18b3   :  { %9041 = vmatprep.subr.bf16.mxu1 %v9597_v6 }
0x197c   :  { %v8474_v56 = vpop.f32.mrb[40].mxu1 }
0x197d   :  { %v3317_v57 = vadd.f32 %v8474_v56, %v9512_v53  ;;  %v3311_v59 = vpop.f32.mrb[41].mxu1 }
0x197e   :  { %v3312_v60 = vadd.f32 %v3311_v59, %v9512_v53 }
0x197f   :  { %3324 = vrot.lane.b32.xlu1 %v3317_v57, %s9368_s1 }
0x1980   :  { %3322 = vrot.lane.b32.xlu0 %v3312_v60, %s9368_s1 }
0x19f1   :  { %v3325_v61 = vpop.permute.xlu1 %3324 }
0x19f2   :  { %v3329_v62 = vadd.f32 %v3325_v61, %v3228_v44  ;;  %v3323_v63 = vpop.permute.xlu0 %3322 }
0x19f3   :  { %v3328_v1 = vadd.f32 %v3323_v63, %v3227_v47 }
0x19f4   :  { %v3331_v3 = vadd.f32 %v3329_v62, %v9536_v10 }
0x19f5   :  { %v3330_v8 = vadd.f32 %v3328_v1, %v9538_v11 }
0x19f6   :  { %v3333_v9 = vmax.f32 %v3331_v3, 0.0 }
0x19f7   :  { %v3332_v13 = vmax.f32 %v3330_v8, 0.0 }
0x19f8   :  { %3338 = vrot.lane.b32.xlu1 %v3333_v9, %s9369_s18 }
0x19f9   :  { %3336 = vrot.lane.b32.xlu0 %v3332_v13, %s9369_s18 }
0x19fc   :  { %3818 = vrot.lane.b32.xlu1 %v3312_v60, %s9370_s21 }
0x1a6a   :  { %v3339_v15 = vpop.permute.xlu1 %3338 }
0x1a6b   :  { %v3337_v14 = vpop.permute.xlu0 %3336 }
0x1a6c   :  { %8485 = vmatprep.mubr.msk.f32.mxu1 %vm971_vm13, %v3337_v14 }
0x1a6d   :  { %8486 = vmatmul.mubr.msk.f32.vlgmr.msra.gmra.mrb[42].mxu1 %vm971_vm13, %v3339_v15 }
0x1a6e   :  { %9043 = vmatpush3.bf16.msra.mxu1 %v9597_v6  ;;  %v3819_v56 = vpop.permute.xlu1 %3818 }
0x1a6f   :  { %8514 = vmatprep.subr.msk.mxu1 %vm864_vm8, %v9601_v7 }
0x1a72   :  { %8515 = vmatpush3.msk.msra.mxu1 %vm864_vm8, %v9601_v7 }
0x1a73   :  { %9045 = vmatprep.subr.bf16.mxu1 %v9607_v12 }
0x1b40   :  { %v8487_v16 = vpop.f32.mrb[42].mxu1 }
0x1b41   :  { %v3416_v19 = vadd.f32 %v8487_v16, %v9562_v32  ;;  %v3410_v21 = vpop.f32.mrb[43].mxu1 }
0x1b42   :  { %v3411_v22 = vadd.f32 %v3410_v21, %v9562_v32 }
0x1b44   :  { %v9271_v24 = vpack.i.bf16 %v3416_v19, %v3411_v22  ;;  %v9038_v26 = vpack.c.bf16 %v3416_v19, %v3411_v22 }
0x1b46   :  { %9272 = vrot.lane.b32.xlu0 %v9271_v24, %s9369_s18 }
0x1b4a   :  { %3820 = vrot.lane.b32.xlu0 %v3317_v57, %s9370_s21 }
0x1bb8   :  { %v9273_v27 = vpop.permute.xlu0 %9272 }
0x1bb9   :  { %v9275_v28 = vunpack.i.h.bf16 %v9273_v27  ;;  %v9274_v29 = vunpack.i.l.bf16 %v9273_v27 }
0x1bbb   :  { %v9035_v33 = vpack.c.bf16 %v9275_v28, %v9274_v29 }
0x1bbc   :  { %v3821_v52 = vpop.permute.xlu0 %3820 }
0x1bbd   :  { %9036 = vmatpush3.bf16.msra.mxu0 %v9035_v33 }
0x1bbe   :  { %9037 = vmatprep.subr.bf16.mxu0 %v9371_v30 }
0x1bc0   :  { %8493 = vmatmul.mubr.msk.f32.vlgmr.msra.gmra.mrb[30].mxu0 %vm113_vm11, %v9569_v51 }
0x1bc1   :  { %9039 = vmatpush3.bf16.msra.mxu0 %v9038_v26  ;;  %8499 = vmatprep.mubr.msk.f32.mxu0 %vm9366_vm0, %v9365_v0 }
0x1bc4   :  { %8500 = vmatmul.mubr.msk.f32.vlgmr.msra.gmra.mrb[32].mxu0 %vm113_vm11, %v9572_v54 }
0x1bc5   :  { %8504 = vmatprep.mubr.msk.f32.mxu0 %vm284_vm3, %v9469_v23 }
0x1c93   :  { %v3493_v34 = vpop.f32.mrb[30].mxu0 }
0x1c94   :  { %v8494_v35 = vpop.f32.mrb[31].mxu0 }
0x1c97   :  { %v3563_v38 = vpop.f32.mrb[32].mxu0 }
0x1c98   :  { %v3564_v40 = vadd.f32 %v3563_v38, %v3493_v34  ;;  %v8501_v41 = vpop.f32.mrb[33].mxu0 }
0x1c9a   :  { %v3567_v42 = vadd.f32 %v3564_v40, %v9581_v58 }
0x1c9c   :  { %v3568_v43 = vmax.f32 %v3567_v42, 0.0 }
0x1c9e   :  { %8502 = vmatprep.subr.mxu0 %v3568_v43 }
0x1c9f   :  { %8503 = vmatpush3.msra.mxu0 %v3568_v43 }
0x1ca0   :  { %8505 = vmatmul.mubr.msk.f32.vlgmr.msra.gmra.mrb[34].mxu0 %vm284_vm3, %v9479_v31  ;;  %9049 = vmatprep.subr.bf16.mxu0 %v9491_v36 }
0x1ca1   :  { %8507 = vmatprep.mubr.msk.f32.mxu0 %vm284_vm3, %v9464_v17  ;;  %9051 = vmatpush3.bf16.msra.mxu0 %v9491_v36 }
0x1ca2   :  { %8532 = vmatprep.subr.msk.mxu0 %vm864_vm8, %v9872_v37 }
0x1ca4   :  { %8508 = vmatmul.mubr.msk.f32.gmra.mrb[36].mxu0 %vm284_vm3, %v9472_v25 }
0x1ca5   :  { %8533 = vmatpush3.msk.msra.mxu0 %vm864_vm8, %v9872_v37 }
0x1ca6   :  { %9053 = vmatprep.subr.bf16.mxu0 %v9524_v2 }
0x1d73   :  { %v8506_v44 = vpop.f32.mrb[34].mxu0 }
0x1d74   :  { %v3635_v45 = vpop.f32.mrb[35].mxu0 }
0x1d77   :  { %v8509_v46 = vpop.f32.mrb[36].mxu0 }
0x1d78   :  { %v3645_v47 = vpop.f32.mrb[37].mxu0 }
0x1d79   :  { %8516 = vmatprep.mubr.msk.f32.mxu1 %vm857_vm9, %v3645_v47 }
0x1d7a   :  { %8517 = vmatmul.mubr.msk.f32.vlgmr.msra.gmra.mrb[44].mxu1 %vm857_vm9, %v8509_v46 }
0x1d7b   :  { %8525 = vmatprep.mubr.msk.f32.mxu1 %vm857_vm9, %v3635_v45  ;;  %9047 = vmatpush3.bf16.msra.mxu1 %v9607_v12 }
0x1d7c   :  { %8523 = vmatprep.subr.msk.mxu1 %vm864_vm8, %v9611_v18 }
0x1d7f   :  { %8524 = vmatpush3.msk.msra.mxu1 %vm864_vm8, %v9611_v18 }
0x1d80   :  { %9060 = vmatprep.subr.bf16.mxu1 %v9371_v30 }
0x1d82   :  { %8526 = vmatmul.mubr.msk.f32.vlgmr.msra.gmra.mrb[44].mxu1 %vm857_vm9, %v8506_v44 }
0x1d83   :  { %8554 = vmatprep.mubr.msk.f32.mxu1 %vm9366_vm0, %v9365_v0 }
0x1e55   :  { %v8527_v48 = vpop.f32.mrb[44].mxu1 }
0x1e56   :  { %v3817_v49 = vadd.f32 %v8527_v48, %v9625_v20  ;;  %v3807_v50 = vpop.f32.mrb[45].mxu1 }
0x1e57   :  { %v3816_v55 = vadd.f32 %v3807_v50, %v9625_v20 }
0x1e58   :  { %v3825_v57 = vadd.f32 %v3821_v52, %v3817_v49 }
0x1e59   :  { %v3824_v59 = vadd.f32 %v3819_v56, %v3816_v55 }
0x1e5a   :  { %v3827_v61 = vmax.f32 %v3825_v57, 0.0 }
0x1e5b   :  { %v3826_v60 = vmax.f32 %v3824_v59, 0.0 }
0x1e5d   :  { %8534 = vmatprep.mubr.msk.f32.mxu0 %vm857_vm9, %v3826_v60 }
0x1e5e   :  { %8535 = vmatmul.mubr.msk.f32.vlgmr.msra.gmra.mrb[38].mxu0 %vm857_vm9, %v3827_v61 }
0x1e5f   :  { %9055 = vmatpush3.bf16.msra.mxu0 %v9524_v2 }
0x1e60   :  { %9057 = vmatprep.subr.bf16.mxu0 %v9526_v4 }
0x1e63   :  { %9059 = vmatpush3.bf16.msra.mxu0 %v9526_v4 }
0x1e64   :  { %8545 = vmatprep.subr.mxu0 %v9532_v5 }
0x1e67   :  { %8546 = vmatpush3.msra.mxu0 %v9532_v5 }
0x1e68   :  { %9067 = vmatprep.subr.bf16.mxu0 %v9597_v6 }
0x1f31   :  { %v8536_v62 = vpop.f32.mrb[38].mxu0 }
0x1f32   :  { %v3906_v63 = vadd.f32 %v8536_v62, %v9512_v53  ;;  %v3900_v1 = vpop.f32.mrb[39].mxu0 }
0x1f33   :  { %v3901_v3 = vadd.f32 %v3900_v1, %v9512_v53 }
0x1f34   :  { %3913 = vrot.lane.b32.xlu0 %v3906_v63, %s9368_s1 }
0x1f35   :  { %3911 = vrot.lane.b32.xlu1 %v3901_v3, %s9368_s1 }
0x1fa6   :  { %v3914_v8 = vpop.permute.xlu0 %3913 }
0x1fa7   :  { %v3918_v9 = vadd.f32 %v3914_v8, %v3817_v49  ;;  %v3912_v13 = vpop.permute.xlu1 %3911 }
0x1fa8   :  { %v3917_v14 = vadd.f32 %v3912_v13, %v3816_v55 }
0x1fa9   :  { %v3920_v15 = vadd.f32 %v3918_v9, %v9536_v10 }
0x1faa   :  { %v3919_v5 = vadd.f32 %v3917_v14, %v9538_v11 }
0x1fab   :  { %v3922_v16 = vmax.f32 %v3920_v15, 0.0 }
0x1fac   :  { %v3921_v19 = vmax.f32 %v3919_v5, 0.0 }
0x1fad   :  { %3927 = vrot.lane.b32.xlu0 %v3922_v16, %s9369_s18 }
0x1fae   :  { %3925 = vrot.lane.b32.xlu1 %v3921_v19, %s9369_s18 }
0x1fb1   :  { %4407 = vrot.lane.b32.xlu0 %v3901_v3, %s9370_s21 }
0x201f   :  { %v3928_v22 = vpop.permute.xlu0 %3927 }
0x2020   :  { %v3926_v21 = vpop.permute.xlu1 %3925 }
0x2021   :  { %8547 = vmatprep.mubr.msk.f32.mxu0 %vm971_vm13, %v3926_v21 }
0x2022   :  { %8548 = vmatmul.mubr.msk.f32.vlgmr.msra.gmra.mrb[40].mxu0 %vm971_vm13, %v3928_v22 }
0x2023   :  { %9069 = vmatpush3.bf16.msra.mxu0 %v9597_v6  ;;  %v4408_v60 = vpop.permute.xlu0 %4407 }
0x2024   :  { %8576 = vmatprep.subr.msk.mxu0 %vm864_vm8, %v9601_v7 }
0x2027   :  { %8577 = vmatpush3.msk.msra.mxu0 %vm864_vm8, %v9601_v7 }
0x2028   :  { %9071 = vmatprep.subr.bf16.mxu0 %v9607_v12 }
0x20f5   :  { %v8549_v24 = vpop.f32.mrb[40].mxu0 }
0x20f6   :  { %v4005_v26 = vadd.f32 %v8549_v24, %v9562_v32  ;;  %v3999_v27 = vpop.f32.mrb[41].mxu0 }
0x20f7   :  { %v4000_v28 = vadd.f32 %v3999_v27, %v9562_v32 }
0x20f9   :  { %v9276_v29 = vpack.i.bf16 %v4005_v26, %v4000_v28  ;;  %v9064_v33 = vpack.c.bf16 %v4005_v26, %v4000_v28  ;;  %v9983_v28 = vld [vmem:[#allocation2 + $0xb8] sm:$0xff] }
0x20fb   :  { %9277 = vrot.lane.b32.xlu1 %v9276_v29, %s9369_s18 }
0x20ff   :  { %4409 = vrot.lane.b32.xlu1 %v3906_v63, %s9370_s21 }
0x216d   :  { %v9278_v34 = vpop.permute.xlu1 %9277 }
0x216e   :  { %v9280_v35 = vunpack.i.h.bf16 %v9278_v34  ;;  %v9279_v38 = vunpack.i.l.bf16 %v9278_v34 }
0x2170   :  { %v9061_v40 = vpack.c.bf16 %v9280_v35, %v9279_v38 }
0x2171   :  { %v4410_v57 = vpop.permute.xlu1 %4409 }
0x2172   :  { %9062 = vmatpush3.bf16.msra.mxu1 %v9061_v40 }
0x2173   :  { %9063 = vmatprep.subr.bf16.mxu1 %v9371_v30 }
0x2175   :  { %8555 = vmatmul.mubr.msk.f32.vlgmr.msra.gmra.mrb[46].mxu1 %vm113_vm11, %v9569_v51 }
0x2176   :  { %9065 = vmatpush3.bf16.msra.mxu1 %v9064_v33  ;;  %8561 = vmatprep.mubr.msk.f32.mxu1 %vm9366_vm0, %v9365_v0 }
0x2179   :  { %8562 = vmatmul.mubr.msk.f32.vlgmr.msra.gmra.mrb[48].mxu1 %vm113_vm11, %v9572_v54 }
0x217a   :  { %8566 = vmatprep.mubr.msk.f32.mxu1 %vm284_vm3, %v9469_v23 }
0x2248   :  { %v4082_v7 = vpop.f32.mrb[46].mxu1 }
0x2249   :  { %v8556_v41 = vpop.f32.mrb[47].mxu1 }
0x224c   :  { %v4152_v42 = vpop.f32.mrb[48].mxu1 }
0x224d   :  { %v4153_v43 = vadd.f32 %v4152_v42, %v4082_v7  ;;  %v8563_v44 = vpop.f32.mrb[49].mxu1 }
0x224f   :  { %v4156_v45 = vadd.f32 %v4153_v43, %v9581_v58 }
0x2251   :  { %v4157_v46 = vmax.f32 %v4156_v45, 0.0 }
0x2253   :  { %8564 = vmatprep.subr.mxu1 %v4157_v46 }
0x2254   :  { %8565 = vmatpush3.msra.mxu1 %v4157_v46 }
0x2255   :  { %8567 = vmatmul.mubr.msk.f32.vlgmr.msra.gmra.mrb[50].mxu1 %vm284_vm3, %v9479_v31  ;;  %9075 = vmatprep.subr.bf16.mxu1 %v9491_v36 }
0x2256   :  { %8569 = vmatprep.mubr.msk.f32.mxu1 %vm284_vm3, %v9464_v17  ;;  %9077 = vmatpush3.bf16.msra.mxu1 %v9491_v36 }
0x2257   :  { %8594 = vmatprep.subr.msk.mxu1 %vm864_vm8, %v9872_v37 }
0x2259   :  { %8570 = vmatmul.mubr.msk.f32.gmra.mrb[52].mxu1 %vm284_vm3, %v9472_v25 }
0x225a   :  { %8595 = vmatpush3.msk.msra.mxu1 %vm864_vm8, %v9872_v37 }
0x225b   :  { %9079 = vmatprep.subr.bf16.mxu1 %v9524_v2 }
0x2328   :  { %v8568_v47 = vpop.f32.mrb[50].mxu1 }
0x2329   :  { %v4224_v48 = vpop.f32.mrb[51].mxu1 }
0x232c   :  { %v8571_v49 = vpop.f32.mrb[52].mxu1 }
0x232d   :  { %v4234_v50 = vpop.f32.mrb[53].mxu1 }
0x232e   :  { %8578 = vmatprep.mubr.msk.f32.mxu0 %vm857_vm9, %v4234_v50 }
0x232f   :  { %8579 = vmatmul.mubr.msk.f32.vlgmr.msra.gmra.mrb[42].mxu0 %vm857_vm9, %v8571_v49 }
0x2330   :  { %8587 = vmatprep.mubr.msk.f32.mxu0 %vm857_vm9, %v4224_v48  ;;  %9073 = vmatpush3.bf16.msra.mxu0 %v9607_v12 }
0x2331   :  { %8585 = vmatprep.subr.msk.mxu0 %vm864_vm8, %v9611_v18 }
0x2334   :  { %8586 = vmatpush3.msk.msra.mxu0 %vm864_vm8, %v9611_v18  ;;  %v9966_v18 = vld [vmem:[#allocation2 + $0x78] sm:$0xff] }
0x2335   :  { %9086 = vmatprep.subr.bf16.mxu0 %v9371_v30 }
0x2337   :  { %8588 = vmatmul.mubr.msk.f32.vlgmr.msra.gmra.mrb[42].mxu0 %vm857_vm9, %v8568_v47 }
0x2338   :  { %8616 = vmatprep.mubr.msk.f32.mxu0 %vm9366_vm0, %v9365_v0 }
0x240a   :  { %v8589_v52 = vpop.f32.mrb[42].mxu0 }
0x240b   :  { %v4406_v55 = vadd.f32 %v8589_v52, %v9625_v20  ;;  %v4396_v56 = vpop.f32.mrb[43].mxu0 }
0x240c   :  { %v4405_v59 = vadd.f32 %v4396_v56, %v9625_v20 }
0x240d   :  { %v4414_v61 = vadd.f32 %v4410_v57, %v4406_v55 }
0x240e   :  { %v4413_v62 = vadd.f32 %v4408_v60, %v4405_v59 }
0x240f   :  { %v4416_v1 = vmax.f32 %v4414_v61, 0.0 }
0x2410   :  { %v4415_v63 = vmax.f32 %v4413_v62, 0.0 }
0x2412   :  { %8596 = vmatprep.mubr.msk.f32.mxu1 %vm857_vm9, %v4415_v63 }
0x2413   :  { %8597 = vmatmul.mubr.msk.f32.vlgmr.msra.gmra.mrb[54].mxu1 %vm857_vm9, %v4416_v1 }
0x2414   :  { %9081 = vmatpush3.bf16.msra.mxu1 %v9524_v2 }
0x2415   :  { %9083 = vmatprep.subr.bf16.mxu1 %v9526_v4 }
0x2418   :  { %9085 = vmatpush3.bf16.msra.mxu1 %v9526_v4 }
0x2419   :  { %8607 = vmatprep.subr.mxu1 %v9966_v18 }
0x241c   :  { %8608 = vmatpush3.msra.mxu1 %v9966_v18 }
0x241d   :  { %9093 = vmatprep.subr.bf16.mxu1 %v9597_v6 }
0x24e6   :  { %v8598_v3 = vpop.f32.mrb[54].mxu1 }
0x24e7   :  { %v4495_v8 = vadd.f32 %v8598_v3, %v9512_v53  ;;  %v4489_v9 = vpop.f32.mrb[55].mxu1 }
0x24e8   :  { %v4490_v13 = vadd.f32 %v4489_v9, %v9512_v53 }
0x24e9   :  { %4502 = vrot.lane.b32.xlu1 %v4495_v8, %s9368_s1 }
0x24ea   :  { %4500 = vrot.lane.b32.xlu0 %v4490_v13, %s9368_s1 }
0x255b   :  { %v4503_v14 = vpop.permute.xlu1 %4502 }
0x255c   :  { %v4507_v15 = vadd.f32 %v4503_v14, %v4406_v55  ;;  %v4501_v5 = vpop.permute.xlu0 %4500 }
0x255d   :  { %v4506_v16 = vadd.f32 %v4501_v5, %v4405_v59  ;;  %v10021_v59 = vld [vmem:[#allocation2 + $0xa0] sm:$0xff] }
0x255e   :  { %v4509_v19 = vadd.f32 %v4507_v15, %v9536_v10 }
0x255f   :  { %v4508_v21 = vadd.f32 %v4506_v16, %v9538_v11 }
0x2560   :  { %v4511_v22 = vmax.f32 %v4509_v19, 0.0 }
0x2561   :  { %v4510_v24 = vmax.f32 %v4508_v21, 0.0 }
0x2562   :  { %4516 = vrot.lane.b32.xlu1 %v4511_v22, %s9369_s18 }
0x2563   :  { %4514 = vrot.lane.b32.xlu0 %v4510_v24, %s9369_s18 }
0x2566   :  { %4996 = vrot.lane.b32.xlu1 %v4490_v13, %s9370_s21 }
0x25d4   :  { %v4517_v27 = vpop.permute.xlu1 %4516 }
0x25d5   :  { %v4515_v26 = vpop.permute.xlu0 %4514 }
0x25d6   :  { %8609 = vmatprep.mubr.msk.f32.mxu1 %vm971_vm13, %v4515_v26 }
0x25d7   :  { %8610 = vmatmul.mubr.msk.f32.vlgmr.msra.gmra.mrb[56].mxu1 %vm971_vm13, %v4517_v27 }
0x25d8   :  { %9095 = vmatpush3.bf16.msra.mxu1 %v9597_v6  ;;  %v4997_v3 = vpop.permute.xlu1 %4996 }
0x25d9   :  { %8638 = vmatprep.subr.msk.mxu1 %vm864_vm8, %v9983_v28 }
0x25dc   :  { %8639 = vmatpush3.msk.msra.mxu1 %vm864_vm8, %v9983_v28 }
0x25dd   :  { %9097 = vmatprep.subr.bf16.mxu1 %v9607_v12 }
0x26aa   :  { %v8611_v29 = vpop.f32.mrb[56].mxu1 }
0x26ab   :  { %v4594_v33 = vadd.f32 %v8611_v29, %v9562_v32  ;;  %v4588_v34 = vpop.f32.mrb[57].mxu1 }
0x26ac   :  { %v4589_v35 = vadd.f32 %v4588_v34, %v9562_v32 }
0x26ae   :  { %v9281_v38 = vpack.i.bf16 %v4594_v33, %v4589_v35  ;;  %v9090_v40 = vpack.c.bf16 %v4594_v33, %v4589_v35 }
0x26b0   :  { %9282 = vrot.lane.b32.xlu0 %v9281_v38, %s9369_s18 }
0x26b4   :  { %4998 = vrot.lane.b32.xlu0 %v4495_v8, %s9370_s21 }
0x2722   :  { %v9283_v7 = vpop.permute.xlu0 %9282 }
0x2723   :  { %v9285_v41 = vunpack.i.h.bf16 %v9283_v7  ;;  %v9284_v42 = vunpack.i.l.bf16 %v9283_v7 }
0x2725   :  { %v9087_v43 = vpack.c.bf16 %v9285_v41, %v9284_v42 }
0x2726   :  { %v4999_v63 = vpop.permute.xlu0 %4998 }
0x2727   :  { %9088 = vmatpush3.bf16.msra.mxu0 %v9087_v43 }
0x2728   :  { %9089 = vmatprep.subr.bf16.mxu0 %v9371_v30 }
0x272a   :  { %8617 = vmatmul.mubr.msk.f32.vlgmr.msra.gmra.mrb[44].mxu0 %vm113_vm11, %v9569_v51 }
0x272b   :  { %9091 = vmatpush3.bf16.msra.mxu0 %v9090_v40  ;;  %8623 = vmatprep.mubr.msk.f32.mxu0 %vm9366_vm0, %v9365_v0 }
0x272e   :  { %8624 = vmatmul.mubr.msk.f32.vlgmr.msra.gmra.mrb[46].mxu0 %vm113_vm11, %v9572_v54 }
0x272f   :  { %8628 = vmatprep.mubr.msk.f32.mxu0 %vm284_vm3, %v9469_v23 }
0x27fd   :  { %v4671_v44 = vpop.f32.mrb[44].mxu0 }
0x27fe   :  { %v8618_v45 = vpop.f32.mrb[45].mxu0 }
0x2801   :  { %v4741_v46 = vpop.f32.mrb[46].mxu0 }
0x2802   :  { %v4742_v47 = vadd.f32 %v4741_v46, %v4671_v44  ;;  %v8625_v48 = vpop.f32.mrb[47].mxu0 }
0x2804   :  { %v4745_v49 = vadd.f32 %v4742_v47, %v9581_v58 }
0x2806   :  { %v4746_v50 = vmax.f32 %v4745_v49, 0.0 }
0x2808   :  { %8626 = vmatprep.subr.mxu0 %v4746_v50 }
0x2809   :  { %8627 = vmatpush3.msra.mxu0 %v4746_v50 }
0x280a   :  { %8629 = vmatmul.mubr.msk.f32.vlgmr.msra.gmra.mrb[48].mxu0 %vm284_vm3, %v9479_v31  ;;  %9101 = vmatprep.subr.bf16.mxu0 %v9491_v36 }
0x280b   :  { %8631 = vmatprep.mubr.msk.f32.mxu0 %vm284_vm3, %v9464_v17  ;;  %9103 = vmatpush3.bf16.msra.mxu0 %v9491_v36 }
0x280c   :  { %8656 = vmatprep.subr.msk.mxu0 %vm864_vm8, %v9872_v37 }
0x280e   :  { %8632 = vmatmul.mubr.msk.f32.gmra.mrb[50].mxu0 %vm284_vm3, %v9472_v25 }
0x280f   :  { %8657 = vmatpush3.msk.msra.mxu0 %vm864_vm8, %v9872_v37 }
0x2810   :  { %9105 = vmatprep.subr.bf16.mxu0 %v9524_v2 }
0x28dd   :  { %v8630_v52 = vpop.f32.mrb[48].mxu0 }
0x28de   :  { %v4813_v55 = vpop.f32.mrb[49].mxu0 }
0x28e1   :  { %v8633_v56 = vpop.f32.mrb[50].mxu0 }
0x28e2   :  { %v4823_v57 = vpop.f32.mrb[51].mxu0 }
0x28e3   :  { %8640 = vmatprep.mubr.msk.f32.mxu1 %vm857_vm9, %v4823_v57 }
0x28e4   :  { %8641 = vmatmul.mubr.msk.f32.vlgmr.msra.gmra.mrb[58].mxu1 %vm857_vm9, %v8633_v56 }
0x28e5   :  { %8649 = vmatprep.mubr.msk.f32.mxu1 %vm857_vm9, %v4813_v55  ;;  %9099 = vmatpush3.bf16.msra.mxu1 %v9607_v12 }
0x28e6   :  { %8647 = vmatprep.subr.msk.mxu1 %vm864_vm8, %v10021_v59 }
0x28e9   :  { %8648 = vmatpush3.msk.msra.mxu1 %vm864_vm8, %v10021_v59 }
0x28ea   :  { %9112 = vmatprep.subr.bf16.mxu1 %v9371_v30 }
0x28ec   :  { %8650 = vmatmul.mubr.msk.f32.vlgmr.msra.gmra.mrb[58].mxu1 %vm857_vm9, %v8630_v52 }
0x28ed   :  { %8678 = vmatprep.mubr.msk.f32.mxu1 %vm9366_vm0, %v9365_v0 }
0x29bf   :  { %v8651_v60 = vpop.f32.mrb[58].mxu1 }
0x29c0   :  { %v4995_v61 = vadd.f32 %v8651_v60, %v9625_v20  ;;  %v4985_v62 = vpop.f32.mrb[59].mxu1 }
0x29c1   :  { %v4994_v1 = vadd.f32 %v4985_v62, %v9625_v20 }
0x29c2   :  { %v5003_v8 = vadd.f32 %v4999_v63, %v4995_v61 }
0x29c3   :  { %v5002_v9 = vadd.f32 %v4997_v3, %v4994_v1 }
0x29c4   :  { %v5005_v14 = vmax.f32 %v5003_v8, 0.0 }
0x29c5   :  { %v5004_v13 = vmax.f32 %v5002_v9, 0.0 }
0x29c7   :  { %8658 = vmatprep.mubr.msk.f32.mxu0 %vm857_vm9, %v5004_v13 }
0x29c8   :  { %8659 = vmatmul.mubr.msk.f32.vlgmr.msra.gmra.mrb[52].mxu0 %vm857_vm9, %v5005_v14 }
0x29c9   :  { %9107 = vmatpush3.bf16.msra.mxu0 %v9524_v2 }
0x29ca   :  { %9109 = vmatprep.subr.bf16.mxu0 %v9526_v4 }
0x29cd   :  { %9111 = vmatpush3.bf16.msra.mxu0 %v9526_v4 }
0x29ce   :  { %8669 = vmatprep.subr.mxu0 %v9966_v18 }
0x29d1   :  { %8670 = vmatpush3.msra.mxu0 %v9966_v18 }
0x29d2   :  { %9119 = vmatprep.subr.bf16.mxu0 %v9597_v6 }
0x2a9b   :  { %v8660_v15 = vpop.f32.mrb[52].mxu0 }
0x2a9c   :  { %v5084_v5 = vadd.f32 %v8660_v15, %v9512_v53  ;;  %v5078_v16 = vpop.f32.mrb[53].mxu0 }
0x2a9d   :  { %v5079_v19 = vadd.f32 %v5078_v16, %v9512_v53 }
0x2a9e   :  { %5091 = vrot.lane.b32.xlu0 %v5084_v5, %s9368_s1 }
0x2a9f   :  { %5089 = vrot.lane.b32.xlu1 %v5079_v19, %s9368_s1 }
0x2b10   :  { %v5092_v21 = vpop.permute.xlu0 %5091 }
0x2b11   :  { %v5096_v22 = vadd.f32 %v5092_v21, %v4995_v61  ;;  %v5090_v24 = vpop.permute.xlu1 %5089 }
0x2b12   :  { %v5095_v26 = vadd.f32 %v5090_v24, %v4994_v1 }
0x2b13   :  { %v5098_v27 = vadd.f32 %v5096_v22, %v9536_v10 }
0x2b14   :  { %v5097_v29 = vadd.f32 %v5095_v26, %v9538_v11 }
0x2b15   :  { %v5100_v33 = vmax.f32 %v5098_v27, 0.0 }
0x2b16   :  { %v5099_v34 = vmax.f32 %v5097_v29, 0.0 }
0x2b17   :  { %5105 = vrot.lane.b32.xlu0 %v5100_v33, %s9369_s18 }
0x2b18   :  { %5103 = vrot.lane.b32.xlu1 %v5099_v34, %s9369_s18 }
0x2b1b   :  { %5585 = vrot.lane.b32.xlu0 %v5079_v19, %s9370_s21 }
0x2b89   :  { %v5106_v38 = vpop.permute.xlu0 %5105 }
0x2b8a   :  { %v5104_v35 = vpop.permute.xlu1 %5103 }
0x2b8b   :  { %8671 = vmatprep.mubr.msk.f32.mxu0 %vm971_vm13, %v5104_v35 }
0x2b8c   :  { %8672 = vmatmul.mubr.msk.f32.vlgmr.msra.gmra.mrb[54].mxu0 %vm971_vm13, %v5106_v38 }
0x2b8d   :  { %9121 = vmatpush3.bf16.msra.mxu0 %v9597_v6  ;;  %v5586_v15 = vpop.permute.xlu0 %5585 }
0x2b8e   :  { %8700 = vmatprep.subr.msk.mxu0 %vm864_vm8, %v9983_v28 }
0x2b91   :  { %8701 = vmatpush3.msk.msra.mxu0 %vm864_vm8, %v9983_v28 }
0x2b92   :  { %9123 = vmatprep.subr.bf16.mxu0 %v9607_v12 }
0x2c5f   :  { %v8673_v40 = vpop.f32.mrb[54].mxu0 }
0x2c60   :  { %v5183_v7 = vadd.f32 %v8673_v40, %v9562_v32  ;;  %v5177_v41 = vpop.f32.mrb[55].mxu0 }
0x2c61   :  { %v5178_v42 = vadd.f32 %v5177_v41, %v9562_v32 }
0x2c63   :  { %v9286_v43 = vpack.i.bf16 %v5183_v7, %v5178_v42  ;;  %v9116_v44 = vpack.c.bf16 %v5183_v7, %v5178_v42 }
0x2c65   :  { %9287 = vrot.lane.b32.xlu1 %v9286_v43, %s9369_s18 }
0x2c69   :  { %5587 = vrot.lane.b32.xlu1 %v5084_v5, %s9370_s21 }
0x2cd7   :  { %v9288_v45 = vpop.permute.xlu1 %9287 }
0x2cd8   :  { %v9290_v46 = vunpack.i.h.bf16 %v9288_v45  ;;  %v9289_v47 = vunpack.i.l.bf16 %v9288_v45 }
0x2cda   :  { %v9113_v48 = vpack.c.bf16 %v9290_v46, %v9289_v47 }
0x2cdb   :  { %v5588_v13 = vpop.permute.xlu1 %5587 }
0x2cdc   :  { %9114 = vmatpush3.bf16.msra.mxu1 %v9113_v48 }
0x2cdd   :  { %9115 = vmatprep.subr.bf16.mxu1 %v9371_v30 }
0x2cdf   :  { %8679 = vmatmul.mubr.msk.f32.vlgmr.msra.gmra.mrb[60].mxu1 %vm113_vm11, %v9569_v51 }
0x2ce0   :  { %9117 = vmatpush3.bf16.msra.mxu1 %v9116_v44  ;;  %8685 = vmatprep.mubr.msk.f32.mxu1 %vm9366_vm0, %v9365_v0 }
0x2ce3   :  { %8686 = vmatmul.mubr.msk.f32.vlgmr.msra.gmra.mrb[62].mxu1 %vm113_vm11, %v9572_v54 }
0x2ce4   :  { %8690 = vmatprep.mubr.msk.f32.mxu1 %vm284_vm3, %v9469_v23 }
0x2db2   :  { %v5260_v49 = vpop.f32.mrb[60].mxu1 }
0x2db3   :  { %v8680_v50 = vpop.f32.mrb[61].mxu1 }
0x2db6   :  { %v5330_v52 = vpop.f32.mrb[62].mxu1 }
0x2db7   :  { %v5331_v55 = vadd.f32 %v5330_v52, %v5260_v49  ;;  %v8687_v56 = vpop.f32.mrb[63].mxu1 }
0x2db9   :  { %v5334_v57 = vadd.f32 %v5331_v55, %v9581_v58 }
0x2dbb   :  { %v5335_v60 = vmax.f32 %v5334_v57, 0.0 }
0x2dbd   :  { %8688 = vmatprep.subr.mxu1 %v5335_v60 }
0x2dbe   :  { %8689 = vmatpush3.msra.mxu1 %v5335_v60 }
0x2dbf   :  { %8691 = vmatmul.mubr.msk.f32.vlgmr.msra.gmra.mrb[64].mxu1 %vm284_vm3, %v9479_v31  ;;  %9127 = vmatprep.subr.bf16.mxu1 %v9491_v36 }
0x2dc0   :  { %8693 = vmatprep.mubr.msk.f32.mxu1 %vm284_vm3, %v9464_v17  ;;  %9129 = vmatpush3.bf16.msra.mxu1 %v9491_v36 }
0x2dc1   :  { %8718 = vmatprep.subr.msk.mxu1 %vm864_vm8, %v9872_v37 }
0x2dc3   :  { %8694 = vmatmul.mubr.msk.f32.gmra.mrb[66].mxu1 %vm284_vm3, %v9472_v25 }
0x2dc4   :  { %8719 = vmatpush3.msk.msra.mxu1 %vm864_vm8, %v9872_v37 }
0x2dc5   :  { %9131 = vmatprep.subr.bf16.mxu1 %v9524_v2 }
0x2e92   :  { %v8692_v61 = vpop.f32.mrb[64].mxu1 }
0x2e93   :  { %v5402_v62 = vpop.f32.mrb[65].mxu1 }
0x2e96   :  { %v8695_v63 = vpop.f32.mrb[66].mxu1 }
0x2e97   :  { %v5412_v1 = vpop.f32.mrb[67].mxu1 }
0x2e98   :  { %8702 = vmatprep.mubr.msk.f32.mxu0 %vm857_vm9, %v5412_v1 }
0x2e99   :  { %8703 = vmatmul.mubr.msk.f32.vlgmr.msra.gmra.mrb[56].mxu0 %vm857_vm9, %v8695_v63 }
0x2e9a   :  { %8711 = vmatprep.mubr.msk.f32.mxu0 %vm857_vm9, %v5402_v62  ;;  %9125 = vmatpush3.bf16.msra.mxu0 %v9607_v12 }
0x2e9b   :  { %8709 = vmatprep.subr.msk.mxu0 %vm864_vm8, %v10021_v59 }
0x2e9e   :  { %8710 = vmatpush3.msk.msra.mxu0 %vm864_vm8, %v10021_v59 }
0x2e9f   :  { %9138 = vmatprep.subr.bf16.mxu0 %v9371_v30 }
0x2ea1   :  { %8712 = vmatmul.mubr.msk.f32.vlgmr.msra.gmra.mrb[56].mxu0 %vm857_vm9, %v8692_v61 }
0x2ea2   :  { %8740 = vmatprep.mubr.msk.f32.mxu0 %vm9366_vm0, %v9365_v0 }
0x2f74   :  { %v8713_v3 = vpop.f32.mrb[56].mxu0 }
0x2f75   :  { %v5584_v8 = vadd.f32 %v8713_v3, %v9625_v20  ;;  %v5574_v9 = vpop.f32.mrb[57].mxu0 }
0x2f76   :  { %v5583_v14 = vadd.f32 %v5574_v9, %v9625_v20 }
0x2f77   :  { %v5592_v5 = vadd.f32 %v5588_v13, %v5584_v8 }
0x2f78   :  { %v5591_v16 = vadd.f32 %v5586_v15, %v5583_v14 }
0x2f79   :  { %v5594_v21 = vmax.f32 %v5592_v5, 0.0 }
0x2f7a   :  { %v5593_v19 = vmax.f32 %v5591_v16, 0.0 }
0x2f7c   :  { %8720 = vmatprep.mubr.msk.f32.mxu1 %vm857_vm9, %v5593_v19 }
0x2f7d   :  { %8721 = vmatmul.mubr.msk.f32.vlgmr.msra.gmra.mrb[68].mxu1 %vm857_vm9, %v5594_v21 }
0x2f7e   :  { %9133 = vmatpush3.bf16.msra.mxu1 %v9524_v2 }
0x2f7f   :  { %9135 = vmatprep.subr.bf16.mxu1 %v9526_v4 }
0x2f82   :  { %9137 = vmatpush3.bf16.msra.mxu1 %v9526_v4 }
0x2f83   :  { %8731 = vmatprep.subr.mxu1 %v9966_v18 }
0x2f86   :  { %8732 = vmatpush3.msra.mxu1 %v9966_v18 }
0x2f87   :  { %9145 = vmatprep.subr.bf16.mxu1 %v9597_v6 }
0x3050   :  { %v8722_v22 = vpop.f32.mrb[68].mxu1 }
0x3051   :  { %v5673_v24 = vadd.f32 %v8722_v22, %v9512_v53  ;;  %v5667_v26 = vpop.f32.mrb[69].mxu1 }
0x3052   :  { %v5668_v27 = vadd.f32 %v5667_v26, %v9512_v53 }
0x3053   :  { %5680 = vrot.lane.b32.xlu1 %v5673_v24, %s9368_s1 }
0x3054   :  { %5678 = vrot.lane.b32.xlu0 %v5668_v27, %s9368_s1 }
0x30c5   :  { %v5681_v29 = vpop.permute.xlu1 %5680 }
0x30c6   :  { %v5685_v33 = vadd.f32 %v5681_v29, %v5584_v8  ;;  %v5679_v34 = vpop.permute.xlu0 %5678 }
0x30c7   :  { %v5684_v35 = vadd.f32 %v5679_v34, %v5583_v14 }
0x30c8   :  { %v5687_v38 = vadd.f32 %v5685_v33, %v9536_v10 }
0x30c9   :  { %v5686_v40 = vadd.f32 %v5684_v35, %v9538_v11 }
0x30ca   :  { %v5689_v7 = vmax.f32 %v5687_v38, 0.0 }
0x30cb   :  { %v5688_v41 = vmax.f32 %v5686_v40, 0.0 }
0x30cc   :  { %5694 = vrot.lane.b32.xlu1 %v5689_v7, %s9369_s18 }
0x30cd   :  { %5692 = vrot.lane.b32.xlu0 %v5688_v41, %s9369_s18 }
0x30d0   :  { %6174 = vrot.lane.b32.xlu1 %v5668_v27, %s9370_s21 }
0x313e   :  { %v5695_v43 = vpop.permute.xlu1 %5694 }
0x313f   :  { %v5693_v42 = vpop.permute.xlu0 %5692 }
0x3140   :  { %8733 = vmatprep.mubr.msk.f32.mxu1 %vm971_vm13, %v5693_v42 }
0x3141   :  { %8734 = vmatmul.mubr.msk.f32.vlgmr.msra.gmra.mrb[70].mxu1 %vm971_vm13, %v5695_v43 }
0x3142   :  { %9147 = vmatpush3.bf16.msra.mxu1 %v9597_v6  ;;  %v6175_v22 = vpop.permute.xlu1 %6174 }
0x3143   :  { %8762 = vmatprep.subr.msk.mxu1 %vm864_vm8, %v9983_v28 }
0x3146   :  { %8763 = vmatpush3.msk.msra.mxu1 %vm864_vm8, %v9983_v28 }
0x3147   :  { %9149 = vmatprep.subr.bf16.mxu1 %v9607_v12 }
0x3214   :  { %v8735_v44 = vpop.f32.mrb[70].mxu1 }
0x3215   :  { %v5772_v45 = vadd.f32 %v8735_v44, %v9562_v32  ;;  %v5766_v46 = vpop.f32.mrb[71].mxu1 }
0x3216   :  { %v5767_v47 = vadd.f32 %v5766_v46, %v9562_v32 }
0x3218   :  { %v9291_v48 = vpack.i.bf16 %v5772_v45, %v5767_v47  ;;  %v9142_v49 = vpack.c.bf16 %v5772_v45, %v5767_v47 }
0x321a   :  { %9292 = vrot.lane.b32.xlu0 %v9291_v48, %s9369_s18 }
0x321e   :  { %6176 = vrot.lane.b32.xlu0 %v5673_v24, %s9370_s21 }
0x328c   :  { %v9293_v50 = vpop.permute.xlu0 %9292 }
0x328d   :  { %v9295_v52 = vunpack.i.h.bf16 %v9293_v50  ;;  %v9294_v55 = vunpack.i.l.bf16 %v9293_v50 }
0x328f   :  { %v9139_v56 = vpack.c.bf16 %v9295_v52, %v9294_v55 }
0x3290   :  { %v6177_v19 = vpop.permute.xlu0 %6176 }
0x3291   :  { %9140 = vmatpush3.bf16.msra.mxu0 %v9139_v56 }
0x3292   :  { %9141 = vmatprep.subr.bf16.mxu0 %v9371_v30 }
0x3294   :  { %8741 = vmatmul.mubr.msk.f32.vlgmr.msra.gmra.mrb[58].mxu0 %vm113_vm11, %v9569_v51 }
0x3295   :  { %9143 = vmatpush3.bf16.msra.mxu0 %v9142_v49  ;;  %8747 = vmatprep.mubr.msk.f32.mxu0 %vm9366_vm0, %v9365_v0 }
0x3298   :  { %8748 = vmatmul.mubr.msk.f32.vlgmr.msra.gmra.mrb[60].mxu0 %vm113_vm11, %v9572_v54 }
0x3299   :  { %8752 = vmatprep.mubr.msk.f32.mxu0 %vm284_vm3, %v9469_v23 }
0x3367   :  { %v5849_v57 = vpop.f32.mrb[58].mxu0 }
0x3368   :  { %v8742_v60 = vpop.f32.mrb[59].mxu0 }
0x336b   :  { %v5919_v61 = vpop.f32.mrb[60].mxu0 }
0x336c   :  { %v5920_v62 = vadd.f32 %v5919_v61, %v5849_v57  ;;  %v8749_v63 = vpop.f32.mrb[61].mxu0 }
0x336e   :  { %v5923_v1 = vadd.f32 %v5920_v62, %v9581_v58 }
0x3370   :  { %v5924_v3 = vmax.f32 %v5923_v1, 0.0 }
0x3372   :  { %8750 = vmatprep.subr.mxu0 %v5924_v3 }
0x3373   :  { %8751 = vmatpush3.msra.mxu0 %v5924_v3 }
0x3374   :  { %8753 = vmatmul.mubr.msk.f32.vlgmr.msra.gmra.mrb[62].mxu0 %vm284_vm3, %v9479_v31  ;;  %9153 = vmatprep.subr.bf16.mxu0 %v9491_v36 }
0x3375   :  { %8755 = vmatprep.mubr.msk.f32.mxu0 %vm284_vm3, %v9464_v17  ;;  %9155 = vmatpush3.bf16.msra.mxu0 %v9491_v36 }
0x3376   :  { %8780 = vmatprep.subr.msk.mxu0 %vm864_vm8, %v9872_v37 }
0x3378   :  { %8756 = vmatmul.mubr.msk.f32.gmra.mrb[64].mxu0 %vm284_vm3, %v9472_v25 }
0x3379   :  { %8781 = vmatpush3.msk.msra.mxu0 %vm864_vm8, %v9872_v37 }
0x337a   :  { %9157 = vmatprep.subr.bf16.mxu0 %v9524_v2 }
0x3447   :  { %v8754_v8 = vpop.f32.mrb[62].mxu0 }
0x3448   :  { %v5991_v9 = vpop.f32.mrb[63].mxu0 }
0x344b   :  { %v8757_v13 = vpop.f32.mrb[64].mxu0 }
0x344c   :  { %v6001_v14 = vpop.f32.mrb[65].mxu0 }
0x344d   :  { %8764 = vmatprep.mubr.msk.f32.mxu1 %vm857_vm9, %v6001_v14 }
0x344e   :  { %8765 = vmatmul.mubr.msk.f32.vlgmr.msra.gmra.mrb[72].mxu1 %vm857_vm9, %v8757_v13 }
0x344f   :  { %8773 = vmatprep.mubr.msk.f32.mxu1 %vm857_vm9, %v5991_v9  ;;  %9151 = vmatpush3.bf16.msra.mxu1 %v9607_v12 }
0x3450   :  { %8771 = vmatprep.subr.msk.mxu1 %vm864_vm8, %v10021_v59 }
0x3453   :  { %8772 = vmatpush3.msk.msra.mxu1 %vm864_vm8, %v10021_v59 }
0x3454   :  { %9164 = vmatprep.subr.bf16.mxu1 %v9371_v30 }
0x3456   :  { %8774 = vmatmul.mubr.msk.f32.vlgmr.msra.gmra.mrb[72].mxu1 %vm857_vm9, %v8754_v8 }
0x3457   :  { %8802 = vmatprep.mubr.msk.f32.mxu1 %vm9366_vm0, %v9365_v0 }
0x3529   :  { %v8775_v15 = vpop.f32.mrb[72].mxu1 }
0x352a   :  { %v6173_v5 = vadd.f32 %v8775_v15, %v9625_v20  ;;  %v6163_v16 = vpop.f32.mrb[73].mxu1 }
0x352b   :  { %v6172_v21 = vadd.f32 %v6163_v16, %v9625_v20 }
0x352c   :  { %v6181_v24 = vadd.f32 %v6177_v19, %v6173_v5 }
0x352d   :  { %v6180_v26 = vadd.f32 %v6175_v22, %v6172_v21 }
0x352e   :  { %v6183_v29 = vmax.f32 %v6181_v24, 0.0 }
0x352f   :  { %v6182_v27 = vmax.f32 %v6180_v26, 0.0 }
0x3531   :  { %8782 = vmatprep.mubr.msk.f32.mxu0 %vm857_vm9, %v6182_v27 }
0x3532   :  { %8783 = vmatmul.mubr.msk.f32.vlgmr.msra.gmra.mrb[66].mxu0 %vm857_vm9, %v6183_v29 }
0x3533   :  { %9159 = vmatpush3.bf16.msra.mxu0 %v9524_v2 }
0x3534   :  { %9161 = vmatprep.subr.bf16.mxu0 %v9526_v4 }
0x3537   :  { %9163 = vmatpush3.bf16.msra.mxu0 %v9526_v4 }
0x3538   :  { %8793 = vmatprep.subr.mxu0 %v9966_v18 }
0x353b   :  { %8794 = vmatpush3.msra.mxu0 %v9966_v18 }
0x353c   :  { %9171 = vmatprep.subr.bf16.mxu0 %v9597_v6 }
0x3605   :  { %v8784_v33 = vpop.f32.mrb[66].mxu0 }
0x3606   :  { %v6262_v34 = vadd.f32 %v8784_v33, %v9512_v53  ;;  %v6256_v35 = vpop.f32.mrb[67].mxu0 }
0x3607   :  { %v6257_v38 = vadd.f32 %v6256_v35, %v9512_v53 }
0x3608   :  { %6269 = vrot.lane.b32.xlu0 %v6262_v34, %s9368_s1 }
0x3609   :  { %6267 = vrot.lane.b32.xlu1 %v6257_v38, %s9368_s1 }
0x367a   :  { %v6270_v40 = vpop.permute.xlu0 %6269 }
0x367b   :  { %v6274_v7 = vadd.f32 %v6270_v40, %v6173_v5  ;;  %v6268_v41 = vpop.permute.xlu1 %6267 }
0x367c   :  { %v6273_v42 = vadd.f32 %v6268_v41, %v6172_v21 }
0x367d   :  { %v6276_v43 = vadd.f32 %v6274_v7, %v9536_v10 }
0x367e   :  { %v6275_v44 = vadd.f32 %v6273_v42, %v9538_v11 }
0x367f   :  { %v6278_v45 = vmax.f32 %v6276_v43, 0.0 }
0x3680   :  { %v6277_v46 = vmax.f32 %v6275_v44, 0.0 }
0x3681   :  { %6283 = vrot.lane.b32.xlu0 %v6278_v45, %s9369_s18 }
0x3682   :  { %6281 = vrot.lane.b32.xlu1 %v6277_v46, %s9369_s18 }
0x3685   :  { %6763 = vrot.lane.b32.xlu0 %v6257_v38, %s9370_s21 }
0x36f3   :  { %v6284_v48 = vpop.permute.xlu0 %6283 }
0x36f4   :  { %v6282_v47 = vpop.permute.xlu1 %6281 }
0x36f5   :  { %8795 = vmatprep.mubr.msk.f32.mxu0 %vm971_vm13, %v6282_v47 }
0x36f6   :  { %8796 = vmatmul.mubr.msk.f32.vlgmr.msra.gmra.mrb[68].mxu0 %vm971_vm13, %v6284_v48 }
0x36f7   :  { %9173 = vmatpush3.bf16.msra.mxu0 %v9597_v6  ;;  %v6764_v27 = vpop.permute.xlu0 %6763 }
0x36f8   :  { %8824 = vmatprep.subr.msk.mxu0 %vm864_vm8, %v9983_v28 }
0x36fb   :  { %8825 = vmatpush3.msk.msra.mxu0 %vm864_vm8, %v9983_v28 }
0x36fc   :  { %9175 = vmatprep.subr.bf16.mxu0 %v9607_v12 }
0x37c9   :  { %v8797_v49 = vpop.f32.mrb[68].mxu0 }
0x37ca   :  { %v6361_v50 = vadd.f32 %v8797_v49, %v9562_v32  ;;  %v6355_v52 = vpop.f32.mrb[69].mxu0 }
0x37cb   :  { %v6356_v55 = vadd.f32 %v6355_v52, %v9562_v32 }
0x37cd   :  { %v9296_v56 = vpack.i.bf16 %v6361_v50, %v6356_v55  ;;  %v9168_v57 = vpack.c.bf16 %v6361_v50, %v6356_v55 }
0x37cf   :  { %9297 = vrot.lane.b32.xlu1 %v9296_v56, %s9369_s18 }
0x37d3   :  { %6765 = vrot.lane.b32.xlu1 %v6262_v34, %s9370_s21 }
0x3841   :  { %v9298_v60 = vpop.permute.xlu1 %9297 }
0x3842   :  { %v9300_v61 = vunpack.i.h.bf16 %v9298_v60  ;;  %v9299_v62 = vunpack.i.l.bf16 %v9298_v60 }
0x3844   :  { %v9165_v63 = vpack.c.bf16 %v9300_v61, %v9299_v62 }
0x3845   :  { %v6766_v24 = vpop.permute.xlu1 %6765 }
0x3846   :  { %9166 = vmatpush3.bf16.msra.mxu1 %v9165_v63 }
0x3847   :  { %9167 = vmatprep.subr.bf16.mxu1 %v9371_v30 }
0x3849   :  { %8803 = vmatmul.mubr.msk.f32.vlgmr.msra.gmra.mrb[74].mxu1 %vm113_vm11, %v9569_v51 }
0x384a   :  { %9169 = vmatpush3.bf16.msra.mxu1 %v9168_v57  ;;  %8809 = vmatprep.mubr.msk.f32.mxu1 %vm9366_vm0, %v9365_v0 }
0x384d   :  { %8810 = vmatmul.mubr.msk.f32.vlgmr.msra.gmra.mrb[76].mxu1 %vm113_vm11, %v9572_v54 }
0x384e   :  { %8814 = vmatprep.mubr.msk.f32.mxu1 %vm284_vm3, %v9469_v23 }
0x391c   :  { %v6438_v1 = vpop.f32.mrb[74].mxu1 }
0x391d   :  { %v8804_v3 = vpop.f32.mrb[75].mxu1 }
0x3920   :  { %v6508_v8 = vpop.f32.mrb[76].mxu1 }
0x3921   :  { %v6509_v9 = vadd.f32 %v6508_v8, %v6438_v1  ;;  %v8811_v13 = vpop.f32.mrb[77].mxu1 }
0x3923   :  { %v6512_v14 = vadd.f32 %v6509_v9, %v9581_v58 }
0x3925   :  { %v6513_v15 = vmax.f32 %v6512_v14, 0.0 }
0x3927   :  { %8812 = vmatprep.subr.mxu1 %v6513_v15 }
0x3928   :  { %8813 = vmatpush3.msra.mxu1 %v6513_v15 }
0x3929   :  { %8815 = vmatmul.mubr.msk.f32.vlgmr.msra.gmra.mrb[78].mxu1 %vm284_vm3, %v9479_v31  ;;  %9179 = vmatprep.subr.bf16.mxu1 %v9491_v36 }
0x392a   :  { %8817 = vmatprep.mubr.msk.f32.mxu1 %vm284_vm3, %v9464_v17  ;;  %9181 = vmatpush3.bf16.msra.mxu1 %v9491_v36 }
0x392b   :  { %8842 = vmatprep.subr.msk.mxu1 %vm864_vm8, %v9872_v37 }
0x392d   :  { %8818 = vmatmul.mubr.msk.f32.gmra.mrb[80].mxu1 %vm284_vm3, %v9472_v25 }
0x392e   :  { %8843 = vmatpush3.msk.msra.mxu1 %vm864_vm8, %v9872_v37 }
0x392f   :  { %9183 = vmatprep.subr.bf16.mxu1 %v9524_v2 }
0x39fc   :  { %v8816_v5 = vpop.f32.mrb[78].mxu1 }
0x39fd   :  { %v6580_v16 = vpop.f32.mrb[79].mxu1 }
0x3a00   :  { %v8819_v19 = vpop.f32.mrb[80].mxu1 }
0x3a01   :  { %v6590_v21 = vpop.f32.mrb[81].mxu1 }
0x3a02   :  { %8826 = vmatprep.mubr.msk.f32.mxu0 %vm857_vm9, %v6590_v21 }
0x3a03   :  { %8827 = vmatmul.mubr.msk.f32.vlgmr.msra.gmra.mrb[70].mxu0 %vm857_vm9, %v8819_v19  ;;  %v65_v19 = vld [vmem:[#allocation2 + $0xf0] sm:$0xff] }
0x3a04   :  { %8835 = vmatprep.mubr.msk.f32.mxu0 %vm857_vm9, %v6580_v16  ;;  %9177 = vmatpush3.bf16.msra.mxu0 %v9607_v12  ;;  %v64_v16 = vld [vmem:[#allocation2 + $0xe8] sm:$0xff] }
0x3a05   :  { %8833 = vmatprep.subr.msk.mxu0 %vm864_vm8, %v10021_v59  ;;  %v9208_v21 = vpack.c.bf16 %v65_v19, %v64_v16 }
0x3a08   :  { %8834 = vmatpush3.msk.msra.mxu0 %vm864_vm8, %v10021_v59 }
0x3a09   :  { %9190 = vmatprep.subr.bf16.mxu0 %v9371_v30 }
0x3a0b   :  { %8836 = vmatmul.mubr.msk.f32.vlgmr.msra.gmra.mrb[70].mxu0 %vm857_vm9, %v8816_v5 }
0x3a0c   :  { %8864 = vmatprep.mubr.msk.f32.mxu0 %vm9366_vm0, %v9365_v0 }
0x3ade   :  { %v8837_v36 = vpop.f32.mrb[70].mxu0 }
0x3adf   :  { %v6762_v37 = vadd.f32 %v8837_v36, %v9625_v20  ;;  %v6752_v22 = vpop.f32.mrb[71].mxu0  ;;  %v66_v36 = vld [vmem:[#allocation2 + $0xf8] sm:$0xff] }
0x3ae0   :  { %v6761_v26 = vadd.f32 %v6752_v22, %v9625_v20 }
0x3ae1   :  { %v6770_v29 = vadd.f32 %v6766_v24, %v6762_v37 }
0x3ae2   :  { %v6769_v33 = vadd.f32 %v6764_v27, %v6761_v26 }
0x3ae3   :  { %v6772_v35 = vmax.f32 %v6770_v29, 0.0 }
0x3ae4   :  { %v6771_v34 = vmax.f32 %v6769_v33, 0.0 }
0x3ae6   :  { %8844 = vmatprep.mubr.msk.f32.mxu1 %vm857_vm9, %v6771_v34  ;;  %v67_v34 = vld [vmem:[#allocation2 + $0x100] sm:$0xff] }
0x3ae7   :  { %8845 = vmatmul.mubr.msk.f32.vlgmr.msra.gmra.mrb[82].mxu1 %vm857_vm9, %v6772_v35  ;;  %v7455_v35 = vrot.slane %v67_v34, %v9504_v39 }
0x3ae8   :  { %9185 = vmatpush3.bf16.msra.mxu1 %v9524_v2 }
0x3ae9   :  { %9187 = vmatprep.subr.bf16.mxu1 %v9526_v4 }
0x3aec   :  { %9189 = vmatpush3.bf16.msra.mxu1 %v9526_v4 }
0x3aed   :  { %8855 = vmatprep.subr.mxu1 %v9966_v18 }
0x3af0   :  { %8856 = vmatpush3.msra.mxu1 %v9966_v18 }
0x3af1   :  { %9197 = vmatprep.subr.bf16.mxu1 %v9597_v6 }
0x3bba   :  { %v8846_v38 = vpop.f32.mrb[82].mxu1 }
0x3bbb   :  { %v6851_v40 = vadd.f32 %v8846_v38, %v9512_v53  ;;  %v6845_v7 = vpop.f32.mrb[83].mxu1 }
0x3bbc   :  { %v6846_v41 = vadd.f32 %v6845_v7, %v9512_v53 }
0x3bbd   :  { %6858 = vrot.lane.b32.xlu1 %v6851_v40, %s9368_s1 }
0x3bbe   :  { %6856 = vrot.lane.b32.xlu0 %v6846_v41, %s9368_s1 }
0x3c2f   :  { %v6859_v2 = vpop.permute.xlu1 %6858 }
0x3c30   :  { %v6863_v42 = vadd.f32 %v6859_v2, %v6762_v37  ;;  %v6857_v43 = vpop.permute.xlu0 %6856 }
0x3c31   :  { %v6862_v4 = vadd.f32 %v6857_v43, %v6761_v26 }
0x3c32   :  { %v6865_v44 = vadd.f32 %v6863_v42, %v9536_v10 }
0x3c33   :  { %v6864_v18 = vadd.f32 %v6862_v4, %v9538_v11 }
0x3c34   :  { %v6867_v45 = vmax.f32 %v6865_v44, 0.0 }
0x3c35   :  { %v6866_v46 = vmax.f32 %v6864_v18, 0.0 }
0x3c36   :  { %6872 = vrot.lane.b32.xlu1 %v6867_v45, %s9369_s18 }
0x3c37   :  { %6870 = vrot.lane.b32.xlu0 %v6866_v46, %s9369_s18 }
0x3c3a   :  { %7352 = vrot.lane.b32.xlu1 %v6846_v41, %s9370_s21 }
0x3ca8   :  { %v6873_v47 = vpop.permute.xlu1 %6872 }
0x3ca9   :  { %v6871_v53 = vpop.permute.xlu0 %6870 }
0x3caa   :  { %8857 = vmatprep.mubr.msk.f32.mxu1 %vm971_vm13, %v6871_v53 }
0x3cab   :  { %8858 = vmatmul.mubr.msk.f32.vlgmr.msra.gmra.mrb[84].mxu1 %vm971_vm13, %v6873_v47 }
0x3cac   :  { %9199 = vmatpush3.bf16.msra.mxu1 %v9597_v6 }
0x3cad   :  { %8886 = vmatprep.subr.msk.mxu1 %vm864_vm8, %v9983_v28 }
0x3cb0   :  { %8887 = vmatpush3.msk.msra.mxu1 %vm864_vm8, %v9983_v28 }
0x3cb1   :  { %9201 = vmatprep.subr.bf16.mxu1 %v9607_v12 }
0x3d7e   :  { %v8859_v10 = vpop.f32.mrb[84].mxu1 }
0x3d7f   :  { %v6950_v11 = vadd.f32 %v8859_v10, %v9562_v32  ;;  %v6944_v48 = vpop.f32.mrb[85].mxu1 }
0x3d80   :  { %v6945_v49 = vadd.f32 %v6944_v48, %v9562_v32 }
0x3d82   :  { %v9301_v50 = vpack.i.bf16 %v6950_v11, %v6945_v49  ;;  %v9194_v52 = vpack.c.bf16 %v6950_v11, %v6945_v49 }
0x3d84   :  { %9302 = vrot.lane.b32.xlu0 %v9301_v50, %s9369_s18 }
0x3d88   :  { %7354 = vrot.lane.b32.xlu0 %v6851_v40, %s9370_s21 }
0x3df6   :  { %v9303_v6 = vpop.permute.xlu0 %9302 }
0x3df7   :  { %v9305_v55 = vunpack.i.h.bf16 %v9303_v6  ;;  %v9304_v56 = vunpack.i.l.bf16 %v9303_v6 }
0x3df9   :  { %v9191_v57 = vpack.c.bf16 %v9305_v55, %v9304_v56 }
0x3dfa   :  { %v7355_v8 = vpop.permute.xlu0 %7354 }
0x3dfb   :  { %9192 = vmatpush3.bf16.msra.mxu0 %v9191_v57 }
0x3dfc   :  { %9193 = vmatprep.subr.bf16.mxu0 %v9371_v30 }
0x3dfe   :  { %8865 = vmatmul.mubr.msk.f32.vlgmr.msra.gmra.mrb[72].mxu0 %vm113_vm11, %v9569_v51 }
0x3dff   :  { %9195 = vmatpush3.bf16.msra.mxu0 %v9194_v52  ;;  %8871 = vmatprep.mubr.msk.f32.mxu0 %vm9366_vm0, %v9365_v0 }
0x3e02   :  { %8872 = vmatmul.mubr.msk.f32.vlgmr.msra.gmra.mrb[74].mxu0 %vm113_vm11, %v9572_v54 }
0x3e03   :  { %8876 = vmatprep.mubr.msk.f32.mxu0 %vm284_vm3, %v9469_v23 }
0x3ed1   :  { %v7027_v32 = vpop.f32.mrb[72].mxu0 }
0x3ed2   :  { %v8866_v28 = vpop.f32.mrb[73].mxu0 }
0x3ed5   :  { %v7097_v60 = vpop.f32.mrb[74].mxu0 }
0x3ed6   :  { %v7098_v61 = vadd.f32 %v7097_v60, %v7027_v32  ;;  %v8873_v62 = vpop.f32.mrb[75].mxu0 }
0x3ed8   :  { %v7101_v30 = vadd.f32 %v7098_v61, %v9581_v58  ;;  %v62_v58 = vld [vmem:[#allocation2 + $0xd8] sm:$0xff] }
0x3eda   :  { %v7102_v63 = vmax.f32 %v7101_v30, 0.0 }
0x3edc   :  { %8874 = vmatprep.subr.mxu0 %v7102_v63 }
0x3edd   :  { %8875 = vmatpush3.msra.mxu0 %v7102_v63 }
0x3ede   :  { %8877 = vmatmul.mubr.msk.f32.vlgmr.msra.gmra.mrb[76].mxu0 %vm284_vm3, %v9479_v31 }
0x3edf   :  { %8879 = vmatprep.mubr.msk.f32.mxu0 %vm284_vm3, %v9464_v17  ;;  %v60_v17 = vld [vmem:[#allocation2 + $0xc8] sm:$0xff] }
0x3ee2   :  { %8880 = vmatmul.mubr.msk.f32.gmra.mrb[78].mxu0 %vm284_vm3, %v9472_v25  ;;  %v61_v25 = vld [vmem:[#allocation2 + $0xd0] sm:$0xff] }
0x3ee3   :  { %v9204_v31 = vpack.c.bf16 %v61_v25, %v60_v17 }
0x3ee5   :  { %9205 = vmatprep.subr.bf16.mxu0 %v9204_v31 }
0x3ee6   :  { %9207 = vmatpush3.bf16.msra.mxu0 %v9204_v31 }
0x3ee7   :  { %8904 = vmatprep.subr.msk.mxu0 %vm864_vm8, %v62_v58 }
0x3eea   :  { %8905 = vmatpush3.msk.msra.mxu0 %vm864_vm8, %v62_v58 }
0x3eeb   :  { %9209 = vmatprep.subr.bf16.mxu0 %v9208_v21 }
0x3fb1   :  { %v8878_v0 = vpop.f32.mrb[76].mxu0 }
0x3fb2   :  { %v7169_v23 = vpop.f32.mrb[77].mxu0 }
0x3fb5   :  { %v8881_v51 = vpop.f32.mrb[78].mxu0 }
0x3fb6   :  { %v7179_v54 = vpop.f32.mrb[79].mxu0 }
0x3fb7   :  { %8888 = vmatprep.mubr.msk.f32.mxu1 %vm857_vm9, %v7179_v54 }
0x3fb8   :  { %8889 = vmatmul.mubr.msk.f32.vlgmr.msra.gmra.mrb[86].mxu1 %vm857_vm9, %v8881_v51 }
0x3fb9   :  { %8897 = vmatprep.mubr.msk.f32.mxu1 %vm857_vm9, %v7169_v23  ;;  %9203 = vmatpush3.bf16.msra.mxu1 %v9607_v12 }
0x3fba   :  { %8895 = vmatprep.subr.msk.mxu1 %vm864_vm8, %v10021_v59 }
0x3fbd   :  { %8896 = vmatpush3.msk.msra.mxu1 %vm864_vm8, %v10021_v59  ;;  %v7353_v59 = vpop.permute.xlu1 %7352 }
0x3fc0   :  { %8898 = vmatmul.mubr.msk.f32.vlgmr.msra.gmra.mrb[86].mxu1 %vm857_vm9, %v8878_v0 }
0x4093   :  { %v8899_v1 = vpop.f32.mrb[86].mxu1 }
0x4094   :  { %v7351_v12 = vadd.f32 %v8899_v1, %v9625_v20  ;;  %v7341_v3 = vpop.f32.mrb[87].mxu1 }
0x4095   :  { %v7350_v9 = vadd.f32 %v7341_v3, %v9625_v20  ;;  %v63_v20 = vld [vmem:[#allocation2 + $0xe0] sm:$0xff] }
0x4096   :  { %v7359_v13 = vadd.f32 %v7355_v8, %v7351_v12  ;;  %v7365_v37 = vrot.slane %v63_v20, %v9504_v39 }
0x4097   :  { %v7358_v14 = vadd.f32 %v7353_v59, %v7350_v9 }
0x4098   :  { %v7361_v5 = vmax.f32 %v7359_v13, 0.0 }
0x4099   :  { %v7360_v15 = vmax.f32 %v7358_v14, 0.0 }
0x409b   :  { %8906 = vmatprep.mubr.msk.f32.mxu0 %vm857_vm9, %v7360_v15 }
0x409c   :  { %8907 = vmatmul.mubr.msk.f32.vlgmr.msra.gmra.mrb[80].mxu0 %vm857_vm9, %v7361_v5 }
0x409d   :  { %9211 = vmatpush3.bf16.msra.mxu0 %v9208_v21 }
0x409e   :  { %8913 = vmatprep.subr.msk.mxu0 %vm864_vm8, %v66_v36 }
0x40a1   :  { %8914 = vmatpush3.msk.msra.mxu0 %vm864_vm8, %v66_v36 }
0x416f   :  { %v8908_v22 = vpop.f32.mrb[80].mxu0 }
0x4170   :  { %v7447_v24 = vadd.f32 %v8908_v22, %v7365_v37  ;;  %v7441_v26 = vpop.f32.mrb[81].mxu0 }
0x4171   :  { %v7442_v27 = vadd.f32 %v7441_v26, %v7365_v37 }
0x4172   :  { %v7451_v33 = vmax.f32 %v7447_v24, 0.0 }
0x4173   :  { %v7450_v29 = vmax.f32 %v7442_v27, 0.0 }
0x4175   :  { %8915 = vmatprep.mubr.msk.f32.mxu0 %vm857_vm9, %v7450_v29 }
0x4176   :  { %8916 = vmatmul.mubr.msk.f32.vlgmr.msra.gmra.mrb[82].mxu0 %vm857_vm9, %v7451_v33 }
0x4249   :  { %v8917_v38 = vpop.f32.mrb[82].mxu0 }
0x424a   :  { %v7537_v40 = vadd.f32 %v8917_v38, %v7455_v35  ;;  %v7531_v7 = vpop.f32.mrb[83].mxu0 }
0x424b   :  { %v7532_v41 = vadd.f32 %v7531_v7, %v7455_v35 }
0x424c   :  { %7541 = vst [vmem:[#allocation5 + $0x8] sm:$0xff] %v7537_v40 }
0x424d   :  { %7540 = vst [vmem:[#allocation5] sm:$0xff] %v7532_v41 }
0x424e   :  { %9347 = shalt.err (!%p9344_p12)
}
0x424f   :  { %s9348_s26 = scalar_lea.hbm %s10317_s5, 256 }
0x4250   :  { %p9349_p13 = scmp.ne.s32.totalorder %s10317_s5, %s9348_s26  ;;  %p9352_p0 = scmp.lt.u32.totalorder %s9348_s26, %s10317_s5 }
0x4252   :  { %p9354_p1 = pnand %p9352_p0, %p9349_p13 }
0x4254   :  { %9357 = shalt.err (!%p9354_p1)
}
0x4255   :  { %7553 = dma.vmem_to_hbm [thread:$0]  %s7548_s22, 256, %s10317_s5, [#allocation4], %s9363_s28, %s9363_s28, %s9364_s29  }
0x4256   :  { %9360 = dma.done.wait [#allocation4], 256  }
0x4257   :  { %9361 = vsyncadd [#allocation4], 4294967040 }
0x4258   :  { %7557 = vsyncpa [#allocation3], 1 }
0x4259   :  { %7558 = vsyncpa [#allocation4], 1 }

</bundles_post_ra>
